<compile_context>
chip_gen: v7x
topology: tpu7x:2x2x1
jax: 0.10.0
libtpu: 0.0.40
codegen_flags: <defaults>
</compile_context>

<pallas_src>
import jax
import jax.numpy as jnp
from jax import lax
from jax.experimental import pallas as pl
from jax.experimental.pallas import tpu as pltpu

NCLASSES = 20
KSIZE = 5
POOL = 2
LANES = 128        # TPU lane width: channel-like dims are padded to this.
TM_MAX = 512       # max pooled-row tile per grid step.
ROW_ALIGN = 16     # bf16 sublane packing: row tiles in multiples of 16.


def _round_up(x, m):
    return (x + m - 1) // m * m


def _choose_tile(m):
    """Largest row tile (multiple of 16, <= TM_MAX) that minimizes padded rows."""
    cap = min(TM_MAX, _round_up(m, ROW_ALIGN))
    best_tm, best_pad = ROW_ALIGN, None
    for tm in range(ROW_ALIGN, cap + 1, ROW_ALIGN):
        pad = _round_up(m, tm) - m
        if best_pad is None or pad < best_pad or (pad == best_pad and tm > best_tm):
            best_tm, best_pad = tm, pad
    return best_tm


# ----------------------------- Pallas kernels -------------------------------

def _conv_pool_relu_kernel(p_ref, w_ref, b_ref, o_ref):
    """Fused conv (im2col matmul) + 2x2 maxpool + bias + ReLU.

    p_ref: (4, TM, Kp) bf16  im2col patches; leading axis = 2x2 pool offset.
    w_ref: (Kp, 128)   bf16  flattened conv weight, zero padded.
    b_ref: (1, 128)    f32   bias, zero padded.
    o_ref: (TM, 128)   bf16  pooled + activated output tile (lane dense).
    """
    four, tm, kp = p_ref.shape
    # One MXU call covers all four pool offsets: merging the leading dims is a
    # layout-preserving reshape (TM is a multiple of 16, lanes untouched).
    p = p_ref[...].reshape(four * tm, kp)
    acc = jnp.dot(p, w_ref[...], preferred_element_type=jnp.float32)
    acc = acc.reshape(four, tm, LANES)
    pooled = jnp.max(acc, axis=0)                      # 2x2 max pool (VPU max)
    # bias is a per-channel constant, so adding it after the max is exact.
    o_ref[...] = jnp.maximum(pooled + b_ref[...], 0.0).astype(o_ref.dtype)


def _mlp_kernel(x_ref, w1_ref, b1_ref, w2_ref, b2_ref, o_ref):
    """fc1 + ReLU + fc2, fused; all dims padded to 128 lanes."""
    h = jnp.dot(x_ref[...], w1_ref[...], preferred_element_type=jnp.float32)
    h = jnp.maximum(h + b1_ref[...], 0.0)
    o_ref[...] = (jnp.dot(h, w2_ref[...], preferred_element_type=jnp.float32)
                  + b2_ref[...])


_VMEM = pl.BlockSpec(memory_space=pltpu.MemorySpace.VMEM)


def conv_pool_relu(patches, w_pad, b_pad, tm):
    four, mp, kp = patches.shape
    return pl.pallas_call(
        _conv_pool_relu_kernel,
        out_shape=jax.ShapeDtypeStruct((mp, LANES), jnp.bfloat16),
        grid=(mp // tm,),
        in_specs=[
            pl.BlockSpec((four, tm, kp), lambda i: (0, i, 0)),
            pl.BlockSpec((kp, LANES), lambda i: (0, 0)),   # weight stays resident
            pl.BlockSpec((1, LANES), lambda i: (0, 0)),    # bias stays resident
        ],
        out_specs=pl.BlockSpec((tm, LANES), lambda i: (i, 0)),
        compiler_params=pltpu.CompilerParams(
            dimension_semantics=("parallel",),
            vmem_limit_bytes=32 * 1024 * 1024,
        ),
    )(patches, w_pad, b_pad)


def mlp(x, w1, b1, w2, b2):
    n = x.shape[0]
    npad = _round_up(n, 8)
    if npad != n:                       # unmasked sublane stores
        x = jnp.pad(x, ((0, npad - n), (0, 0)))
    out = pl.pallas_call(
        _mlp_kernel,
        out_shape=jax.ShapeDtypeStruct((npad, LANES), jnp.float32),
        in_specs=[_VMEM] * 5,
        out_specs=_VMEM,
    )(x, w1, b1, w2, b2)
    return out[:n]


# ------------------------------- JAX glue ------------------------------------

def _pool_offset_patches(x, tm):
    """x: (N, H, W, C) bf16 NHWC.  Returns a (4, Mp, Kp) bf16 patch tensor:
    one row group per 2x2 pool offset, rows ordered (n, hp, wp), features in
    (c, ky, kx) order (matches the OIHW weight reshape), zero-padded so the row
    count is a multiple of the tile and K is a multiple of 128 lanes."""
    n, h, w, c = x.shape
    hp, wp = (h - KSIZE + 1) // POOL, (w - KSIZE + 1) // POOL
    m, k = n * hp * wp, c * KSIZE * KSIZE
    offs = []
    for di in range(POOL):
        for dj in range(POOL):
            # Patches of the conv positions (2i+di, 2j+dj): a single fused
            # identity-filter conv per offset (pure gather, no MACs).
            p = lax.conv_general_dilated_patches(
                x[:, di:, dj:, :], (KSIZE, KSIZE), (POOL, POOL), "VALID",
                dimension_numbers=("NHWC", "HWIO", "NHWC"))
            offs.append(p[:, :hp, :wp, :].reshape(m, k))
    pat = jnp.stack(offs, axis=0)                            # (4, M, K) bf16
    mp, kp = _round_up(m, tm), _round_up(k, LANES)
    return jnp.pad(pat, ((0, 0), (0, mp - m), (0, kp - k)))


def _conv_layer(x, w_pad, b_pad, cout):
    n, h, w, _ = x.shape
    hp, wp = (h - KSIZE + 1) // POOL, (w - KSIZE + 1) // POOL
    m = n * hp * wp
    tm = _choose_tile(m)
    pat = _pool_offset_patches(x, tm)
    out = conv_pool_relu(pat, w_pad, b_pad, tm)              # (Mp, 128) bf16
    # Stay in NHWC between layers (no NCHW transpose); drop padded rows/lanes.
    return out[:m].reshape(n, hp, wp, LANES)[..., :cout]


def init_params(key):
    """Deterministic PyTorch-style (uniform +-1/sqrt(fan_in)) initialization."""
    def u(k, shape, fan_in):
        bound = 1.0 / jnp.sqrt(fan_in)
        return jax.random.uniform(k, shape, jnp.float32, -bound, bound)

    ks = jax.random.split(key, 10)
    p = {}
    p["w1"] = u(ks[0], (10, 3, KSIZE, KSIZE), 3 * KSIZE * KSIZE)
    p["b1"] = u(ks[1], (10,), 3 * KSIZE * KSIZE)
    p["w2"] = u(ks[2], (20, 10, KSIZE, KSIZE), 10 * KSIZE * KSIZE)
    p["b2"] = u(ks[3], (20,), 10 * KSIZE * KSIZE)
    p["w3"] = u(ks[4], (20, 20, KSIZE, KSIZE), 20 * KSIZE * KSIZE)
    p["b3"] = u(ks[5], (20,), 20 * KSIZE * KSIZE)
    p["wf1"] = u(ks[6], (50, 320), 320)
    p["bf1"] = u(ks[7], (50,), 320)
    p["wf2"] = u(ks[8], (NCLASSES, 50), 50)
    p["bf2"] = u(ks[9], (NCLASSES,), 50)
    return p


def prep_params(p):
    """One-time weight packing (outside the jitted forward): flatten/transpose,
    pad channel dims to 128 lanes and contraction dims to multiples of 128,
    cast matmul operands to bf16."""
    prep = {}
    for i, (wn, bn) in enumerate((("w1", "b1"), ("w2", "b2"), ("w3", "b3")), 1):
        w = p[wn]                                    # (Cout, Cin, 5, 5) OIHW
        cout, cin = w.shape[0], w.shape[1]
        k = cin * KSIZE * KSIZE
        kp = _round_up(k, LANES)
        wf = w.reshape(cout, k).T                    # (Cin*k*k, Cout), (c,ky,kx) rows
        prep[f"cw{i}"] = jnp.pad(
            wf, ((0, kp - k), (0, LANES - cout))).astype(jnp.bfloat16)
        prep[f"cb{i}"] = jnp.pad(p[bn], (0, LANES - cout)).reshape(1, LANES)
    # fc1: permute the 320 input columns from PyTorch's (c, h, w) flatten order
    # to our NHWC (h, w, c) flatten order; pad 320->384 rows, 50->128 cols.
    w1 = p["wf1"].reshape(50, 20, 4, 4).transpose(0, 2, 3, 1).reshape(50, 320).T
    prep["fw1"] = jnp.pad(w1, ((0, 384 - 320), (0, LANES - 50)))
    prep["fb1"] = jnp.pad(p["bf1"], (0, LANES - 50)).reshape(1, LANES)
    w2 = p["wf2"].T                                  # (50, NCLASSES)
    prep["fw2"] = jnp.pad(w2, ((0, LANES - 50), (0, LANES - NCLASSES)))
    prep["fb2"] = jnp.pad(p["bf2"], (0, LANES - NCLASSES)).reshape(1, LANES)
    return prep


@jax.jit
def net_forward(x, prep):
    # x: (N, 3, 60, 60) NCHW f32 (PyTorch layout). One transpose to NHWC + bf16.
    x = jnp.transpose(x, (0, 2, 3, 1)).astype(jnp.bfloat16)
    x = _conv_layer(x, prep["cw1"], prep["cb1"], 10)   # (N, 28, 28, 10)
    x = _conv_layer(x, prep["cw2"], prep["cb2"], 20)   # (N, 12, 12, 20)
    x = _conv_layer(x, prep["cw3"], prep["cb3"], 20)   # (N, 4, 4, 20)
    n = x.shape[0]
    xf = x.reshape(n, 320).astype(jnp.float32)         # NHWC flatten (fc1 permuted to match)
    xf = jnp.pad(xf, ((0, 0), (0, 384 - 320)))
    logits = mlp(xf, prep["fw1"], prep["fb1"], prep["fw2"], prep["fb2"])
    return logits[:, :NCLASSES]


# --------------------------- pure-JAX reference ------------------------------

def ref_forward(x, p):
    def conv(x, w, b):
        y = lax.conv_general_dilated(
            x, w, (1, 1), "VALID",
            dimension_numbers=("NCHW", "OIHW", "NCHW"))
        return y + b[None, :, None, None]

    def pool2(x):
        return lax.reduce_window(x, -jnp.inf, lax.max,
                                 (1, 1, 2, 2), (1, 1, 2, 2), "VALID")

    x = jnp.maximum(pool2(conv(x, p["w1"], p["b1"])), 0.0)
    x = jnp.maximum(pool2(conv(x, p["w2"], p["b2"])), 0.0)
    x = jnp.maximum(pool2(conv(x, p["w3"], p["b3"])), 0.0)
    x = x.reshape(x.shape[0], 320)
    x = jnp.maximum(x @ p["wf1"].T + p["bf1"], 0.0)
    return x @ p["wf2"].T + p["bf2"]


# ----------------------------------- main ------------------------------------

if __name__ == "__main__":
    key = jax.random.PRNGKey(0)
    kx, kp_ = jax.random.split(key)
    x = jax.random.normal(kx, (2, 3, 60, 60), jnp.float32)   # NCHW, batch=2
    params = init_params(kp_)
    prep = prep_params(params)

    out = jax.block_until_ready(net_forward(x, prep))
    assert out.shape == (2, NCLASSES), out.shape

    ref = jax.block_until_ready(ref_forward(x, params))
    max_err = float(jnp.max(jnp.abs(out - ref)))
    # bf16 matmul operands (f32 accumulation) -> loosened tolerance vs f32 ref.
    assert jnp.allclose(out, ref, rtol=5e-2, atol=5e-2), max_err

    print("KERNEL_OK")
</pallas_src>

<mosaic_0001>
module attributes {stable_mosaic.version = 11 : i64} {
  func.func @_conv_pool_relu_kernel(%arg0: i32, %arg1: memref<4x224x128xbf16, #tpu.memory_space<vmem>>, %arg2: memref<128x128xbf16, #tpu.memory_space<vmem>>, %arg3: memref<1x128xf32, #tpu.memory_space<vmem>>, %arg4: memref<224x128xbf16, #tpu.memory_space<vmem>>) attributes {dimension_semantics = [#tpu.dimension_semantics<parallel>], iteration_bounds = array<i64: 7>, scalar_prefetch = 0 : i64, scratch_operands = 0 : i64, tpu.core_type = #tpu.core_type<tc>, window_params = [{transform_indices = @transform_0, window_bounds = array<i64: 4, 224, 128>}, {pipeline_mode = #tpu.pipeline_mode<synchronous>, transform_indices = @transform_1, window_bounds = array<i64: 128, 128>}, {pipeline_mode = #tpu.pipeline_mode<synchronous>, transform_indices = @transform_2, window_bounds = array<i64: 1, 128>}, {transform_indices = @transform_3, window_bounds = array<i64: 224, 128>}]} {
    %c0 = arith.constant 0 : index
    %c0_0 = arith.constant 0 : index
    %c0_1 = arith.constant 0 : index
    %0 = vector.load %arg1[%c0, %c0_0, %c0_1] : memref<4x224x128xbf16, #tpu.memory_space<vmem>>, vector<4x224x128xbf16>
    %1 = vector.shape_cast %0 : vector<4x224x128xbf16> to vector<896x128xbf16>
    %c0_2 = arith.constant 0 : index
    %c0_3 = arith.constant 0 : index
    %2 = vector.load %arg2[%c0_2, %c0_3] : memref<128x128xbf16, #tpu.memory_space<vmem>>, vector<128x128xbf16>
    %cst = arith.constant dense<0.000000e+00> : vector<896x128xf32>
    %3 = tpu.matmul %1, %2, %cst {dimension_numbers = #tpu.dot_dimension_numbers<[1], [0], [0], [1], [0, 0, 1, 1], [], []>} : vector<896x128xbf16>, vector<128x128xbf16>, vector<896x128xf32> -> vector<896x128xf32>
    %4 = vector.shape_cast %3 : vector<896x128xf32> to vector<4x224x128xf32>
    %cst_4 = arith.constant dense<0xFF800000> : vector<224x128xf32>
    %5 = vector.multi_reduction <maximumf>, %4, %cst_4 [0] : vector<4x224x128xf32> to vector<224x128xf32>
    %c0_5 = arith.constant 0 : index
    %c0_6 = arith.constant 0 : index
    %6 = vector.load %arg3[%c0_5, %c0_6] : memref<1x128xf32, #tpu.memory_space<vmem>>, vector<1x128xf32>
    %7 = vector.broadcast %6 : vector<1x128xf32> to vector<224x128xf32>
    %8 = arith.addf %5, %7 : vector<224x128xf32>
    %cst_7 = arith.constant 0.000000e+00 : f32
    %9 = vector.broadcast %cst_7 : f32 to vector<224x128xf32>
    %10 = arith.maximumf %8, %9 : vector<224x128xf32>
    %11 = arith.truncf %10 : vector<224x128xf32> to vector<224x128xbf16>
    %c0_8 = arith.constant 0 : index
    %c0_9 = arith.constant 0 : index
    %12 = vector.load %arg4[%c0_8, %c0_9] : memref<224x128xbf16, #tpu.memory_space<vmem>>, vector<224x128xbf16>
    tpu.vector_store %arg4[%c0_8, %c0_9], %11 {strides = array<i32>} : memref<224x128xbf16, #tpu.memory_space<vmem>>, vector<224x128xbf16>,
    return
  }
  func.func @transform_0(%arg0: i32) -> (i32, i32, i32) {
    %c0_i32 = arith.constant 0 : i32
    %c0_i32_0 = arith.constant 0 : i32
    %c0_i32_1 = arith.constant 0 : i32
    return %c0_i32, %arg0, %c0_i32_0 : i32, i32, i32
  }
  func.func @transform_1(%arg0: i32) -> (i32, i32) {
    %c0_i32 = arith.constant 0 : i32
    %c0_i32_0 = arith.constant 0 : i32
    %c0_i32_1 = arith.constant 0 : i32
    return %c0_i32, %c0_i32_0 : i32, i32
  }
  func.func @transform_2(%arg0: i32) -> (i32, i32) {
    %c0_i32 = arith.constant 0 : i32
    %c0_i32_0 = arith.constant 0 : i32
    %c0_i32_1 = arith.constant 0 : i32
    return %c0_i32, %c0_i32_0 : i32, i32
  }
  func.func @transform_3(%arg0: i32) -> (i32, i32) {
    %c0_i32 = arith.constant 0 : i32
    %c0_i32_0 = arith.constant 0 : i32
    return %arg0, %c0_i32 : i32, i32
  }
}

module attributes {stable_mosaic.version = 11 : i64} {
  func.func @_conv_pool_relu_kernel(%arg0: i32, %arg1: memref<4x288x256xbf16, #tpu.memory_space<vmem>>, %arg2: memref<256x128xbf16, #tpu.memory_space<vmem>>, %arg3: memref<1x128xf32, #tpu.memory_space<vmem>>, %arg4: memref<288x128xbf16, #tpu.memory_space<vmem>>) attributes {dimension_semantics = [#tpu.dimension_semantics<parallel>], iteration_bounds = array<i64: 1>, scalar_prefetch = 0 : i64, scratch_operands = 0 : i64, tpu.core_type = #tpu.core_type<tc>, window_params = [{transform_indices = @transform_0, window_bounds = array<i64: 4, 288, 256>}, {pipeline_mode = #tpu.pipeline_mode<synchronous>, transform_indices = @transform_1, window_bounds = array<i64: 256, 128>}, {pipeline_mode = #tpu.pipeline_mode<synchronous>, transform_indices = @transform_2, window_bounds = array<i64: 1, 128>}, {transform_indices = @transform_3, window_bounds = array<i64: 288, 128>}]} {
    %c0 = arith.constant 0 : index
    %c0_0 = arith.constant 0 : index
    %c0_1 = arith.constant 0 : index
    %0 = vector.load %arg1[%c0, %c0_0, %c0_1] : memref<4x288x256xbf16, #tpu.memory_space<vmem>>, vector<4x288x256xbf16>
    %1 = vector.shape_cast %0 : vector<4x288x256xbf16> to vector<1152x256xbf16>
    %c0_2 = arith.constant 0 : index
    %c0_3 = arith.constant 0 : index
    %2 = vector.load %arg2[%c0_2, %c0_3] : memref<256x128xbf16, #tpu.memory_space<vmem>>, vector<256x128xbf16>
    %cst = arith.constant dense<0.000000e+00> : vector<1152x128xf32>
    %3 = tpu.matmul %1, %2, %cst {dimension_numbers = #tpu.dot_dimension_numbers<[1], [0], [0], [1], [0, 0, 1, 1], [], []>} : vector<1152x256xbf16>, vector<256x128xbf16>, vector<1152x128xf32> -> vector<1152x128xf32>
    %4 = vector.shape_cast %3 : vector<1152x128xf32> to vector<4x288x128xf32>
    %cst_4 = arith.constant dense<0xFF800000> : vector<288x128xf32>
    %5 = vector.multi_reduction <maximumf>, %4, %cst_4 [0] : vector<4x288x128xf32> to vector<288x128xf32>
    %c0_5 = arith.constant 0 : index
    %c0_6 = arith.constant 0 : index
    %6 = vector.load %arg3[%c0_5, %c0_6] : memref<1x128xf32, #tpu.memory_space<vmem>>, vector<1x128xf32>
    %7 = vector.broadcast %6 : vector<1x128xf32> to vector<288x128xf32>
    %8 = arith.addf %5, %7 : vector<288x128xf32>
    %cst_7 = arith.constant 0.000000e+00 : f32
    %9 = vector.broadcast %cst_7 : f32 to vector<288x128xf32>
    %10 = arith.maximumf %8, %9 : vector<288x128xf32>
    %11 = arith.truncf %10 : vector<288x128xf32> to vector<288x128xbf16>
    %c0_8 = arith.constant 0 : index
    %c0_9 = arith.constant 0 : index
    %12 = vector.load %arg4[%c0_8, %c0_9] : memref<288x128xbf16, #tpu.memory_space<vmem>>, vector<288x128xbf16>
    tpu.vector_store %arg4[%c0_8, %c0_9], %11 {strides = array<i32>} : memref<288x128xbf16, #tpu.memory_space<vmem>>, vector<288x128xbf16>,
    return
  }
  func.func @transform_0(%arg0: i32) -> (i32, i32, i32) {
    %c0_i32 = arith.constant 0 : i32
    %c0_i32_0 = arith.constant 0 : i32
    %c0_i32_1 = arith.constant 0 : i32
    return %c0_i32, %arg0, %c0_i32_0 : i32, i32, i32
  }
  func.func @transform_1(%arg0: i32) -> (i32, i32) {
    %c0_i32 = arith.constant 0 : i32
    %c0_i32_0 = arith.constant 0 : i32
    %c0_i32_1 = arith.constant 0 : i32
    return %c0_i32, %c0_i32_0 : i32, i32
  }
  func.func @transform_2(%arg0: i32) -> (i32, i32) {
    %c0_i32 = arith.constant 0 : i32
    %c0_i32_0 = arith.constant 0 : i32
    %c0_i32_1 = arith.constant 0 : i32
    return %c0_i32, %c0_i32_0 : i32, i32
  }
  func.func @transform_3(%arg0: i32) -> (i32, i32) {
    %c0_i32 = arith.constant 0 : i32
    %c0_i32_0 = arith.constant 0 : i32
    return %arg0, %c0_i32 : i32, i32
  }
}

module attributes {stable_mosaic.version = 11 : i64} {
  func.func @_conv_pool_relu_kernel(%arg0: i32, %arg1: memref<4x32x512xbf16, #tpu.memory_space<vmem>>, %arg2: memref<512x128xbf16, #tpu.memory_space<vmem>>, %arg3: memref<1x128xf32, #tpu.memory_space<vmem>>, %arg4: memref<32x128xbf16, #tpu.memory_space<vmem>>) attributes {dimension_semantics = [#tpu.dimension_semantics<parallel>], iteration_bounds = array<i64: 1>, scalar_prefetch = 0 : i64, scratch_operands = 0 : i64, tpu.core_type = #tpu.core_type<tc>, window_params = [{transform_indices = @transform_0, window_bounds = array<i64: 4, 32, 512>}, {pipeline_mode = #tpu.pipeline_mode<synchronous>, transform_indices = @transform_1, window_bounds = array<i64: 512, 128>}, {pipeline_mode = #tpu.pipeline_mode<synchronous>, transform_indices = @transform_2, window_bounds = array<i64: 1, 128>}, {transform_indices = @transform_3, window_bounds = array<i64: 32, 128>}]} {
    %c0 = arith.constant 0 : index
    %c0_0 = arith.constant 0 : index
    %c0_1 = arith.constant 0 : index
    %0 = vector.load %arg1[%c0, %c0_0, %c0_1] : memref<4x32x512xbf16, #tpu.memory_space<vmem>>, vector<4x32x512xbf16>
    %1 = vector.shape_cast %0 : vector<4x32x512xbf16> to vector<128x512xbf16>
    %c0_2 = arith.constant 0 : index
    %c0_3 = arith.constant 0 : index
    %2 = vector.load %arg2[%c0_2, %c0_3] : memref<512x128xbf16, #tpu.memory_space<vmem>>, vector<512x128xbf16>
    %cst = arith.constant dense<0.000000e+00> : vector<128x128xf32>
    %3 = tpu.matmul %1, %2, %cst {dimension_numbers = #tpu.dot_dimension_numbers<[1], [0], [0], [1], [0, 0, 1, 1], [], []>} : vector<128x512xbf16>, vector<512x128xbf16>, vector<128x128xf32> -> vector<128x128xf32>
    %4 = vector.shape_cast %3 : vector<128x128xf32> to vector<4x32x128xf32>
    %cst_4 = arith.constant dense<0xFF800000> : vector<32x128xf32>
    %5 = vector.multi_reduction <maximumf>, %4, %cst_4 [0] : vector<4x32x128xf32> to vector<32x128xf32>
    %c0_5 = arith.constant 0 : index
    %c0_6 = arith.constant 0 : index
    %6 = vector.load %arg3[%c0_5, %c0_6] : memref<1x128xf32, #tpu.memory_space<vmem>>, vector<1x128xf32>
    %7 = vector.broadcast %6 : vector<1x128xf32> to vector<32x128xf32>
    %8 = arith.addf %5, %7 : vector<32x128xf32>
    %cst_7 = arith.constant 0.000000e+00 : f32
    %9 = vector.broadcast %cst_7 : f32 to vector<32x128xf32>
    %10 = arith.maximumf %8, %9 : vector<32x128xf32>
    %11 = arith.truncf %10 : vector<32x128xf32> to vector<32x128xbf16>
    %c0_8 = arith.constant 0 : index
    %c0_9 = arith.constant 0 : index
    %12 = vector.load %arg4[%c0_8, %c0_9] : memref<32x128xbf16, #tpu.memory_space<vmem>>, vector<32x128xbf16>
    tpu.vector_store %arg4[%c0_8, %c0_9], %11 {strides = array<i32>} : memref<32x128xbf16, #tpu.memory_space<vmem>>, vector<32x128xbf16>,
    return
  }
  func.func @transform_0(%arg0: i32) -> (i32, i32, i32) {
    %c0_i32 = arith.constant 0 : i32
    %c0_i32_0 = arith.constant 0 : i32
    %c0_i32_1 = arith.constant 0 : i32
    return %c0_i32, %arg0, %c0_i32_0 : i32, i32, i32
  }
  func.func @transform_1(%arg0: i32) -> (i32, i32) {
    %c0_i32 = arith.constant 0 : i32
    %c0_i32_0 = arith.constant 0 : i32
    %c0_i32_1 = arith.constant 0 : i32
    return %c0_i32, %c0_i32_0 : i32, i32
  }
  func.func @transform_2(%arg0: i32) -> (i32, i32) {
    %c0_i32 = arith.constant 0 : i32
    %c0_i32_0 = arith.constant 0 : i32
    %c0_i32_1 = arith.constant 0 : i32
    return %c0_i32, %c0_i32_0 : i32, i32
  }
  func.func @transform_3(%arg0: i32) -> (i32, i32) {
    %c0_i32 = arith.constant 0 : i32
    %c0_i32_0 = arith.constant 0 : i32
    return %arg0, %c0_i32 : i32, i32
  }
}

module attributes {stable_mosaic.version = 11 : i64} {
  func.func @_mlp_kernel(%arg0: memref<8x384xf32, #tpu.memory_space<vmem>>, %arg1: memref<384x128xf32, #tpu.memory_space<vmem>>, %arg2: memref<1x128xf32, #tpu.memory_space<vmem>>, %arg3: memref<128x128xf32, #tpu.memory_space<vmem>>, %arg4: memref<1x128xf32, #tpu.memory_space<vmem>>, %arg5: memref<8x128xf32, #tpu.memory_space<vmem>>) attributes {dimension_semantics = [], scalar_prefetch = 0 : i64, scratch_operands = 0 : i64, tpu.core_type = #tpu.core_type<tc>} {
    %c0 = arith.constant 0 : index
    %c0_0 = arith.constant 0 : index
    %0 = vector.load %arg0[%c0, %c0_0] : memref<8x384xf32, #tpu.memory_space<vmem>>, vector<8x384xf32>
    %c0_1 = arith.constant 0 : index
    %c0_2 = arith.constant 0 : index
    %1 = vector.load %arg1[%c0_1, %c0_2] : memref<384x128xf32, #tpu.memory_space<vmem>>, vector<384x128xf32>
    %cst = arith.constant dense<0.000000e+00> : vector<8x128xf32>
    %2 = tpu.matmul %0, %1, %cst {dimension_numbers = #tpu.dot_dimension_numbers<[1], [0], [0], [1], [0, 0, 1, 1], [], []>} : vector<8x384xf32>, vector<384x128xf32>, vector<8x128xf32> -> vector<8x128xf32>
    %c0_3 = arith.constant 0 : index
    %c0_4 = arith.constant 0 : index
    %3 = vector.load %arg2[%c0_3, %c0_4] : memref<1x128xf32, #tpu.memory_space<vmem>>, vector<1x128xf32>
    %4 = vector.broadcast %3 : vector<1x128xf32> to vector<8x128xf32>
    %5 = arith.addf %2, %4 : vector<8x128xf32>
    %cst_5 = arith.constant 0.000000e+00 : f32
    %6 = vector.broadcast %cst_5 : f32 to vector<8x128xf32>
    %7 = arith.maximumf %5, %6 : vector<8x128xf32>
    %c0_6 = arith.constant 0 : index
    %c0_7 = arith.constant 0 : index
    %8 = vector.load %arg3[%c0_6, %c0_7] : memref<128x128xf32, #tpu.memory_space<vmem>>, vector<128x128xf32>
    %cst_8 = arith.constant dense<0.000000e+00> : vector<8x128xf32>
    %9 = tpu.matmul %7, %8, %cst_8 {dimension_numbers = #tpu.dot_dimension_numbers<[1], [0], [0], [1], [0, 0, 1, 1], [], []>} : vector<8x128xf32>, vector<128x128xf32>, vector<8x128xf32> -> vector<8x128xf32>
    %c0_9 = arith.constant 0 : index
    %c0_10 = arith.constant 0 : index
    %10 = vector.load %arg4[%c0_9, %c0_10] : memref<1x128xf32, #tpu.memory_space<vmem>>, vector<1x128xf32>
    %11 = vector.broadcast %10 : vector<1x128xf32> to vector<8x128xf32>
    %12 = arith.addf %9, %11 : vector<8x128xf32>
    %c0_11 = arith.constant 0 : index
    %c0_12 = arith.constant 0 : index
    %13 = vector.load %arg5[%c0_11, %c0_12] : memref<8x128xf32, #tpu.memory_space<vmem>>, vector<8x128xf32>
    tpu.vector_store %arg5[%c0_11, %c0_12], %12 {strides = array<i32>} : memref<8x128xf32, #tpu.memory_space<vmem>>, vector<8x128xf32>,
    return
  }
}

</mosaic_0001>

<bundles_post_ra>
// kernel: net_forward.4
= control target key start
LH: loop header
LB: loop body
LE: loop exit
PB: predicated region body
PF: predicated region fallthrough
CT: control target
= control target key end

     0   :  { %s2558_s12 = smov 0   ;;  %s2560_s13 = smov 0   ;;  %s3025_s0 = inlined_call_operand.vmem [shape: bf16[4,1568,128], index: 0, kind: input, shape index: {}]   ;;  %s3026_s1 = inlined_call_operand.vmem [shape: bf16[128,128], index: 1, kind: input, shape index: {}]   ;;  %s3027_s2 = inlined_call_operand.vmem [shape: f32[1,128], index: 2, kind: input, shape index: {}]   ;;  %s3028_s3 = inlined_call_operand.vmem [shape: bf16[1568,128], index: 3, kind: output, shape index: {}]  }
   0x1   :  { %s2562_s14 = smov 0  }
   0x2 LB: > { %s2002_s15 = sadd.s32 4294967295, %s2536_s14   ;;  %s2575_s16 = sadd.s32 1, %s2536_s14   ;;  %s2536_s14 = sphi %s2562_s14, %s3049_s14   ;;  %s2532_s13 = sphi %s2560_s13, %s3048_s13   ;;  %s2528_s12 = sphi %s2558_s12, %s3047_s12  }
   0x3   : > { %s17_s17 = ssub.s32 %s2536_s14, %s2575_s16  ;;  %s20_s18 = sadd.s32 1, %s2532_s13 }
   0x4   : > { %p18_p0 = scmp.eq.s32.totalorder %s17_s17, 0  ;;  %p27_p1 = scmp.ne.s32.totalorder %s2532_s13, %s2528_s12 }
   0x5   : > { %p28_p2 = scmp.eq.s32.totalorder %s2536_s14, 0  ;;  %p2005_p4 = scmp.ge.s32.totalorder %s2536_s14, 7 }
   0x6   : > { %s2584_s19 = scalar_select %p18_p0, %s2532_s13, %s20_s18  }
   0x7   : > { %p29_p3 = por %p28_p2, %p27_p1  ;;  %127 = sbr.rel (%p2005_p4) target bundleno = 47 (0x2f), region = 24 }
   0xe   : > { %130 = sbr.rel (!%p29_p3) target bundleno = 47 (0x2f), region = 28  ;;  %s132_s20 = sand.u32 (%p29_p3), 1, %s2532_s13  }
   0xf   : > { %s2104_s21 = smul.u32 (%p29_p3), 112, %s2536_s14 }
  0x10   : > { %s2424_s22 = smul.u32 (%p29_p3), 448, %s132_s20 }
  0x11   : > { %s2592_s25 = scalar_lea.vmem (%p29_p3), %s3025_s0, %s2104_s21 }
  0x12   : > { %v153_v0 = vld [vmem:[%s2592_s25] sm:$0xff] (%p29_p3)   ;;  %v157_v1 = vld [vmem:[%s2592_s25 + $0x8] sm:$0xff] (%p29_p3)   ;;  %v161_v2 = vld [vmem:[%s2592_s25 + $0x10] sm:$0xff] (%p29_p3)   ;;  %s2597_s26 = scalar_lea.vmem (%p29_p3), [#allocation2], %s2424_s22 }
  0x13   : > { %154 = vst [vmem:[%s2597_s26] sm:$0xff] (%p29_p3), %v153_v0   ;;  %158 = vst [vmem:[%s2597_s26 + $0x8] sm:$0xff] (%p29_p3), %v157_v1   ;;  %v165_v3 = vld [vmem:[%s2592_s25 + $0x18] sm:$0xff] (%p29_p3)   ;;  %v169_v4 = vld [vmem:[%s2592_s25 + $0x20] sm:$0xff] (%p29_p3)  }
  0x14   : > { %162 = vst [vmem:[%s2597_s26 + $0x10] sm:$0xff] (%p29_p3), %v161_v2   ;;  %v173_v5 = vld [vmem:[%s2592_s25 + $0x28] sm:$0xff] (%p29_p3)   ;;  %166 = vst [vmem:[%s2597_s26 + $0x18] sm:$0xff] (%p29_p3), %v165_v3   ;;  %v177_v6 = vld [vmem:[%s2592_s25 + $0x30] sm:$0xff] (%p29_p3)  }
  0x15   : > { %170 = vst [vmem:[%s2597_s26 + $0x20] sm:$0xff] %v169_v4   ;;  %174 = vst [vmem:[%s2597_s26 + $0x28] sm:$0xff] %v173_v5   ;;  %v181_v7 = vld [vmem:[%s2592_s25 + $0x38] sm:$0xff]   ;;  %v185_v8 = vld [vmem:[%s2592_s25 + $0x40] sm:$0xff]  }
  0x16   : > { %178 = vst [vmem:[%s2597_s26 + $0x30] sm:$0xff] %v177_v6   ;;  %182 = vst [vmem:[%s2597_s26 + $0x38] sm:$0xff] %v181_v7   ;;  %v189_v9 = vld [vmem:[%s2592_s25 + $0x48] sm:$0xff]   ;;  %v193_v10 = vld [vmem:[%s2592_s25 + $0x50] sm:$0xff]  }
  0x17   : > { %186 = vst [vmem:[%s2597_s26 + $0x40] sm:$0xff] %v185_v8   ;;  %v197_v11 = vld [vmem:[%s2592_s25 + $0x58] sm:$0xff]   ;;  %190 = vst [vmem:[%s2597_s26 + $0x48] sm:$0xff] %v189_v9   ;;  %v201_v12 = vld [vmem:[%s2592_s25 + $0x60] sm:$0xff]  }
  0x18   : > { %194 = vst [vmem:[%s2597_s26 + $0x50] sm:$0xff] %v193_v10   ;;  %198 = vst [vmem:[%s2597_s26 + $0x58] sm:$0xff] %v197_v11   ;;  %v205_v13 = vld [vmem:[%s2592_s25 + $0x68] sm:$0xff]   ;;  %v209_v14 = vld [vmem:[%s2592_s25 + $0x310] sm:$0xff]  }
  0x19   : > { %202 = vst [vmem:[%s2597_s26 + $0x60] sm:$0xff] %v201_v12   ;;  %206 = vst [vmem:[%s2597_s26 + $0x68] sm:$0xff] %v205_v13   ;;  %v213_v15 = vld [vmem:[%s2592_s25 + $0x318] sm:$0xff]   ;;  %v217_v16 = vld [vmem:[%s2592_s25 + $0x320] sm:$0xff]  }
  0x1a   : > { %210 = vst [vmem:[%s2597_s26 + $0x70] sm:$0xff] %v209_v14   ;;  %v221_v17 = vld [vmem:[%s2592_s25 + $0x328] sm:$0xff]   ;;  %214 = vst [vmem:[%s2597_s26 + $0x78] sm:$0xff] %v213_v15   ;;  %v225_v18 = vld [vmem:[%s2592_s25 + $0x330] sm:$0xff]  }
  0x1b   : > { %218 = vst [vmem:[%s2597_s26 + $0x80] sm:$0xff] %v217_v16   ;;  %222 = vst [vmem:[%s2597_s26 + $0x88] sm:$0xff] %v221_v17   ;;  %v229_v19 = vld [vmem:[%s2592_s25 + $0x338] sm:$0xff]   ;;  %v233_v20 = vld [vmem:[%s2592_s25 + $0x340] sm:$0xff]  }
  0x1c   : > { %226 = vst [vmem:[%s2597_s26 + $0x90] sm:$0xff] %v225_v18   ;;  %230 = vst [vmem:[%s2597_s26 + $0x98] sm:$0xff] %v229_v19   ;;  %v237_v21 = vld [vmem:[%s2592_s25 + $0x348] sm:$0xff]   ;;  %v241_v22 = vld [vmem:[%s2592_s25 + $0x350] sm:$0xff]  }
  0x1d   : > { %234 = vst [vmem:[%s2597_s26 + $0xa0] sm:$0xff] %v233_v20   ;;  %v245_v23 = vld [vmem:[%s2592_s25 + $0x358] sm:$0xff]   ;;  %238 = vst [vmem:[%s2597_s26 + $0xa8] sm:$0xff] %v237_v21   ;;  %v249_v24 = vld [vmem:[%s2592_s25 + $0x360] sm:$0xff]  }
  0x1e   : > { %242 = vst [vmem:[%s2597_s26 + $0xb0] sm:$0xff] %v241_v22   ;;  %246 = vst [vmem:[%s2597_s26 + $0xb8] sm:$0xff] %v245_v23   ;;  %v253_v25 = vld [vmem:[%s2592_s25 + $0x368] sm:$0xff]   ;;  %v257_v26 = vld [vmem:[%s2592_s25 + $0x370] sm:$0xff]  }
  0x1f   : > { %250 = vst [vmem:[%s2597_s26 + $0xc0] sm:$0xff] %v249_v24   ;;  %254 = vst [vmem:[%s2597_s26 + $0xc8] sm:$0xff] %v253_v25   ;;  %v261_v27 = vld [vmem:[%s2592_s25 + $0x378] sm:$0xff]   ;;  %v265_v28 = vld [vmem:[%s2592_s25 + $0x620] sm:$0xff]  }
  0x20   : > { %258 = vst [vmem:[%s2597_s26 + $0xd0] sm:$0xff] %v257_v26   ;;  %v269_v29 = vld [vmem:[%s2592_s25 + $0x628] sm:$0xff]   ;;  %262 = vst [vmem:[%s2597_s26 + $0xd8] sm:$0xff] %v261_v27   ;;  %v273_v30 = vld [vmem:[%s2592_s25 + $0x630] sm:$0xff]  }
  0x21   : > { %266 = vst [vmem:[%s2597_s26 + $0xe0] sm:$0xff] %v265_v28   ;;  %270 = vst [vmem:[%s2597_s26 + $0xe8] sm:$0xff] %v269_v29   ;;  %v277_v31 = vld [vmem:[%s2592_s25 + $0x638] sm:$0xff]   ;;  %v281_v32 = vld [vmem:[%s2592_s25 + $0x640] sm:$0xff]  }
  0x22   : > { %274 = vst [vmem:[%s2597_s26 + $0xf0] sm:$0xff] %v273_v30   ;;  %278 = vst [vmem:[%s2597_s26 + $0xf8] sm:$0xff] %v277_v31   ;;  %v285_v33 = vld [vmem:[%s2592_s25 + $0x648] sm:$0xff]   ;;  %v289_v34 = vld [vmem:[%s2592_s25 + $0x650] sm:$0xff]  }
  0x23   : > { %282 = vst [vmem:[%s2597_s26 + $0x100] sm:$0xff] %v281_v32   ;;  %v293_v35 = vld [vmem:[%s2592_s25 + $0x658] sm:$0xff]   ;;  %286 = vst [vmem:[%s2597_s26 + $0x108] sm:$0xff] %v285_v33   ;;  %v297_v36 = vld [vmem:[%s2592_s25 + $0x660] sm:$0xff]  }
  0x24   : > { %290 = vst [vmem:[%s2597_s26 + $0x110] sm:$0xff] %v289_v34   ;;  %294 = vst [vmem:[%s2597_s26 + $0x118] sm:$0xff] %v293_v35   ;;  %v301_v37 = vld [vmem:[%s2592_s25 + $0x668] sm:$0xff]   ;;  %v305_v38 = vld [vmem:[%s2592_s25 + $0x670] sm:$0xff]  }
  0x25   : > { %298 = vst [vmem:[%s2597_s26 + $0x120] sm:$0xff] %v297_v36   ;;  %302 = vst [vmem:[%s2597_s26 + $0x128] sm:$0xff] %v301_v37   ;;  %v309_v39 = vld [vmem:[%s2592_s25 + $0x678] sm:$0xff]   ;;  %v313_v40 = vld [vmem:[%s2592_s25 + $0x680] sm:$0xff]  }
  0x26   : > { %306 = vst [vmem:[%s2597_s26 + $0x130] sm:$0xff] %v305_v38   ;;  %v317_v41 = vld [vmem:[%s2592_s25 + $0x688] sm:$0xff]   ;;  %310 = vst [vmem:[%s2597_s26 + $0x138] sm:$0xff] %v309_v39   ;;  %v321_v42 = vld [vmem:[%s2592_s25 + $0x930] sm:$0xff]  }
  0x27   : > { %314 = vst [vmem:[%s2597_s26 + $0x140] sm:$0xff] %v313_v40   ;;  %318 = vst [vmem:[%s2597_s26 + $0x148] sm:$0xff] %v317_v41   ;;  %v325_v43 = vld [vmem:[%s2592_s25 + $0x938] sm:$0xff]   ;;  %v329_v44 = vld [vmem:[%s2592_s25 + $0x940] sm:$0xff]  }
  0x28   : > { %322 = vst [vmem:[%s2597_s26 + $0x150] sm:$0xff] %v321_v42   ;;  %326 = vst [vmem:[%s2597_s26 + $0x158] sm:$0xff] %v325_v43   ;;  %v333_v45 = vld [vmem:[%s2592_s25 + $0x948] sm:$0xff]   ;;  %v337_v46 = vld [vmem:[%s2592_s25 + $0x950] sm:$0xff]  }
  0x29   : > { %330 = vst [vmem:[%s2597_s26 + $0x160] sm:$0xff] %v329_v44   ;;  %v341_v47 = vld [vmem:[%s2592_s25 + $0x958] sm:$0xff]   ;;  %334 = vst [vmem:[%s2597_s26 + $0x168] sm:$0xff] %v333_v45   ;;  %v345_v48 = vld [vmem:[%s2592_s25 + $0x960] sm:$0xff]  }
  0x2a   : > { %338 = vst [vmem:[%s2597_s26 + $0x170] sm:$0xff] %v337_v46   ;;  %342 = vst [vmem:[%s2597_s26 + $0x178] sm:$0xff] %v341_v47   ;;  %v349_v49 = vld [vmem:[%s2592_s25 + $0x968] sm:$0xff]   ;;  %v353_v50 = vld [vmem:[%s2592_s25 + $0x970] sm:$0xff]  }
  0x2b   : > { %346 = vst [vmem:[%s2597_s26 + $0x180] sm:$0xff] %v345_v48   ;;  %350 = vst [vmem:[%s2597_s26 + $0x188] sm:$0xff] %v349_v49   ;;  %v357_v51 = vld [vmem:[%s2592_s25 + $0x978] sm:$0xff]   ;;  %v361_v52 = vld [vmem:[%s2592_s25 + $0x980] sm:$0xff]  }
  0x2c   : > { %354 = vst [vmem:[%s2597_s26 + $0x190] sm:$0xff] %v353_v50   ;;  %v365_v53 = vld [vmem:[%s2592_s25 + $0x988] sm:$0xff]   ;;  %358 = vst [vmem:[%s2597_s26 + $0x198] sm:$0xff] %v357_v51   ;;  %v369_v54 = vld [vmem:[%s2592_s25 + $0x990] sm:$0xff]  }
  0x2d   : > { %362 = vst [vmem:[%s2597_s26 + $0x1a0] sm:$0xff] %v361_v52   ;;  %366 = vst [vmem:[%s2597_s26 + $0x1a8] sm:$0xff] %v365_v53   ;;  %v373_v55 = vld [vmem:[%s2592_s25 + $0x998] sm:$0xff]  }
  0x2e   : > { %370 = vst [vmem:[%s2597_s26 + $0x1b0] sm:$0xff] %v369_v54   ;;  %374 = vst [vmem:[%s2597_s26 + $0x1b8] sm:$0xff] %v373_v55  }
  0x2f PF: > { %p2007_p5 = scmp.ge.s32.totalorder %s2536_s14, 1  ;;  %p622_p6 = scmp.lt.s32.totalorder %s2536_s14, 8 }
  0x31   : > { %p623_p7 = pnand %p2007_p5, %p622_p6 }
  0x33   : > { %626 = sbr.rel (%p623_p7) target bundleno = 423 (0x1a7), region = 69 }
  0x3a   : > { %v2450_v56 = vld [vmem:[%s3026_s1] sm:$0xff]   ;;  %s629_s29 = sand.u32 1, %s2528_s12   ;;  %v2451_v57 = vld [vmem:[%s3026_s1 + $0x8] sm:$0xff]   ;;  %v2452_v58 = vld [vmem:[%s3026_s1 + $0x10] sm:$0xff]   ;;  %s653_s24 = smul.u32 28, %s2002_s15 }
  0x3b   : > { %s2425_s5 = smul.u32 448, %s629_s29  ;;  %2280 = vmatprep.subr.bf16.mxu0 %v2450_v56  ;;  %2408 = vmatprep.subr.bf16.mxu1 %v2450_v56  ;;  %v2453_v59 = vld [vmem:[%s3026_s1 + $0x18] sm:$0xff]   ;;  %v2454_v62 = vld [vmem:[%s3026_s1 + $0x20] sm:$0xff]   ;;  %v2455_v63 = vld [vmem:[%s3026_s1 + $0x28] sm:$0xff]  }
  0x3c   : > { %2281 = vmatpush3.bf16.msra.mxu0 %v2450_v56  ;;  %2416 = vmatpush3.bf16.msra.mxu1 %v2450_v56  ;;  %v2456_v0 = vld [vmem:[%s3026_s1 + $0x30] sm:$0xff]   ;;  %v2457_v1 = vld [vmem:[%s3026_s1 + $0x38] sm:$0xff]   ;;  %p654_p8 = scmp.lt.s32.totalorder %s653_s24, 195 }
  0x3d   : > { %2282 = vmatprep.subr.bf16.mxu0 %v2451_v57  ;;  %2409 = vmatprep.subr.bf16.mxu1 %v2451_v57  ;;  %s2723_s10 = scalar_lea.vmem [#allocation2], %s2425_s5 }
  0x3e   : > { %v2458_v60 = vld [vmem:[%s2723_s10] sm:$0xff]   ;;  %v2459_v2 = vld [vmem:[%s2723_s10 + $0x8] sm:$0xff]   ;;  %v2462_v4 = vld [vmem:[%s2723_s10 + $0x10] sm:$0xff]   ;;  %s3051_s24 = smov (!%p654_p8, %s653_s24), 195 }
  0x3f   : > { %2296 = vmatprep.mubr.bf16.mxu0 %v2458_v60  ;;  %v2460_v61 = vld [vmem:[%s2723_s10 + $0xe0] sm:$0xff]   ;;  %v2461_v3 = vld [vmem:[%s2723_s10 + $0xe8] sm:$0xff]   ;;  %v2464_v5 = vld [vmem:[%s2723_s10 + $0xf0] sm:$0xff]   ;;  %s2008_s15 = sshll.u32 %s3051_s24, 2 }
  0x40   : > { %2283 = vmatpush3.bf16.msra.mxu0 %v2451_v57  ;;  %2417 = vmatpush3.bf16.msra.mxu1 %v2451_v57  ;;  %v2463_v6 = vld [vmem:[%s2723_s10 + $0x18] sm:$0xff]   ;;  %v2466_v8 = vld [vmem:[%s2723_s10 + $0x20] sm:$0xff]   ;;  %v2467_v10 = vld [vmem:[%s2723_s10 + $0x28] sm:$0xff]   ;;  %s2931_s28 = scalar_lea.vmem %s3028_s3, %s2008_s15 }
  0x41   : > { %2284 = vmatprep.subr.bf16.mxu0 %v2452_v58  ;;  %2410 = vmatprep.subr.bf16.mxu1 %v2452_v58  ;;  %v2465_v7 = vld [vmem:[%s2723_s10 + $0xf8] sm:$0xff]   ;;  %v2468_v9 = vld [vmem:[%s2723_s10 + $0x100] sm:$0xff]   ;;  %v2469_v11 = vld [vmem:[%s2723_s10 + $0x108] sm:$0xff]  }
  0x42   : > { %2352 = vmatprep.mubr.bf16.mxu1 %v2460_v61  ;;  %v2470_v12 = vld [vmem:[%s2723_s10 + $0x30] sm:$0xff]   ;;  %v2471_v14 = vld [vmem:[%s2723_s10 + $0x38] sm:$0xff]   ;;  %v2474_v16 = vld [vmem:[%s2723_s10 + $0x40] sm:$0xff]  }
  0x43   : > { %v2472_v13 = vld [vmem:[%s2723_s10 + $0x110] sm:$0xff]   ;;  %v2473_v15 = vld [vmem:[%s2723_s10 + $0x118] sm:$0xff]   ;;  %v2476_v17 = vld [vmem:[%s2723_s10 + $0x120] sm:$0xff]  }
  0x44   : > { %2285 = vmatpush3.bf16.msra.mxu0 %v2452_v58  ;;  %2418 = vmatpush3.bf16.msra.mxu1 %v2452_v58  ;;  %v2475_v18 = vld [vmem:[%s2723_s10 + $0x48] sm:$0xff]   ;;  %v2478_v20 = vld [vmem:[%s2723_s10 + $0x50] sm:$0xff]   ;;  %v2479_v22 = vld [vmem:[%s2723_s10 + $0x58] sm:$0xff]  }
  0x45   : > { %2286 = vmatprep.subr.bf16.mxu0 %v2453_v59  ;;  %2411 = vmatprep.subr.bf16.mxu1 %v2453_v59  ;;  %v2477_v19 = vld [vmem:[%s2723_s10 + $0x128] sm:$0xff]   ;;  %v2480_v21 = vld [vmem:[%s2723_s10 + $0x130] sm:$0xff]   ;;  %v2481_v23 = vld [vmem:[%s2723_s10 + $0x138] sm:$0xff]  }
  0x46   : > { %v2482_v24 = vld [vmem:[%s2723_s10 + $0x60] sm:$0xff]   ;;  %v2483_v26 = vld [vmem:[%s2723_s10 + $0x68] sm:$0xff]   ;;  %v2486_v28 = vld [vmem:[%s2723_s10 + $0x70] sm:$0xff]  }
  0x47   : > { %v2484_v25 = vld [vmem:[%s2723_s10 + $0x140] sm:$0xff]   ;;  %v2485_v27 = vld [vmem:[%s2723_s10 + $0x148] sm:$0xff]   ;;  %v2488_v29 = vld [vmem:[%s2723_s10 + $0x150] sm:$0xff]  }
  0x48   : > { %2287 = vmatpush3.bf16.msra.mxu0 %v2453_v59  ;;  %2419 = vmatpush3.bf16.msra.mxu1 %v2453_v59  ;;  %v2487_v30 = vld [vmem:[%s2723_s10 + $0x78] sm:$0xff]   ;;  %v2490_v32 = vld [vmem:[%s2723_s10 + $0x80] sm:$0xff]   ;;  %v2491_v34 = vld [vmem:[%s2723_s10 + $0x88] sm:$0xff]  }
  0x49   : > { %2288 = vmatprep.subr.bf16.mxu0 %v2454_v62  ;;  %2412 = vmatprep.subr.bf16.mxu1 %v2454_v62  ;;  %v2489_v31 = vld [vmem:[%s2723_s10 + $0x158] sm:$0xff]   ;;  %v2492_v33 = vld [vmem:[%s2723_s10 + $0x160] sm:$0xff]   ;;  %v2493_v35 = vld [vmem:[%s2723_s10 + $0x168] sm:$0xff]  }
  0x4a   : > { %v2494_v36 = vld [vmem:[%s2723_s10 + $0x90] sm:$0xff]   ;;  %v2495_v38 = vld [vmem:[%s2723_s10 + $0x98] sm:$0xff]   ;;  %v2498_v40 = vld [vmem:[%s2723_s10 + $0xa0] sm:$0xff]  }
  0x4b   : > { %v2496_v37 = vld [vmem:[%s2723_s10 + $0x170] sm:$0xff]   ;;  %v2497_v39 = vld [vmem:[%s2723_s10 + $0x178] sm:$0xff]   ;;  %v2500_v41 = vld [vmem:[%s2723_s10 + $0x180] sm:$0xff]  }
  0x4c   : > { %2289 = vmatpush3.bf16.msra.mxu0 %v2454_v62  ;;  %2420 = vmatpush3.bf16.msra.mxu1 %v2454_v62  ;;  %v2499_v42 = vld [vmem:[%s2723_s10 + $0xa8] sm:$0xff]   ;;  %v2502_v44 = vld [vmem:[%s2723_s10 + $0xb0] sm:$0xff]   ;;  %v2503_v46 = vld [vmem:[%s2723_s10 + $0xb8] sm:$0xff]  }
  0x4d   : > { %2290 = vmatprep.subr.bf16.mxu0 %v2455_v63  ;;  %2413 = vmatprep.subr.bf16.mxu1 %v2455_v63  ;;  %v2501_v43 = vld [vmem:[%s2723_s10 + $0x188] sm:$0xff]   ;;  %v2504_v45 = vld [vmem:[%s2723_s10 + $0x190] sm:$0xff]   ;;  %v2505_v47 = vld [vmem:[%s2723_s10 + $0x198] sm:$0xff]  }
  0x4e   : > { %v2506_v48 = vld [vmem:[%s2723_s10 + $0xc0] sm:$0xff]   ;;  %v2507_v50 = vld [vmem:[%s2723_s10 + $0xc8] sm:$0xff]   ;;  %v2510_v52 = vld [vmem:[%s2723_s10 + $0xd0] sm:$0xff]  }
  0x4f   : > { %v2508_v49 = vld [vmem:[%s2723_s10 + $0x1a0] sm:$0xff]   ;;  %v2509_v51 = vld [vmem:[%s2723_s10 + $0x1a8] sm:$0xff]   ;;  %v2512_v53 = vld [vmem:[%s2723_s10 + $0x1b0] sm:$0xff]  }
  0x50   : > { %2291 = vmatpush3.bf16.msra.mxu0 %v2455_v63  ;;  %2421 = vmatpush3.bf16.msra.mxu1 %v2455_v63  ;;  %v2511_v54 = vld [vmem:[%s2723_s10 + $0xd8] sm:$0xff]  }
  0x51   : > { %2292 = vmatprep.subr.bf16.mxu0 %v2456_v0  ;;  %2414 = vmatprep.subr.bf16.mxu1 %v2456_v0  ;;  %v2513_v55 = vld [vmem:[%s2723_s10 + $0x1b8] sm:$0xff]  }
  0x54   : > { %2293 = vmatpush3.bf16.msra.mxu0 %v2456_v0  ;;  %2422 = vmatpush3.bf16.msra.mxu1 %v2456_v0 }
  0x55   : > { %2294 = vmatprep.subr.bf16.mxu0 %v2457_v1  ;;  %2415 = vmatprep.subr.bf16.mxu1 %v2457_v1 }
  0x58   : > { %2295 = vmatpush3.bf16.msra.mxu0 %v2457_v1  ;;  %2423 = vmatpush3.bf16.msra.mxu1 %v2457_v1 }
  0x5b   : > { %2297 = vmatmul.mubr.bf16.vlgmr.msra.gmra.mrb[0].mxu0 %v2459_v2  ;;  %2353 = vmatmul.mubr.bf16.vlgmr.msra.gmra.mrb[0].mxu1 %v2461_v3 }
  0x5c   : > { %2300 = vmatprep.mubr.bf16.mxu0 %v2462_v4  ;;  %2356 = vmatprep.mubr.bf16.mxu1 %v2464_v5 }
  0x63   : > { %2301 = vmatmul.mubr.bf16.gmra.mrb[4].mxu0 %v2463_v6  ;;  %2357 = vmatmul.mubr.bf16.gmra.mrb[4].mxu1 %v2465_v7 }
  0x64   : > { %2304 = vmatprep.mubr.bf16.mxu0 %v2466_v8  ;;  %2360 = vmatprep.mubr.bf16.mxu1 %v2468_v9 }
  0x6b   : > { %2305 = vmatmul.mubr.bf16.gmra.mrb[8].mxu0 %v2467_v10  ;;  %2361 = vmatmul.mubr.bf16.gmra.mrb[8].mxu1 %v2469_v11 }
  0x6c   : > { %2308 = vmatprep.mubr.bf16.mxu0 %v2470_v12  ;;  %2364 = vmatprep.mubr.bf16.mxu1 %v2472_v13 }
  0x73   : > { %2309 = vmatmul.mubr.bf16.gmra.mrb[12].mxu0 %v2471_v14  ;;  %2365 = vmatmul.mubr.bf16.gmra.mrb[12].mxu1 %v2473_v15 }
  0x74   : > { %2312 = vmatprep.mubr.bf16.mxu0 %v2474_v16  ;;  %2368 = vmatprep.mubr.bf16.mxu1 %v2476_v17 }
  0x7b   : > { %2313 = vmatmul.mubr.bf16.gmra.mrb[16].mxu0 %v2475_v18  ;;  %2369 = vmatmul.mubr.bf16.gmra.mrb[16].mxu1 %v2477_v19 }
  0x7c   : > { %2316 = vmatprep.mubr.bf16.mxu0 %v2478_v20  ;;  %2372 = vmatprep.mubr.bf16.mxu1 %v2480_v21 }
  0x83   : > { %2317 = vmatmul.mubr.bf16.gmra.mrb[20].mxu0 %v2479_v22  ;;  %2373 = vmatmul.mubr.bf16.gmra.mrb[20].mxu1 %v2481_v23 }
  0x84   : > { %2320 = vmatprep.mubr.bf16.mxu0 %v2482_v24  ;;  %2376 = vmatprep.mubr.bf16.mxu1 %v2484_v25 }
  0x8b   : > { %2321 = vmatmul.mubr.bf16.gmra.mrb[24].mxu0 %v2483_v26  ;;  %2377 = vmatmul.mubr.bf16.gmra.mrb[24].mxu1 %v2485_v27 }
  0x8c   : > { %2324 = vmatprep.mubr.bf16.mxu0 %v2486_v28  ;;  %2380 = vmatprep.mubr.bf16.mxu1 %v2488_v29 }
  0x93   : > { %2325 = vmatmul.mubr.bf16.gmra.mrb[28].mxu0 %v2487_v30  ;;  %2381 = vmatmul.mubr.bf16.gmra.mrb[28].mxu1 %v2489_v31 }
  0x94   : > { %2328 = vmatprep.mubr.bf16.mxu0 %v2490_v32  ;;  %2384 = vmatprep.mubr.bf16.mxu1 %v2492_v33 }
  0x9b   : > { %2329 = vmatmul.mubr.bf16.gmra.mrb[32].mxu0 %v2491_v34  ;;  %2385 = vmatmul.mubr.bf16.gmra.mrb[32].mxu1 %v2493_v35 }
  0x9c   : > { %2332 = vmatprep.mubr.bf16.mxu0 %v2494_v36  ;;  %2388 = vmatprep.mubr.bf16.mxu1 %v2496_v37 }
  0xa3   : > { %2333 = vmatmul.mubr.bf16.gmra.mrb[36].mxu0 %v2495_v38  ;;  %2389 = vmatmul.mubr.bf16.gmra.mrb[36].mxu1 %v2497_v39 }
  0xa4   : > { %2336 = vmatprep.mubr.bf16.mxu0 %v2498_v40  ;;  %2392 = vmatprep.mubr.bf16.mxu1 %v2500_v41 }
  0xab   : > { %2337 = vmatmul.mubr.bf16.gmra.mrb[40].mxu0 %v2499_v42  ;;  %2393 = vmatmul.mubr.bf16.gmra.mrb[40].mxu1 %v2501_v43 }
  0xac   : > { %2340 = vmatprep.mubr.bf16.mxu0 %v2502_v44  ;;  %2396 = vmatprep.mubr.bf16.mxu1 %v2504_v45 }
  0xb3   : > { %2341 = vmatmul.mubr.bf16.gmra.mrb[44].mxu0 %v2503_v46  ;;  %2397 = vmatmul.mubr.bf16.gmra.mrb[44].mxu1 %v2505_v47 }
  0xb4   : > { %2344 = vmatprep.mubr.bf16.mxu0 %v2506_v48  ;;  %2400 = vmatprep.mubr.bf16.mxu1 %v2508_v49 }
  0xbb   : > { %2345 = vmatmul.mubr.bf16.gmra.mrb[48].mxu0 %v2507_v50  ;;  %2401 = vmatmul.mubr.bf16.gmra.mrb[48].mxu1 %v2509_v51 }
  0xbc   : > { %2348 = vmatprep.mubr.bf16.mxu0 %v2510_v52  ;;  %2404 = vmatprep.mubr.bf16.mxu1 %v2512_v53 }
  0xc3   : > { %2349 = vmatmul.mubr.bf16.gmra.mrb[52].mxu0 %v2511_v54  ;;  %2405 = vmatmul.mubr.bf16.gmra.mrb[52].mxu1 %v2513_v55 }
 0x12e   : > { %v2793_v56 = vpop.f32.mrb[0].mxu0  ;;  %v2795_v57 = vpop.f32.mrb[0].mxu1 }
 0x12f   : > { %v2797_v58 = vpop.f32.mrb[1].mxu0  ;;  %v2799_v59 = vpop.f32.mrb[1].mxu1 }
 0x130   : > { %v2801_v60 = vpop.f32.mrb[2].mxu0  ;;  %v2803_v61 = vpop.f32.mrb[2].mxu1 }
 0x131   : > { %v2805_v62 = vpop.f32.mrb[3].mxu0  ;;  %v2807_v63 = vpop.f32.mrb[3].mxu1 }
 0x136   : > { %v2809_v0 = vpop.f32.mrb[4].mxu0  ;;  %v2811_v1 = vpop.f32.mrb[4].mxu1 }
 0x137   : > { %v2813_v2 = vpop.f32.mrb[5].mxu0  ;;  %v2815_v3 = vpop.f32.mrb[5].mxu1 }
 0x138   : > { %v2817_v4 = vpop.f32.mrb[6].mxu0  ;;  %v2819_v5 = vpop.f32.mrb[6].mxu1 }
 0x139   : > { %v2821_v6 = vpop.f32.mrb[7].mxu0  ;;  %v2823_v7 = vpop.f32.mrb[7].mxu1 }
 0x13e   : > { %v2825_v8 = vpop.f32.mrb[8].mxu0  ;;  %v2827_v9 = vpop.f32.mrb[8].mxu1 }
 0x13f   : > { %v2829_v10 = vpop.f32.mrb[9].mxu0  ;;  %v2831_v11 = vpop.f32.mrb[9].mxu1 }
 0x140   : > { %v2833_v12 = vpop.f32.mrb[10].mxu0  ;;  %v2835_v13 = vpop.f32.mrb[10].mxu1 }
 0x141   : > { %v2837_v14 = vpop.f32.mrb[11].mxu0  ;;  %v2839_v15 = vpop.f32.mrb[11].mxu1 }
 0x146   : > { %v2841_v16 = vpop.f32.mrb[12].mxu0  ;;  %v2843_v17 = vpop.f32.mrb[12].mxu1 }
 0x147   : > { %v2845_v18 = vpop.f32.mrb[13].mxu0  ;;  %v2847_v19 = vpop.f32.mrb[13].mxu1 }
 0x148   : > { %v2849_v20 = vpop.f32.mrb[14].mxu0  ;;  %v2851_v21 = vpop.f32.mrb[14].mxu1 }
 0x149   : > { %v2853_v22 = vpop.f32.mrb[15].mxu0  ;;  %v2855_v23 = vpop.f32.mrb[15].mxu1 }
 0x14e   : > { %v2857_v24 = vpop.f32.mrb[16].mxu0  ;;  %v2859_v25 = vpop.f32.mrb[16].mxu1 }
 0x14f   : > { %v2861_v26 = vpop.f32.mrb[17].mxu0  ;;  %v2863_v27 = vpop.f32.mrb[17].mxu1 }
 0x150   : > { %v2865_v28 = vpop.f32.mrb[18].mxu0  ;;  %v2867_v29 = vpop.f32.mrb[18].mxu1 }
 0x151   : > { %v2869_v30 = vpop.f32.mrb[19].mxu0  ;;  %v2871_v31 = vpop.f32.mrb[19].mxu1 }
 0x156   : > { %v2873_v32 = vpop.f32.mrb[20].mxu0  ;;  %v2875_v33 = vpop.f32.mrb[20].mxu1 }
 0x157   : > { %v2877_v34 = vpop.f32.mrb[21].mxu0  ;;  %v2879_v35 = vpop.f32.mrb[21].mxu1 }
 0x158   : > { %v2881_v36 = vpop.f32.mrb[22].mxu0  ;;  %v2883_v37 = vpop.f32.mrb[22].mxu1 }
 0x159   : > { %v2885_v38 = vpop.f32.mrb[23].mxu0  ;;  %v2887_v39 = vpop.f32.mrb[23].mxu1 }
 0x15a   : > { %3029 = vst [vmem:[#allocation3_spill] sm:$0xff] %v2887_v39 }
 0x15e   : > { %v2889_v40 = vpop.f32.mrb[24].mxu0  ;;  %v2891_v41 = vpop.f32.mrb[24].mxu1 }
 0x15f   : > { %3030 = vst [vmem:[#allocation4_spill] sm:$0xff] %v2889_v40  ;;  %3031 = vst [vmem:[#allocation5_spill] sm:$0xff] %v2891_v41  ;;  %v2893_v42 = vpop.f32.mrb[25].mxu0  ;;  %v2895_v43 = vpop.f32.mrb[25].mxu1 }
 0x160   : > { %3032 = vst [vmem:[#allocation6_spill] sm:$0xff] %v2893_v42  ;;  %3033 = vst [vmem:[#allocation7_spill] sm:$0xff] %v2895_v43  ;;  %v2897_v44 = vpop.f32.mrb[26].mxu0  ;;  %v2899_v45 = vpop.f32.mrb[26].mxu1 }
 0x161   : > { %3034 = vst [vmem:[#allocation8_spill] sm:$0xff] %v2897_v44  ;;  %3035 = vst [vmem:[#allocation9_spill] sm:$0xff] %v2899_v45  ;;  %v2901_v46 = vpop.f32.mrb[27].mxu0  ;;  %v2903_v47 = vpop.f32.mrb[27].mxu1 }
 0x162   : > { %3036 = vst [vmem:[#allocation10_spill] sm:$0xff] %v2901_v46  ;;  %3037 = vst [vmem:[#allocation11_spill] sm:$0xff] %v2903_v47  ;;  %v2914_v47 = vld [vmem:[%s3027_s2] ss:$0 sm:$0xff] }
 0x166   : > { %v2326_v48 = vpop.f32.mrb[28].mxu0  ;;  %v2382_v49 = vpop.f32.mrb[28].mxu1 }
 0x167   : > { %v1659_v50 = vmax.f32 %v2793_v56, %v2326_v48  ;;  %v1318_v51 = vpop.f32.mrb[29].mxu0  ;;  %v1542_v52 = vpop.f32.mrb[29].mxu1 }
 0x168   : > { %v1653_v53 = vmax.f32 %v2797_v58, %v1318_v51  ;;  %v2327_v54 = vpop.f32.mrb[30].mxu0  ;;  %v2383_v55 = vpop.f32.mrb[30].mxu1 }
 0x169   : > { %v1660_v43 = vmax.f32 %v1659_v50, %v2795_v57  ;;  %v1662_v45 = vmax.f32 %v2801_v60, %v2327_v54  ;;  %v1321_v46 = vpop.f32.mrb[31].mxu0  ;;  %v1545_v44 = vpop.f32.mrb[31].mxu1 }
 0x16a   : > { %v1654_v56 = vmax.f32 %v1653_v53, %v2799_v59  ;;  %v1656_v48 = vmax.f32 %v2805_v62, %v1321_v46 }
 0x16b   : > { %v1661_v41 = vmax.f32 %v1660_v43, %v2382_v49  ;;  %v1663_v58 = vmax.f32 %v1662_v45, %v2803_v61 }
 0x16c   : > { %v1655_v51 = vmax.f32 %v1654_v56, %v1542_v52  ;;  %v1657_v57 = vmax.f32 %v1656_v48, %v2807_v63 }
 0x16d   : > { %v1746_v60 = vadd.f32 %v2914_v47, %v1661_v41  ;;  %v1664_v50 = vmax.f32 %v1663_v58, %v2383_v55 }
 0x16e   : > { %v1744_v54 = vadd.f32 %v2914_v47, %v1655_v51  ;;  %v1658_v42 = vmax.f32 %v1657_v57, %v1545_v44  ;;  %v2330_v40 = vpop.f32.mrb[32].mxu0  ;;  %v2386_v39 = vpop.f32.mrb[32].mxu1 }
 0x16f   : > { %v1747_v59 = vadd.f32 %v2914_v47, %v1664_v50  ;;  %v1671_v62 = vmax.f32 %v2809_v0, %v2330_v40  ;;  %v1334_v43 = vpop.f32.mrb[33].mxu0  ;;  %v1558_v46 = vpop.f32.mrb[33].mxu1  ;;  %v1774_v41 = vmax.f32 %v1746_v60, 0.0 }
 0x170   : > { %v1745_v61 = vadd.f32 %v2914_v47, %v1658_v42  ;;  %v1665_v45 = vmax.f32 %v2813_v2, %v1334_v43  ;;  %v2331_v63 = vpop.f32.mrb[34].mxu0  ;;  %v2387_v49 = vpop.f32.mrb[34].mxu1  ;;  %v1772_v48 = vmax.f32 %v1744_v54, 0.0 }
 0x171   : > { %v1775_v52 = vmax.f32 %v1747_v59, 0.0  ;;  %v1672_v53 = vmax.f32 %v1671_v62, %v2811_v1  ;;  %v1674_v44 = vmax.f32 %v2817_v4, %v2331_v63  ;;  %v1337_v55 = vpop.f32.mrb[35].mxu0  ;;  %v1561_v56 = vpop.f32.mrb[35].mxu1 }
 0x172   : > { %v1773_v0 = vmax.f32 %v1745_v61, 0.0  ;;  %v1666_v2 = vmax.f32 %v1665_v45, %v2815_v3  ;;  %v1668_v40 = vmax.f32 %v2821_v6, %v1337_v55 }
 0x173   : > { %v2141_v42 = vpack.c.bf16 %v1775_v52, %v1774_v41  ;;  %v1673_v58 = vmax.f32 %v1672_v53, %v2386_v39  ;;  %v1675_v1 = vmax.f32 %v1674_v44, %v2819_v5 }
 0x174   : > { %v2136_v4 = vpack.c.bf16 %v1773_v0, %v1772_v48  ;;  %v1667_v51 = vmax.f32 %v1666_v2, %v1558_v46  ;;  %v1669_v57 = vmax.f32 %v1668_v40, %v2823_v7 }
 0x175   : > { %2203 = vst [vmem:[%s2931_s28 + $0x8] sm:$0xff] %v2141_v42   ;;  %v1750_v60 = vadd.f32 %v2914_v47, %v1673_v58  ;;  %v1676_v50 = vmax.f32 %v1675_v1, %v2387_v49 }
 0x176   : > { %2137 = vst [vmem:[%s2931_s28] sm:$0xff] %v2136_v4   ;;  %v1748_v54 = vadd.f32 %v2914_v47, %v1667_v51  ;;  %v1670_v59 = vmax.f32 %v1669_v57, %v1561_v56  ;;  %v2334_v62 = vpop.f32.mrb[36].mxu0  ;;  %v2390_v3 = vpop.f32.mrb[36].mxu1 }
 0x177   : > { %v1751_v6 = vadd.f32 %v2914_v47, %v1676_v50  ;;  %v1683_v39 = vmax.f32 %v2825_v8, %v2334_v62  ;;  %v1350_v43 = vpop.f32.mrb[37].mxu0  ;;  %v1574_v5 = vpop.f32.mrb[37].mxu1  ;;  %v1778_v63 = vmax.f32 %v1750_v60, 0.0 }
 0x178   : > { %v1749_v46 = vadd.f32 %v2914_v47, %v1670_v59  ;;  %v1677_v7 = vmax.f32 %v2829_v10, %v1350_v43  ;;  %v2335_v61 = vpop.f32.mrb[38].mxu0  ;;  %v2391_v45 = vpop.f32.mrb[38].mxu1  ;;  %v1776_v55 = vmax.f32 %v1748_v54, 0.0 }
 0x179   : > { %v1779_v49 = vmax.f32 %v1751_v6, 0.0  ;;  %v1684_v41 = vmax.f32 %v1683_v39, %v2827_v9  ;;  %v1686_v52 = vmax.f32 %v2833_v12, %v2335_v61  ;;  %v1353_v53 = vpop.f32.mrb[39].mxu0  ;;  %v1577_v44 = vpop.f32.mrb[39].mxu1 }
 0x17a   : > { %v1777_v8 = vmax.f32 %v1749_v46, 0.0  ;;  %v1678_v56 = vmax.f32 %v1677_v7, %v2831_v11  ;;  %v1680_v48 = vmax.f32 %v2837_v14, %v1353_v53 }
 0x17b   : > { %v2151_v0 = vpack.c.bf16 %v1779_v49, %v1778_v63  ;;  %v1685_v10 = vmax.f32 %v1684_v41, %v2390_v3  ;;  %v1687_v2 = vmax.f32 %v1686_v52, %v2835_v13 }
 0x17c   : > { %v2146_v40 = vpack.c.bf16 %v1777_v8, %v1776_v55  ;;  %v1679_v42 = vmax.f32 %v1678_v56, %v1574_v5  ;;  %v1681_v58 = vmax.f32 %v1680_v48, %v2839_v15 }
 0x17d   : > { %2205 = vst [vmem:[%s2931_s28 + $0x18] sm:$0xff] %v2151_v0   ;;  %v1754_v9 = vadd.f32 %v2914_v47, %v1685_v10  ;;  %v1688_v12 = vmax.f32 %v1687_v2, %v2391_v45 }
 0x17e   : > { %2204 = vst [vmem:[%s2931_s28 + $0x10] sm:$0xff] %v2146_v40   ;;  %v1752_v1 = vadd.f32 %v2914_v47, %v1679_v42  ;;  %v1682_v4 = vmax.f32 %v1681_v58, %v1577_v44  ;;  %v2338_v51 = vpop.f32.mrb[40].mxu0  ;;  %v2394_v11 = vpop.f32.mrb[40].mxu1 }
 0x17f   : > { %v1755_v14 = vadd.f32 %v2914_v47, %v1688_v12  ;;  %v1695_v57 = vmax.f32 %v2841_v16, %v2338_v51  ;;  %v1366_v60 = vpop.f32.mrb[41].mxu0  ;;  %v1590_v13 = vpop.f32.mrb[41].mxu1  ;;  %v1782_v62 = vmax.f32 %v1754_v9, 0.0 }
 0x180   : > { %v1753_v50 = vadd.f32 %v2914_v47, %v1682_v4  ;;  %v1689_v15 = vmax.f32 %v2845_v18, %v1366_v60  ;;  %v2339_v54 = vpop.f32.mrb[42].mxu0  ;;  %v2395_v59 = vpop.f32.mrb[42].mxu1  ;;  %v1780_v46 = vmax.f32 %v1752_v1, 0.0 }
 0x181   : > { %v1783_v3 = vmax.f32 %v1755_v14, 0.0  ;;  %v1696_v6 = vmax.f32 %v1695_v57, %v2843_v17  ;;  %v1698_v39 = vmax.f32 %v2849_v20, %v2339_v54  ;;  %v1369_v43 = vpop.f32.mrb[43].mxu0  ;;  %v1593_v5 = vpop.f32.mrb[43].mxu1 }
 0x182   : > { %v1781_v16 = vmax.f32 %v1753_v50, 0.0  ;;  %v1690_v7 = vmax.f32 %v1689_v15, %v2847_v19  ;;  %v1692_v61 = vmax.f32 %v2853_v22, %v1369_v43 }
 0x183   : > { %v2161_v45 = vpack.c.bf16 %v1783_v3, %v1782_v62  ;;  %v1697_v18 = vmax.f32 %v1696_v6, %v2394_v11  ;;  %v1699_v63 = vmax.f32 %v1698_v39, %v2851_v21 }
 0x184   : > { %v2156_v49 = vpack.c.bf16 %v1781_v16, %v1780_v46  ;;  %v1691_v41 = vmax.f32 %v1690_v7, %v1590_v13  ;;  %v1693_v52 = vmax.f32 %v1692_v61, %v2855_v23 }
 0x185   : > { %2207 = vst [vmem:[%s2931_s28 + $0x28] sm:$0xff] %v2161_v45   ;;  %v1758_v17 = vadd.f32 %v2914_v47, %v1697_v18  ;;  %v1700_v20 = vmax.f32 %v1699_v63, %v2395_v59 }
 0x186   : > { %2206 = vst [vmem:[%s2931_s28 + $0x20] sm:$0xff] %v2156_v49   ;;  %v1756_v53 = vadd.f32 %v2914_v47, %v1691_v41  ;;  %v1694_v44 = vmax.f32 %v1693_v52, %v1593_v5  ;;  %v2342_v55 = vpop.f32.mrb[44].mxu0  ;;  %v2398_v19 = vpop.f32.mrb[44].mxu1 }
 0x187   : > { %v1759_v22 = vadd.f32 %v2914_v47, %v1700_v20  ;;  %v1707_v8 = vmax.f32 %v2857_v24, %v2342_v55  ;;  %v1382_v56 = vpop.f32.mrb[45].mxu0  ;;  %v1606_v21 = vpop.f32.mrb[45].mxu1  ;;  %v1786_v2 = vmax.f32 %v1758_v17, 0.0  ;;  %v3038_v20 = vld [vmem:[#allocation3_spill] sm:$0xff] }
 0x188   : > { %v1757_v48 = vadd.f32 %v2914_v47, %v1694_v44  ;;  %v1701_v23 = vmax.f32 %v2861_v26, %v1382_v56  ;;  %v2343_v0 = vpop.f32.mrb[46].mxu0  ;;  %v2399_v10 = vpop.f32.mrb[46].mxu1  ;;  %v1784_v1 = vmax.f32 %v1756_v53, 0.0 }
 0x189   : > { %v1787_v40 = vmax.f32 %v1759_v22, 0.0  ;;  %v1708_v42 = vmax.f32 %v1707_v8, %v2859_v25  ;;  %v1710_v58 = vmax.f32 %v2865_v28, %v2343_v0  ;;  %v1385_v9 = vpop.f32.mrb[47].mxu0  ;;  %v1609_v12 = vpop.f32.mrb[47].mxu1  ;;  %v3039_v22 = vld [vmem:[#allocation4_spill] sm:$0xff] }
 0x18a   : > { %v1785_v24 = vmax.f32 %v1757_v48, 0.0  ;;  %v1702_v4 = vmax.f32 %v1701_v23, %v2863_v27  ;;  %v1704_v51 = vmax.f32 %v2869_v30, %v1385_v9  ;;  %v3040_v48 = vld [vmem:[#allocation6_spill] sm:$0xff]  ;;  %v3042_v9 = vld [vmem:[#allocation8_spill] sm:$0xff] }
 0x18b   : > { %v2171_v11 = vpack.c.bf16 %v1787_v40, %v1786_v2  ;;  %v1709_v26 = vmax.f32 %v1708_v42, %v2398_v19  ;;  %v1711_v14 = vmax.f32 %v1710_v58, %v2867_v29  ;;  %v3041_v42 = vld [vmem:[#allocation5_spill] sm:$0xff] }
 0x18c   : > { %v2166_v57 = vpack.c.bf16 %v1785_v24, %v1784_v1  ;;  %v1703_v60 = vmax.f32 %v1702_v4, %v1606_v21  ;;  %v1705_v13 = vmax.f32 %v1704_v51, %v2871_v31 }
 0x18d   : > { %2209 = vst [vmem:[%s2931_s28 + $0x38] sm:$0xff] %v2171_v11   ;;  %v1762_v25 = vadd.f32 %v2914_v47, %v1709_v26  ;;  %v1712_v28 = vmax.f32 %v1711_v14, %v2399_v10  ;;  %v3043_v11 = vld [vmem:[#allocation7_spill] sm:$0xff]  ;;  %v3044_v14 = vld [vmem:[#allocation10_spill] sm:$0xff] }
 0x18e   : > { %2208 = vst [vmem:[%s2931_s28 + $0x30] sm:$0xff] %v2166_v57   ;;  %v1760_v50 = vadd.f32 %v2914_v47, %v1703_v60  ;;  %v1706_v15 = vmax.f32 %v1705_v13, %v1609_v12  ;;  %v2346_v54 = vpop.f32.mrb[48].mxu0  ;;  %v2402_v27 = vpop.f32.mrb[48].mxu1 }
 0x18f   : > { %v1763_v30 = vadd.f32 %v2914_v47, %v1712_v28  ;;  %v1719_v59 = vmax.f32 %v2873_v32, %v2346_v54  ;;  %v1398_v62 = vpop.f32.mrb[49].mxu0  ;;  %v1622_v29 = vpop.f32.mrb[49].mxu1  ;;  %v1790_v43 = vmax.f32 %v1762_v25, 0.0  ;;  %v3045_v25 = vld [vmem:[#allocation9_spill] sm:$0xff]  ;;  %v3046_v54 = vld [vmem:[#allocation11_spill] sm:$0xff] }
 0x190   : > { %v1761_v3 = vadd.f32 %v2914_v47, %v1706_v15  ;;  %v1713_v31 = vmax.f32 %v2877_v34, %v1398_v62  ;;  %v2347_v6 = vpop.f32.mrb[50].mxu0  ;;  %v2403_v39 = vpop.f32.mrb[50].mxu1  ;;  %v1788_v45 = vmax.f32 %v1760_v50, 0.0 }
 0x191   : > { %v1791_v5 = vmax.f32 %v1763_v30, 0.0  ;;  %v1720_v46 = vmax.f32 %v1719_v59, %v2875_v33  ;;  %v1722_v16 = vmax.f32 %v2881_v36, %v2347_v6  ;;  %v1401_v7 = vpop.f32.mrb[51].mxu0  ;;  %v1625_v61 = vpop.f32.mrb[51].mxu1 }
 0x192   : > { %v1789_v32 = vmax.f32 %v1761_v3, 0.0  ;;  %v1714_v18 = vmax.f32 %v1713_v31, %v2879_v35  ;;  %v1716_v63 = vmax.f32 %v2885_v38, %v1401_v7 }
 0x193   : > { %v2181_v49 = vpack.c.bf16 %v1791_v5, %v1790_v43  ;;  %v1721_v34 = vmax.f32 %v1720_v46, %v2402_v27  ;;  %v1723_v41 = vmax.f32 %v1722_v16, %v2883_v37 }
 0x194   : > { %v2176_v52 = vpack.c.bf16 %v1789_v32, %v1788_v45  ;;  %v1715_v17 = vmax.f32 %v1714_v18, %v1622_v29  ;;  %v1717_v53 = vmax.f32 %v1716_v63, %v3038_v20 }
 0x195   : > { %2211 = vst [vmem:[%s2931_s28 + $0x48] sm:$0xff] %v2181_v49   ;;  %v1766_v33 = vadd.f32 %v2914_v47, %v1721_v34  ;;  %v1724_v36 = vmax.f32 %v1723_v41, %v2403_v39 }
 0x196   : > { %2210 = vst [vmem:[%s2931_s28 + $0x40] sm:$0xff] %v2176_v52   ;;  %v1764_v44 = vadd.f32 %v2914_v47, %v1715_v17  ;;  %v1718_v55 = vmax.f32 %v1717_v53, %v1625_v61  ;;  %v2350_v19 = vpop.f32.mrb[52].mxu0  ;;  %v2406_v35 = vpop.f32.mrb[52].mxu1 }
 0x197   : > { %v1767_v38 = vadd.f32 %v2914_v47, %v1724_v36  ;;  %v1731_v8 = vmax.f32 %v3039_v22, %v2350_v19  ;;  %v1414_v56 = vpop.f32.mrb[53].mxu0  ;;  %v1638_v37 = vpop.f32.mrb[53].mxu1  ;;  %v1794_v2 = vmax.f32 %v1766_v33, 0.0 }
 0x198   : > { %v1765_v21 = vadd.f32 %v2914_v47, %v1718_v55  ;;  %v1725_v23 = vmax.f32 %v3040_v48, %v1414_v56  ;;  %v2351_v0 = vpop.f32.mrb[54].mxu0  ;;  %v2407_v10 = vpop.f32.mrb[54].mxu1  ;;  %v1792_v4 = vmax.f32 %v1764_v44, 0.0 }
 0x199   : > { %v1795_v40 = vmax.f32 %v1767_v38, 0.0  ;;  %v1732_v58 = vmax.f32 %v1731_v8, %v3041_v42  ;;  %v1734_v12 = vmax.f32 %v3042_v9, %v2351_v0  ;;  %v1417_v1 = vpop.f32.mrb[55].mxu0  ;;  %v1641_v24 = vpop.f32.mrb[55].mxu1 }
 0x19a   : > { %v1793_v51 = vmax.f32 %v1765_v21, 0.0  ;;  %v1726_v26 = vmax.f32 %v1725_v23, %v3043_v11  ;;  %v1728_v57 = vmax.f32 %v3044_v14, %v1417_v1 }
 0x19b   : > { %v2191_v60 = vpack.c.bf16 %v1795_v40, %v1794_v2  ;;  %v1733_v13 = vmax.f32 %v1732_v58, %v2406_v35  ;;  %v1735_v28 = vmax.f32 %v1734_v12, %v3045_v25 }
 0x19c   : > { %v2186_v50 = vpack.c.bf16 %v1793_v51, %v1792_v4  ;;  %v1727_v15 = vmax.f32 %v1726_v26, %v1638_v37  ;;  %v1729_v27 = vmax.f32 %v1728_v57, %v3046_v54 }
 0x19d   : > { %2213 = vst [vmem:[%s2931_s28 + $0x58] sm:$0xff] %v2191_v60   ;;  %v1770_v30 = vadd.f32 %v2914_v47, %v1733_v13  ;;  %v1736_v59 = vmax.f32 %v1735_v28, %v2407_v10 }
 0x19e   : > { %2212 = vst [vmem:[%s2931_s28 + $0x50] sm:$0xff] %v2186_v50   ;;  %v1768_v62 = vadd.f32 %v2914_v47, %v1727_v15  ;;  %v1730_v29 = vmax.f32 %v1729_v27, %v1641_v24 }
 0x19f   : > { %v1771_v3 = vadd.f32 %v2914_v47, %v1736_v59  ;;  %v1798_v6 = vmax.f32 %v1770_v30, 0.0 }
 0x1a0   : > { %v1769_v31 = vadd.f32 %v2914_v47, %v1730_v29  ;;  %v1796_v43 = vmax.f32 %v1768_v62, 0.0 }
 0x1a1   : > { %v1799_v39 = vmax.f32 %v1771_v3, 0.0 }
 0x1a2   : > { %v1797_v5 = vmax.f32 %v1769_v31, 0.0 }
 0x1a3   : > { %v2201_v46 = vpack.c.bf16 %v1799_v39, %v1798_v6 }
 0x1a4   : > { %v2196_v16 = vpack.c.bf16 %v1797_v5, %v1796_v43 }
 0x1a5   : > { %2215 = vst [vmem:[%s2931_s28 + $0x68] sm:$0xff] %v2201_v46  }
 0x1a6   : > { %2214 = vst [vmem:[%s2931_s28 + $0x60] sm:$0xff] %v2196_v16  }
 0x1a7 PF: > { %p10_p9 = scmp.ge.s32.totalorder %s2575_s16, 9   ;;  %s3047_s12 = smov %s2532_s13 }
 0x1a8   : > { %s3048_s13 = smov %s2584_s19  ;;  %s3049_s14 = smov %s2575_s16 }
 0x1a9   :  { %12 = sbr.rel (!%p10_p9) target bundleno = 2 (0x2), region = 108 }

// kernel: net_forward.5
= control target key start
LH: loop header
LB: loop body
LE: loop exit
PB: predicated region body
PF: predicated region fallthrough
CT: control target
= control target key end

     0   :  { %v2592_v0 = vmov 0   ;;  %s3436_s1 = inlined_call_operand.vmem [shape: bf16[256,128], index: 1, kind: input, shape index: {}]   ;;  %s3437_s0 = inlined_call_operand.vmem [shape: bf16[4,288,256], index: 0, kind: input, shape index: {}]   ;;  %s3438_s2 = inlined_call_operand.vmem [shape: f32[1,128], index: 2, kind: input, shape index: {}]   ;;  %s3439_s3 = inlined_call_operand.vmem [shape: bf16[288,128], index: 3, kind: output, shape index: {}]  }
   0x1   :  { %1007 = vmatprep.subr.bf16.mxu0 %v2592_v0  ;;  %2327 = vmatprep.subr.bf16.mxu1 %v2592_v0  ;;  %v2360_v1 = vld [vmem:[%s3436_s1] sm:$0xff]   ;;  %v2361_v2 = vld [vmem:[%s3436_s1 + $0x8] sm:$0xff]   ;;  %v2362_v3 = vld [vmem:[%s3436_s1 + $0x10] sm:$0xff]  }
   0x2   :  { %1008 = vmatpush1.bf16.msra.mxu0 %v2360_v1  ;;  %2343 = vmatpush1.bf16.msra.mxu1 %v2360_v1  ;;  %v2363_v4 = vld [vmem:[%s3436_s1 + $0x18] sm:$0xff]   ;;  %v2364_v5 = vld [vmem:[%s3436_s1 + $0x20] sm:$0xff]   ;;  %v2365_v7 = vld [vmem:[%s3436_s1 + $0x28] sm:$0xff]  }
   0x3   :  { %1009 = vmatprep.subr.bf16.mxu0 %v2592_v0  ;;  %2328 = vmatprep.subr.bf16.mxu1 %v2592_v0  ;;  %v2378_v6 = vld [vmem:[%s3437_s0 + $0x4] ss:$8 sps:$4 sm:$0xff]   ;;  %v2366_v9 = vld [vmem:[%s3436_s1 + $0x30] sm:$0xff]   ;;  %v2367_v10 = vld [vmem:[%s3436_s1 + $0x38] sm:$0xff]  }
   0x4   :  { %v2381_v8 = vld [vmem:[%s3437_s0 + $0x244] ss:$8 sps:$4 sm:$0xff]   ;;  %1039 = vmatprep.mubr.bf16.mxu0 %v2378_v6  ;;  %v2370_v13 = vld [vmem:[%s3436_s1 + $0x50] sm:$0xff]   ;;  %v2371_v14 = vld [vmem:[%s3436_s1 + $0x58] sm:$0xff]  }
   0x5   :  { %1327 = vmatprep.mubr.bf16.mxu1 %v2381_v8  ;;  %v2368_v11 = vld [vmem:[%s3436_s1 + $0x40] sm:$0xff]   ;;  %v2369_v12 = vld [vmem:[%s3436_s1 + $0x48] sm:$0xff]   ;;  %v2374_v17 = vld [vmem:[%s3436_s1 + $0x70] sm:$0xff]  }
   0x6   :  { %1010 = vmatpush1.bf16.msra.mxu0 %v2361_v2  ;;  %2344 = vmatpush1.bf16.msra.mxu1 %v2361_v2  ;;  %v2372_v15 = vld [vmem:[%s3436_s1 + $0x60] sm:$0xff]   ;;  %v2373_v16 = vld [vmem:[%s3436_s1 + $0x68] sm:$0xff]   ;;  %v2375_v18 = vld [vmem:[%s3436_s1 + $0x78] sm:$0xff]  }
   0x7   :  { %1011 = vmatprep.subr.bf16.mxu0 %v2592_v0  ;;  %2329 = vmatprep.subr.bf16.mxu1 %v2592_v0  ;;  %v2376_v19 = vld [vmem:[%s3437_s0] ss:$8 sps:$4 sm:$0xff]   ;;  %v2382_v21 = vld [vmem:[%s3437_s0 + $0x14] ss:$8 sps:$4 sm:$0xff]   ;;  %v2384_v23 = vld [vmem:[%s3437_s0 + $0x10] ss:$8 sps:$4 sm:$0xff]  }
   0x8   :  { %v2379_v20 = vld [vmem:[%s3437_s0 + $0x240] ss:$8 sps:$4 sm:$0xff]   ;;  %v2385_v22 = vld [vmem:[%s3437_s0 + $0x254] ss:$8 sps:$4 sm:$0xff]   ;;  %v2387_v24 = vld [vmem:[%s3437_s0 + $0x250] ss:$8 sps:$4 sm:$0xff]  }
   0x9   :  { %v2388_v25 = vld [vmem:[%s3437_s0 + $0x24] ss:$8 sps:$4 sm:$0xff]   ;;  %v2390_v27 = vld [vmem:[%s3437_s0 + $0x20] ss:$8 sps:$4 sm:$0xff]   ;;  %v2394_v29 = vld [vmem:[%s3437_s0 + $0x34] ss:$8 sps:$4 sm:$0xff]  }
   0xa   :  { %1012 = vmatpush1.bf16.msra.mxu0 %v2362_v3  ;;  %2345 = vmatpush1.bf16.msra.mxu1 %v2362_v3  ;;  %v2391_v26 = vld [vmem:[%s3437_s0 + $0x264] ss:$8 sps:$4 sm:$0xff]   ;;  %v2393_v28 = vld [vmem:[%s3437_s0 + $0x260] ss:$8 sps:$4 sm:$0xff]   ;;  %v2397_v30 = vld [vmem:[%s3437_s0 + $0x274] ss:$8 sps:$4 sm:$0xff]  }
   0xb   :  { %1013 = vmatprep.subr.bf16.mxu0 %v2592_v0  ;;  %2330 = vmatprep.subr.bf16.mxu1 %v2592_v0  ;;  %v2396_v31 = vld [vmem:[%s3437_s0 + $0x30] ss:$8 sps:$4 sm:$0xff]   ;;  %v2400_v33 = vld [vmem:[%s3437_s0 + $0x44] ss:$8 sps:$4 sm:$0xff]   ;;  %v2402_v35 = vld [vmem:[%s3437_s0 + $0x40] ss:$8 sps:$4 sm:$0xff]  }
   0xc   :  { %v2399_v32 = vld [vmem:[%s3437_s0 + $0x270] ss:$8 sps:$4 sm:$0xff]   ;;  %v2403_v34 = vld [vmem:[%s3437_s0 + $0x284] ss:$8 sps:$4 sm:$0xff]   ;;  %v2405_v36 = vld [vmem:[%s3437_s0 + $0x280] ss:$8 sps:$4 sm:$0xff]  }
   0xd   :  { %v2406_v37 = vld [vmem:[%s3437_s0 + $0x54] ss:$8 sps:$4 sm:$0xff]   ;;  %v2408_v39 = vld [vmem:[%s3437_s0 + $0x50] ss:$8 sps:$4 sm:$0xff]   ;;  %v2412_v41 = vld [vmem:[%s3437_s0 + $0x64] ss:$8 sps:$4 sm:$0xff]  }
   0xe   :  { %1014 = vmatpush1.bf16.msra.mxu0 %v2363_v4  ;;  %2346 = vmatpush1.bf16.msra.mxu1 %v2363_v4  ;;  %v2409_v38 = vld [vmem:[%s3437_s0 + $0x294] ss:$8 sps:$4 sm:$0xff]   ;;  %v2411_v40 = vld [vmem:[%s3437_s0 + $0x290] ss:$8 sps:$4 sm:$0xff]   ;;  %v2415_v42 = vld [vmem:[%s3437_s0 + $0x2a4] ss:$8 sps:$4 sm:$0xff]  }
   0xf   :  { %1015 = vmatprep.subr.bf16.mxu0 %v2592_v0  ;;  %2331 = vmatprep.subr.bf16.mxu1 %v2592_v0  ;;  %v2414_v43 = vld [vmem:[%s3437_s0 + $0x60] ss:$8 sps:$4 sm:$0xff]   ;;  %v2418_v45 = vld [vmem:[%s3437_s0 + $0x74] ss:$8 sps:$4 sm:$0xff]   ;;  %v2420_v47 = vld [vmem:[%s3437_s0 + $0x70] ss:$8 sps:$4 sm:$0xff]  }
  0x10   :  { %v2417_v44 = vld [vmem:[%s3437_s0 + $0x2a0] ss:$8 sps:$4 sm:$0xff]   ;;  %v2421_v46 = vld [vmem:[%s3437_s0 + $0x2b4] ss:$8 sps:$4 sm:$0xff]   ;;  %v2423_v48 = vld [vmem:[%s3437_s0 + $0x2b0] ss:$8 sps:$4 sm:$0xff]  }
  0x11   :  { %v2424_v49 = vld [vmem:[%s3437_s0 + $0x84] ss:$8 sps:$4 sm:$0xff]   ;;  %v2426_v51 = vld [vmem:[%s3437_s0 + $0x80] ss:$8 sps:$4 sm:$0xff]   ;;  %v2430_v53 = vld [vmem:[%s3437_s0 + $0x94] ss:$8 sps:$4 sm:$0xff]  }
  0x12   :  { %1016 = vmatpush1.bf16.msra.mxu0 %v2364_v5  ;;  %2347 = vmatpush1.bf16.msra.mxu1 %v2364_v5  ;;  %v2427_v50 = vld [vmem:[%s3437_s0 + $0x2c4] ss:$8 sps:$4 sm:$0xff]   ;;  %v2429_v52 = vld [vmem:[%s3437_s0 + $0x2c0] ss:$8 sps:$4 sm:$0xff]   ;;  %v2433_v54 = vld [vmem:[%s3437_s0 + $0x2d4] ss:$8 sps:$4 sm:$0xff]  }
  0x13   :  { %1017 = vmatprep.subr.bf16.mxu0 %v2592_v0  ;;  %2332 = vmatprep.subr.bf16.mxu1 %v2592_v0  ;;  %v2432_v55 = vld [vmem:[%s3437_s0 + $0x90] ss:$8 sps:$4 sm:$0xff]   ;;  %v2436_v57 = vld [vmem:[%s3437_s0 + $0xa4] ss:$8 sps:$4 sm:$0xff]   ;;  %v2438_v59 = vld [vmem:[%s3437_s0 + $0xa0] ss:$8 sps:$4 sm:$0xff]  }
  0x14   :  { %v2435_v56 = vld [vmem:[%s3437_s0 + $0x2d0] ss:$8 sps:$4 sm:$0xff]   ;;  %v2439_v58 = vld [vmem:[%s3437_s0 + $0x2e4] ss:$8 sps:$4 sm:$0xff]   ;;  %v2441_v60 = vld [vmem:[%s3437_s0 + $0x2e0] ss:$8 sps:$4 sm:$0xff]  }
  0x15   :  { %v2442_v61 = vld [vmem:[%s3437_s0 + $0xb4] ss:$8 sps:$4 sm:$0xff]   ;;  %v2444_v63 = vld [vmem:[%s3437_s0 + $0xb0] ss:$8 sps:$4 sm:$0xff]   ;;  %v2448_v1 = vld [vmem:[%s3437_s0 + $0xc4] ss:$8 sps:$4 sm:$0xff]  }
  0x16   :  { %1018 = vmatpush1.bf16.msra.mxu0 %v2365_v7  ;;  %2348 = vmatpush1.bf16.msra.mxu1 %v2365_v7  ;;  %v2445_v62 = vld [vmem:[%s3437_s0 + $0x2f4] ss:$8 sps:$4 sm:$0xff]   ;;  %v2451_v2 = vld [vmem:[%s3437_s0 + $0x304] ss:$8 sps:$4 sm:$0xff]   ;;  %v2450_v3 = vld [vmem:[%s3437_s0 + $0xc0] ss:$8 sps:$4 sm:$0xff]  }
  0x17   :  { %1019 = vmatprep.subr.bf16.mxu0 %v2592_v0  ;;  %2333 = vmatprep.subr.bf16.mxu1 %v2592_v0  ;;  %v2453_v4 = vld [vmem:[%s3437_s0 + $0x300] ss:$8 sps:$4 sm:$0xff]   ;;  %v2454_v5 = vld [vmem:[%s3437_s0 + $0xd4] ss:$8 sps:$4 sm:$0xff]   ;;  %v2456_v7 = vld [vmem:[%s3437_s0 + $0xd0] ss:$8 sps:$4 sm:$0xff]  }
  0x18   :  { %v2457_v6 = vld [vmem:[%s3437_s0 + $0x314] ss:$8 sps:$4 sm:$0xff]   ;;  %v2459_v8 = vld [vmem:[%s3437_s0 + $0x310] ss:$8 sps:$4 sm:$0xff]  }
  0x1a   :  { %1020 = vmatpush1.bf16.msra.mxu0 %v2366_v9  ;;  %2349 = vmatpush1.bf16.msra.mxu1 %v2366_v9  ;;  %v2460_v9 = vld [vmem:[%s3437_s0 + $0xe4] ss:$8 sps:$4 sm:$0xff]  }
  0x1b   :  { %1021 = vmatprep.subr.bf16.mxu0 %v2592_v0  ;;  %2334 = vmatprep.subr.bf16.mxu1 %v2592_v0 }
  0x1e   :  { %1022 = vmatpush1.bf16.msra.mxu0 %v2367_v10  ;;  %2350 = vmatpush1.bf16.msra.mxu1 %v2367_v10  ;;  %v2463_v10 = vld [vmem:[%s3437_s0 + $0x324] ss:$8 sps:$4 sm:$0xff]  }
  0x1f   :  { %1023 = vmatprep.subr.bf16.mxu0 %v2592_v0  ;;  %2335 = vmatprep.subr.bf16.mxu1 %v2592_v0 }
  0x22   :  { %1024 = vmatpush1.bf16.msra.mxu0 %v2368_v11  ;;  %2351 = vmatpush1.bf16.msra.mxu1 %v2368_v11  ;;  %v2462_v11 = vld [vmem:[%s3437_s0 + $0xe0] ss:$8 sps:$4 sm:$0xff]  }
  0x23   :  { %1025 = vmatprep.subr.bf16.mxu0 %v2592_v0  ;;  %2336 = vmatprep.subr.bf16.mxu1 %v2592_v0 }
  0x26   :  { %1026 = vmatpush1.bf16.msra.mxu0 %v2369_v12  ;;  %2352 = vmatpush1.bf16.msra.mxu1 %v2369_v12  ;;  %v2465_v12 = vld [vmem:[%s3437_s0 + $0x320] ss:$8 sps:$4 sm:$0xff]  }
  0x27   :  { %1027 = vmatprep.subr.bf16.mxu0 %v2592_v0  ;;  %2337 = vmatprep.subr.bf16.mxu1 %v2592_v0 }
  0x2a   :  { %1028 = vmatpush1.bf16.msra.mxu0 %v2370_v13  ;;  %2353 = vmatpush1.bf16.msra.mxu1 %v2370_v13  ;;  %v2466_v13 = vld [vmem:[%s3437_s0 + $0xf4] ss:$8 sps:$4 sm:$0xff]  }
  0x2b   :  { %1029 = vmatprep.subr.bf16.mxu0 %v2592_v0  ;;  %2338 = vmatprep.subr.bf16.mxu1 %v2592_v0 }
  0x2e   :  { %1030 = vmatpush1.bf16.msra.mxu0 %v2371_v14  ;;  %2354 = vmatpush1.bf16.msra.mxu1 %v2371_v14  ;;  %v2469_v14 = vld [vmem:[%s3437_s0 + $0x334] ss:$8 sps:$4 sm:$0xff]  }
  0x2f   :  { %1031 = vmatprep.subr.bf16.mxu0 %v2592_v0  ;;  %2339 = vmatprep.subr.bf16.mxu1 %v2592_v0 }
  0x32   :  { %1032 = vmatpush1.bf16.msra.mxu0 %v2372_v15  ;;  %2355 = vmatpush1.bf16.msra.mxu1 %v2372_v15  ;;  %v2468_v15 = vld [vmem:[%s3437_s0 + $0xf0] ss:$8 sps:$4 sm:$0xff]  }
  0x33   :  { %1033 = vmatprep.subr.bf16.mxu0 %v2592_v0  ;;  %2340 = vmatprep.subr.bf16.mxu1 %v2592_v0 }
  0x36   :  { %1034 = vmatpush1.bf16.msra.mxu0 %v2373_v16  ;;  %2356 = vmatpush1.bf16.msra.mxu1 %v2373_v16  ;;  %v2471_v16 = vld [vmem:[%s3437_s0 + $0x330] ss:$8 sps:$4 sm:$0xff]  }
  0x37   :  { %1035 = vmatprep.subr.bf16.mxu0 %v2592_v0  ;;  %2341 = vmatprep.subr.bf16.mxu1 %v2592_v0 }
  0x3a   :  { %1036 = vmatpush1.bf16.msra.mxu0 %v2374_v17  ;;  %2357 = vmatpush1.bf16.msra.mxu1 %v2374_v17  ;;  %v2472_v17 = vld [vmem:[%s3437_s0 + $0x104] ss:$8 sps:$4 sm:$0xff]  }
  0x3b   :  { %1037 = vmatprep.subr.bf16.mxu0 %v2592_v0  ;;  %2342 = vmatprep.subr.bf16.mxu1 %v2592_v0  ;;  %v2447_v0 = vld [vmem:[%s3437_s0 + $0x2f0] ss:$8 sps:$4 sm:$0xff]  }
  0x3e   :  { %1038 = vmatpush1.bf16.msra.mxu0 %v2375_v18  ;;  %2358 = vmatpush1.bf16.msra.mxu1 %v2375_v18  ;;  %v2475_v18 = vld [vmem:[%s3437_s0 + $0x344] ss:$8 sps:$4 sm:$0xff]  }
  0x41   :  { %1040 = vmatmul.mubr.bf16.vlgmr.msra.gmra.mrb[0].mxu0 %v2376_v19  ;;  %1328 = vmatmul.mubr.bf16.vlgmr.msra.gmra.mrb[0].mxu1 %v2379_v20  ;;  %v2474_v19 = vld [vmem:[%s3437_s0 + $0x100] ss:$8 sps:$4 sm:$0xff]  }
  0x42   :  { %1047 = vmatprep.mubr.bf16.mxu0 %v2382_v21  ;;  %1335 = vmatprep.mubr.bf16.mxu1 %v2385_v22  ;;  %v2477_v20 = vld [vmem:[%s3437_s0 + $0x340] ss:$8 sps:$4 sm:$0xff]   ;;  %v2478_v21 = vld [vmem:[%s3437_s0 + $0x114] ss:$8 sps:$4 sm:$0xff]  }
  0x43   :  { %v2481_v22 = vld [vmem:[%s3437_s0 + $0x354] ss:$8 sps:$4 sm:$0xff]  }
  0x49   :  { %1048 = vmatmul.mubr.bf16.gmra.mrb[4].mxu0 %v2384_v23  ;;  %1336 = vmatmul.mubr.bf16.gmra.mrb[4].mxu1 %v2387_v24  ;;  %v2480_v23 = vld [vmem:[%s3437_s0 + $0x110] ss:$8 sps:$4 sm:$0xff]  }
  0x4a   :  { %1055 = vmatprep.mubr.bf16.mxu0 %v2388_v25  ;;  %1343 = vmatprep.mubr.bf16.mxu1 %v2391_v26  ;;  %v2483_v24 = vld [vmem:[%s3437_s0 + $0x350] ss:$8 sps:$4 sm:$0xff]   ;;  %v2484_v25 = vld [vmem:[%s3437_s0 + $0x124] ss:$8 sps:$4 sm:$0xff]  }
  0x4b   :  { %v2487_v26 = vld [vmem:[%s3437_s0 + $0x364] ss:$8 sps:$4 sm:$0xff]  }
  0x51   :  { %1056 = vmatmul.mubr.bf16.gmra.mrb[8].mxu0 %v2390_v27  ;;  %1344 = vmatmul.mubr.bf16.gmra.mrb[8].mxu1 %v2393_v28  ;;  %v2486_v27 = vld [vmem:[%s3437_s0 + $0x120] ss:$8 sps:$4 sm:$0xff]  }
  0x52   :  { %1063 = vmatprep.mubr.bf16.mxu0 %v2394_v29  ;;  %1351 = vmatprep.mubr.bf16.mxu1 %v2397_v30  ;;  %v2489_v28 = vld [vmem:[%s3437_s0 + $0x360] ss:$8 sps:$4 sm:$0xff]   ;;  %v2490_v29 = vld [vmem:[%s3437_s0 + $0x134] ss:$8 sps:$4 sm:$0xff]  }
  0x53   :  { %v2493_v30 = vld [vmem:[%s3437_s0 + $0x374] ss:$8 sps:$4 sm:$0xff]  }
  0x59   :  { %1064 = vmatmul.mubr.bf16.gmra.mrb[12].mxu0 %v2396_v31  ;;  %1352 = vmatmul.mubr.bf16.gmra.mrb[12].mxu1 %v2399_v32  ;;  %v2492_v31 = vld [vmem:[%s3437_s0 + $0x130] ss:$8 sps:$4 sm:$0xff]  }
  0x5a   :  { %1071 = vmatprep.mubr.bf16.mxu0 %v2400_v33  ;;  %1359 = vmatprep.mubr.bf16.mxu1 %v2403_v34  ;;  %v2495_v32 = vld [vmem:[%s3437_s0 + $0x370] ss:$8 sps:$4 sm:$0xff]   ;;  %v2496_v33 = vld [vmem:[%s3437_s0 + $0x144] ss:$8 sps:$4 sm:$0xff]  }
  0x5b   :  { %v2499_v34 = vld [vmem:[%s3437_s0 + $0x384] ss:$8 sps:$4 sm:$0xff]  }
  0x61   :  { %1072 = vmatmul.mubr.bf16.gmra.mrb[16].mxu0 %v2402_v35  ;;  %1360 = vmatmul.mubr.bf16.gmra.mrb[16].mxu1 %v2405_v36  ;;  %v2498_v35 = vld [vmem:[%s3437_s0 + $0x140] ss:$8 sps:$4 sm:$0xff]  }
  0x62   :  { %1079 = vmatprep.mubr.bf16.mxu0 %v2406_v37  ;;  %1367 = vmatprep.mubr.bf16.mxu1 %v2409_v38  ;;  %v2501_v36 = vld [vmem:[%s3437_s0 + $0x380] ss:$8 sps:$4 sm:$0xff]   ;;  %v2502_v37 = vld [vmem:[%s3437_s0 + $0x154] ss:$8 sps:$4 sm:$0xff]  }
  0x63   :  { %v2505_v38 = vld [vmem:[%s3437_s0 + $0x394] ss:$8 sps:$4 sm:$0xff]  }
  0x69   :  { %1080 = vmatmul.mubr.bf16.gmra.mrb[20].mxu0 %v2408_v39  ;;  %1368 = vmatmul.mubr.bf16.gmra.mrb[20].mxu1 %v2411_v40  ;;  %v2504_v39 = vld [vmem:[%s3437_s0 + $0x150] ss:$8 sps:$4 sm:$0xff]  }
  0x6a   :  { %1087 = vmatprep.mubr.bf16.mxu0 %v2412_v41  ;;  %1375 = vmatprep.mubr.bf16.mxu1 %v2415_v42  ;;  %v2507_v40 = vld [vmem:[%s3437_s0 + $0x390] ss:$8 sps:$4 sm:$0xff]   ;;  %v2508_v41 = vld [vmem:[%s3437_s0 + $0x164] ss:$8 sps:$4 sm:$0xff]  }
  0x6b   :  { %v2511_v42 = vld [vmem:[%s3437_s0 + $0x3a4] ss:$8 sps:$4 sm:$0xff]  }
  0x71   :  { %1088 = vmatmul.mubr.bf16.gmra.mrb[24].mxu0 %v2414_v43  ;;  %1376 = vmatmul.mubr.bf16.gmra.mrb[24].mxu1 %v2417_v44  ;;  %v2510_v43 = vld [vmem:[%s3437_s0 + $0x160] ss:$8 sps:$4 sm:$0xff]  }
  0x72   :  { %1095 = vmatprep.mubr.bf16.mxu0 %v2418_v45  ;;  %1383 = vmatprep.mubr.bf16.mxu1 %v2421_v46  ;;  %v2513_v44 = vld [vmem:[%s3437_s0 + $0x3a0] ss:$8 sps:$4 sm:$0xff]   ;;  %v2514_v45 = vld [vmem:[%s3437_s0 + $0x174] ss:$8 sps:$4 sm:$0xff]  }
  0x73   :  { %v2517_v46 = vld [vmem:[%s3437_s0 + $0x3b4] ss:$8 sps:$4 sm:$0xff]  }
  0x79   :  { %1096 = vmatmul.mubr.bf16.gmra.mrb[28].mxu0 %v2420_v47  ;;  %1384 = vmatmul.mubr.bf16.gmra.mrb[28].mxu1 %v2423_v48  ;;  %v2516_v47 = vld [vmem:[%s3437_s0 + $0x170] ss:$8 sps:$4 sm:$0xff]  }
  0x7a   :  { %1103 = vmatprep.mubr.bf16.mxu0 %v2424_v49  ;;  %1391 = vmatprep.mubr.bf16.mxu1 %v2427_v50  ;;  %v2519_v48 = vld [vmem:[%s3437_s0 + $0x3b0] ss:$8 sps:$4 sm:$0xff]   ;;  %v2520_v49 = vld [vmem:[%s3437_s0 + $0x184] ss:$8 sps:$4 sm:$0xff]  }
  0x7b   :  { %v2523_v50 = vld [vmem:[%s3437_s0 + $0x3c4] ss:$8 sps:$4 sm:$0xff]  }
  0x81   :  { %1104 = vmatmul.mubr.bf16.gmra.mrb[32].mxu0 %v2426_v51  ;;  %1392 = vmatmul.mubr.bf16.gmra.mrb[32].mxu1 %v2429_v52  ;;  %v2522_v51 = vld [vmem:[%s3437_s0 + $0x180] ss:$8 sps:$4 sm:$0xff]  }
  0x82   :  { %1111 = vmatprep.mubr.bf16.mxu0 %v2430_v53  ;;  %1399 = vmatprep.mubr.bf16.mxu1 %v2433_v54  ;;  %v2525_v52 = vld [vmem:[%s3437_s0 + $0x3c0] ss:$8 sps:$4 sm:$0xff]   ;;  %v2526_v53 = vld [vmem:[%s3437_s0 + $0x194] ss:$8 sps:$4 sm:$0xff]  }
  0x83   :  { %v2529_v54 = vld [vmem:[%s3437_s0 + $0x3d4] ss:$8 sps:$4 sm:$0xff]  }
  0x89   :  { %1112 = vmatmul.mubr.bf16.gmra.mrb[36].mxu0 %v2432_v55  ;;  %1400 = vmatmul.mubr.bf16.gmra.mrb[36].mxu1 %v2435_v56  ;;  %v2528_v55 = vld [vmem:[%s3437_s0 + $0x190] ss:$8 sps:$4 sm:$0xff]  }
  0x8a   :  { %1119 = vmatprep.mubr.bf16.mxu0 %v2436_v57  ;;  %1407 = vmatprep.mubr.bf16.mxu1 %v2439_v58  ;;  %v2531_v56 = vld [vmem:[%s3437_s0 + $0x3d0] ss:$8 sps:$4 sm:$0xff]   ;;  %v2532_v57 = vld [vmem:[%s3437_s0 + $0x1a4] ss:$8 sps:$4 sm:$0xff]  }
  0x8b   :  { %v2535_v58 = vld [vmem:[%s3437_s0 + $0x3e4] ss:$8 sps:$4 sm:$0xff]  }
  0x91   :  { %1120 = vmatmul.mubr.bf16.gmra.mrb[40].mxu0 %v2438_v59  ;;  %1408 = vmatmul.mubr.bf16.gmra.mrb[40].mxu1 %v2441_v60  ;;  %v2534_v59 = vld [vmem:[%s3437_s0 + $0x1a0] ss:$8 sps:$4 sm:$0xff]  }
  0x92   :  { %1127 = vmatprep.mubr.bf16.mxu0 %v2442_v61  ;;  %1415 = vmatprep.mubr.bf16.mxu1 %v2445_v62  ;;  %v2537_v60 = vld [vmem:[%s3437_s0 + $0x3e0] ss:$8 sps:$4 sm:$0xff]   ;;  %v2538_v61 = vld [vmem:[%s3437_s0 + $0x1b4] ss:$8 sps:$4 sm:$0xff]  }
  0x93   :  { %v2541_v62 = vld [vmem:[%s3437_s0 + $0x3f4] ss:$8 sps:$4 sm:$0xff]  }
  0x99   :  { %1128 = vmatmul.mubr.bf16.gmra.mrb[44].mxu0 %v2444_v63  ;;  %1416 = vmatmul.mubr.bf16.gmra.mrb[44].mxu1 %v2447_v0 }
  0x9a   :  { %1135 = vmatprep.mubr.bf16.mxu0 %v2448_v1  ;;  %1423 = vmatprep.mubr.bf16.mxu1 %v2451_v2 }
  0xa1   :  { %1136 = vmatmul.mubr.bf16.gmra.mrb[48].mxu0 %v2450_v3  ;;  %1424 = vmatmul.mubr.bf16.gmra.mrb[48].mxu1 %v2453_v4  ;;  %v2540_v3 = vld [vmem:[%s3437_s0 + $0x1b0] ss:$8 sps:$4 sm:$0xff]  }
  0xa2   :  { %1143 = vmatprep.mubr.bf16.mxu0 %v2454_v5  ;;  %1431 = vmatprep.mubr.bf16.mxu1 %v2457_v6  ;;  %v2543_v4 = vld [vmem:[%s3437_s0 + $0x3f0] ss:$8 sps:$4 sm:$0xff]  }
  0xa9   :  { %1144 = vmatmul.mubr.bf16.gmra.mrb[52].mxu0 %v2456_v7  ;;  %1432 = vmatmul.mubr.bf16.gmra.mrb[52].mxu1 %v2459_v8  ;;  %v2544_v7 = vld [vmem:[%s3437_s0 + $0x1c4] ss:$8 sps:$4 sm:$0xff]  }
  0xaa   :  { %1151 = vmatprep.mubr.bf16.mxu0 %v2460_v9  ;;  %1439 = vmatprep.mubr.bf16.mxu1 %v2463_v10  ;;  %v2547_v8 = vld [vmem:[%s3437_s0 + $0x404] ss:$8 sps:$4 sm:$0xff]  }
  0xb1   :  { %1152 = vmatmul.mubr.bf16.gmra.mrb[56].mxu0 %v2462_v11  ;;  %1440 = vmatmul.mubr.bf16.gmra.mrb[56].mxu1 %v2465_v12 }
  0xb2   :  { %1159 = vmatprep.mubr.bf16.mxu0 %v2466_v13  ;;  %1447 = vmatprep.mubr.bf16.mxu1 %v2469_v14 }
  0xb9   :  { %1160 = vmatmul.mubr.bf16.gmra.mrb[60].mxu0 %v2468_v15  ;;  %1448 = vmatmul.mubr.bf16.gmra.mrb[60].mxu1 %v2471_v16  ;;  %v2546_v15 = vld [vmem:[%s3437_s0 + $0x1c0] ss:$8 sps:$4 sm:$0xff]  }
  0xba   :  { %1167 = vmatprep.mubr.bf16.mxu0 %v2472_v17  ;;  %1455 = vmatprep.mubr.bf16.mxu1 %v2475_v18  ;;  %v2549_v16 = vld [vmem:[%s3437_s0 + $0x400] ss:$8 sps:$4 sm:$0xff]  }
  0xc1   :  { %1168 = vmatmul.mubr.bf16.gmra.mrb[64].mxu0 %v2474_v19  ;;  %1456 = vmatmul.mubr.bf16.gmra.mrb[64].mxu1 %v2477_v20  ;;  %v2550_v19 = vld [vmem:[%s3437_s0 + $0x1d4] ss:$8 sps:$4 sm:$0xff]  }
  0xc2   :  { %1175 = vmatprep.mubr.bf16.mxu0 %v2478_v21  ;;  %1463 = vmatprep.mubr.bf16.mxu1 %v2481_v22  ;;  %v2553_v20 = vld [vmem:[%s3437_s0 + $0x414] ss:$8 sps:$4 sm:$0xff]  }
  0xc9   :  { %1176 = vmatmul.mubr.bf16.gmra.mrb[68].mxu0 %v2480_v23  ;;  %1464 = vmatmul.mubr.bf16.gmra.mrb[68].mxu1 %v2483_v24 }
  0xca   :  { %1183 = vmatprep.mubr.bf16.mxu0 %v2484_v25  ;;  %1471 = vmatprep.mubr.bf16.mxu1 %v2487_v26 }
  0xd1   :  { %1184 = vmatmul.mubr.bf16.gmra.mrb[72].mxu0 %v2486_v27  ;;  %1472 = vmatmul.mubr.bf16.gmra.mrb[72].mxu1 %v2489_v28  ;;  %v2552_v27 = vld [vmem:[%s3437_s0 + $0x1d0] ss:$8 sps:$4 sm:$0xff]  }
  0xd2   :  { %1191 = vmatprep.mubr.bf16.mxu0 %v2490_v29  ;;  %1479 = vmatprep.mubr.bf16.mxu1 %v2493_v30  ;;  %v2555_v28 = vld [vmem:[%s3437_s0 + $0x410] ss:$8 sps:$4 sm:$0xff]  }
  0xd9   :  { %1192 = vmatmul.mubr.bf16.gmra.mrb[76].mxu0 %v2492_v31  ;;  %1480 = vmatmul.mubr.bf16.gmra.mrb[76].mxu1 %v2495_v32  ;;  %v2556_v31 = vld [vmem:[%s3437_s0 + $0x1e4] ss:$8 sps:$4 sm:$0xff]  }
  0xda   :  { %1199 = vmatprep.mubr.bf16.mxu0 %v2496_v33  ;;  %1487 = vmatprep.mubr.bf16.mxu1 %v2499_v34  ;;  %v2559_v32 = vld [vmem:[%s3437_s0 + $0x424] ss:$8 sps:$4 sm:$0xff]  }
  0xe1   :  { %1200 = vmatmul.mubr.bf16.gmra.mrb[80].mxu0 %v2498_v35  ;;  %1488 = vmatmul.mubr.bf16.gmra.mrb[80].mxu1 %v2501_v36 }
  0xe2   :  { %1207 = vmatprep.mubr.bf16.mxu0 %v2502_v37  ;;  %1495 = vmatprep.mubr.bf16.mxu1 %v2505_v38 }
  0xe9   :  { %1208 = vmatmul.mubr.bf16.gmra.mrb[84].mxu0 %v2504_v39  ;;  %1496 = vmatmul.mubr.bf16.gmra.mrb[84].mxu1 %v2507_v40  ;;  %v2558_v39 = vld [vmem:[%s3437_s0 + $0x1e0] ss:$8 sps:$4 sm:$0xff]  }
  0xea   :  { %1215 = vmatprep.mubr.bf16.mxu0 %v2508_v41  ;;  %1503 = vmatprep.mubr.bf16.mxu1 %v2511_v42  ;;  %v2561_v40 = vld [vmem:[%s3437_s0 + $0x420] ss:$8 sps:$4 sm:$0xff]  }
  0xf1   :  { %1216 = vmatmul.mubr.bf16.gmra.mrb[88].mxu0 %v2510_v43  ;;  %1504 = vmatmul.mubr.bf16.gmra.mrb[88].mxu1 %v2513_v44  ;;  %v2562_v43 = vld [vmem:[%s3437_s0 + $0x1f4] ss:$8 sps:$4 sm:$0xff]  }
  0xf2   :  { %1223 = vmatprep.mubr.bf16.mxu0 %v2514_v45  ;;  %1511 = vmatprep.mubr.bf16.mxu1 %v2517_v46  ;;  %v2565_v44 = vld [vmem:[%s3437_s0 + $0x434] ss:$8 sps:$4 sm:$0xff]  }
  0xf9   :  { %1224 = vmatmul.mubr.bf16.gmra.mrb[92].mxu0 %v2516_v47  ;;  %1512 = vmatmul.mubr.bf16.gmra.mrb[92].mxu1 %v2519_v48 }
  0xfa   :  { %1231 = vmatprep.mubr.bf16.mxu0 %v2520_v49  ;;  %1519 = vmatprep.mubr.bf16.mxu1 %v2523_v50 }
 0x101   :  { %1232 = vmatmul.mubr.bf16.gmra.mrb[96].mxu0 %v2522_v51  ;;  %1520 = vmatmul.mubr.bf16.gmra.mrb[96].mxu1 %v2525_v52  ;;  %v2564_v51 = vld [vmem:[%s3437_s0 + $0x1f0] ss:$8 sps:$4 sm:$0xff]  }
 0x102   :  { %1239 = vmatprep.mubr.bf16.mxu0 %v2526_v53  ;;  %1527 = vmatprep.mubr.bf16.mxu1 %v2529_v54  ;;  %v2567_v52 = vld [vmem:[%s3437_s0 + $0x430] ss:$8 sps:$4 sm:$0xff]  }
 0x109   :  { %1240 = vmatmul.mubr.bf16.gmra.mrb[100].mxu0 %v2528_v55  ;;  %1528 = vmatmul.mubr.bf16.gmra.mrb[100].mxu1 %v2531_v56  ;;  %v2568_v55 = vld [vmem:[%s3437_s0 + $0x204] ss:$8 sps:$4 sm:$0xff]  }
 0x10a   :  { %1247 = vmatprep.mubr.bf16.mxu0 %v2532_v57  ;;  %1535 = vmatprep.mubr.bf16.mxu1 %v2535_v58  ;;  %v2571_v56 = vld [vmem:[%s3437_s0 + $0x444] ss:$8 sps:$4 sm:$0xff]  }
 0x111   :  { %1248 = vmatmul.mubr.bf16.gmra.mrb[104].mxu0 %v2534_v59  ;;  %1536 = vmatmul.mubr.bf16.gmra.mrb[104].mxu1 %v2537_v60 }
 0x112   :  { %1255 = vmatprep.mubr.bf16.mxu0 %v2538_v61  ;;  %1543 = vmatprep.mubr.bf16.mxu1 %v2541_v62 }
 0x114   :  { %v3023_v63 = vpop.f32.mrb[0].mxu0  ;;  %v3025_v0 = vpop.f32.mrb[0].mxu1 }
 0x115   :  { %v1043_v1 = vpop.f32.mrb[1].mxu0  ;;  %v1331_v2 = vpop.f32.mrb[1].mxu1 }
 0x116   :  { %v3033_v5 = vpop.f32.mrb[2].mxu0  ;;  %v3035_v6 = vpop.f32.mrb[2].mxu1  ;;  %v2570_v1 = vld [vmem:[%s3437_s0 + $0x200] ss:$8 sps:$4 sm:$0xff]  }
 0x117   :  { %v1046_v9 = vpop.f32.mrb[3].mxu0  ;;  %v1334_v10 = vpop.f32.mrb[3].mxu1  ;;  %v2573_v2 = vld [vmem:[%s3437_s0 + $0x440] ss:$8 sps:$4 sm:$0xff]  }
 0x119   :  { %1256 = vmatmul.mubr.bf16.gmra.mrb[108].mxu0 %v2540_v3  ;;  %1544 = vmatmul.mubr.bf16.gmra.mrb[108].mxu1 %v2543_v4 }
 0x11a   :  { %1263 = vmatprep.mubr.bf16.mxu0 %v2544_v7  ;;  %1551 = vmatprep.mubr.bf16.mxu1 %v2547_v8  ;;  %v2574_v7 = vld [vmem:[%s3437_s0 + $0x214] ss:$8 sps:$4 sm:$0xff]  }
 0x11b   :  { %v2577_v8 = vld [vmem:[%s3437_s0 + $0x454] ss:$8 sps:$4 sm:$0xff]  }
 0x11c   :  { %v3043_v11 = vpop.f32.mrb[4].mxu0  ;;  %v3045_v12 = vpop.f32.mrb[4].mxu1 }
 0x11d   :  { %v1051_v13 = vpop.f32.mrb[5].mxu0  ;;  %v1339_v14 = vpop.f32.mrb[5].mxu1 }
 0x11e   :  { %v3053_v17 = vpop.f32.mrb[6].mxu0  ;;  %v3055_v18 = vpop.f32.mrb[6].mxu1 }
 0x11f   :  { %v1054_v21 = vpop.f32.mrb[7].mxu0  ;;  %v1342_v22 = vpop.f32.mrb[7].mxu1 }
 0x121   :  { %1264 = vmatmul.mubr.bf16.gmra.mrb[112].mxu0 %v2546_v15  ;;  %1552 = vmatmul.mubr.bf16.gmra.mrb[112].mxu1 %v2549_v16 }
 0x122   :  { %1271 = vmatprep.mubr.bf16.mxu0 %v2550_v19  ;;  %1559 = vmatprep.mubr.bf16.mxu1 %v2553_v20  ;;  %v2576_v19 = vld [vmem:[%s3437_s0 + $0x210] ss:$8 sps:$4 sm:$0xff]  }
 0x123   :  { %v2579_v20 = vld [vmem:[%s3437_s0 + $0x450] ss:$8 sps:$4 sm:$0xff]  }
 0x124   :  { %v3063_v23 = vpop.f32.mrb[8].mxu0  ;;  %v3065_v24 = vpop.f32.mrb[8].mxu1 }
 0x125   :  { %v1059_v25 = vpop.f32.mrb[9].mxu0  ;;  %v1347_v26 = vpop.f32.mrb[9].mxu1 }
 0x126   :  { %v3073_v29 = vpop.f32.mrb[10].mxu0  ;;  %v3075_v30 = vpop.f32.mrb[10].mxu1  ;;  %v2580_v25 = vld [vmem:[%s3437_s0 + $0x224] ss:$8 sps:$4 sm:$0xff]  }
 0x127   :  { %v1062_v33 = vpop.f32.mrb[11].mxu0  ;;  %v1350_v34 = vpop.f32.mrb[11].mxu1  ;;  %v2583_v26 = vld [vmem:[%s3437_s0 + $0x464] ss:$8 sps:$4 sm:$0xff]  }
 0x129   :  { %1272 = vmatmul.mubr.bf16.gmra.mrb[116].mxu0 %v2552_v27  ;;  %1560 = vmatmul.mubr.bf16.gmra.mrb[116].mxu1 %v2555_v28 }
 0x12a   :  { %1279 = vmatprep.mubr.bf16.mxu0 %v2556_v31  ;;  %1567 = vmatprep.mubr.bf16.mxu1 %v2559_v32 }
 0x12c   :  { %v3083_v35 = vpop.f32.mrb[12].mxu0  ;;  %v3085_v36 = vpop.f32.mrb[12].mxu1 }
 0x12d   :  { %v1067_v37 = vpop.f32.mrb[13].mxu0  ;;  %v1355_v38 = vpop.f32.mrb[13].mxu1 }
 0x12e   :  { %v3093_v41 = vpop.f32.mrb[14].mxu0  ;;  %v3095_v42 = vpop.f32.mrb[14].mxu1  ;;  %v2582_v37 = vld [vmem:[%s3437_s0 + $0x220] ss:$8 sps:$4 sm:$0xff]  }
 0x12f   :  { %v1070_v45 = vpop.f32.mrb[15].mxu0  ;;  %v1358_v46 = vpop.f32.mrb[15].mxu1  ;;  %v2585_v38 = vld [vmem:[%s3437_s0 + $0x460] ss:$8 sps:$4 sm:$0xff]  }
 0x131   :  { %1280 = vmatmul.mubr.bf16.gmra.mrb[120].mxu0 %v2558_v39  ;;  %1568 = vmatmul.mubr.bf16.gmra.mrb[120].mxu1 %v2561_v40 }
 0x132   :  { %1287 = vmatprep.mubr.bf16.mxu0 %v2562_v43  ;;  %1575 = vmatprep.mubr.bf16.mxu1 %v2565_v44  ;;  %v2586_v43 = vld [vmem:[%s3437_s0 + $0x234] ss:$8 sps:$4 sm:$0xff]  }
 0x133   :  { %v2589_v44 = vld [vmem:[%s3437_s0 + $0x474] ss:$8 sps:$4 sm:$0xff]  }
 0x134   :  { %v3103_v47 = vpop.f32.mrb[16].mxu0  ;;  %v3105_v48 = vpop.f32.mrb[16].mxu1 }
 0x135   :  { %v1075_v49 = vpop.f32.mrb[17].mxu0  ;;  %v1363_v50 = vpop.f32.mrb[17].mxu1 }
 0x136   :  { %v3113_v53 = vpop.f32.mrb[18].mxu0  ;;  %v3115_v54 = vpop.f32.mrb[18].mxu1 }
 0x137   :  { %v1078_v57 = vpop.f32.mrb[19].mxu0  ;;  %v1366_v58 = vpop.f32.mrb[19].mxu1 }
 0x139   :  { %1288 = vmatmul.mubr.bf16.gmra.mrb[124].mxu0 %v2564_v51  ;;  %1576 = vmatmul.mubr.bf16.gmra.mrb[124].mxu1 %v2567_v52 }
 0x13a   :  { %1295 = vmatprep.mubr.bf16.mxu0 %v2568_v55  ;;  %1583 = vmatprep.mubr.bf16.mxu1 %v2571_v56  ;;  %v2588_v55 = vld [vmem:[%s3437_s0 + $0x230] ss:$8 sps:$4 sm:$0xff]  }
 0x13b   :  { %v2591_v56 = vld [vmem:[%s3437_s0 + $0x470] ss:$8 sps:$4 sm:$0xff]  }
 0x13c   :  { %v3123_v59 = vpop.f32.mrb[20].mxu0  ;;  %v3125_v60 = vpop.f32.mrb[20].mxu1 }
 0x13d   :  { %v1083_v61 = vpop.f32.mrb[21].mxu0  ;;  %v1371_v62 = vpop.f32.mrb[21].mxu1 }
 0x13e   :  { %v3133_v3 = vpop.f32.mrb[22].mxu0  ;;  %v3135_v4 = vpop.f32.mrb[22].mxu1 }
 0x13f   :  { %v1086_v9 = vpop.f32.mrb[23].mxu0  ;;  %v1374_v10 = vpop.f32.mrb[23].mxu1 }
 0x141   :  { %1296 = vmatmul.mubr.bf16.gmra.mrb[128].mxu0 %v2570_v1  ;;  %1584 = vmatmul.mubr.bf16.gmra.mrb[128].mxu1 %v2573_v2 }
 0x142   :  { %1303 = vmatprep.mubr.bf16.mxu0 %v2574_v7  ;;  %1591 = vmatprep.mubr.bf16.mxu1 %v2577_v8 }
 0x144   :  { %v3143_v13 = vpop.f32.mrb[24].mxu0  ;;  %v3145_v14 = vpop.f32.mrb[24].mxu1 }
 0x145   :  { %v1091_v15 = vpop.f32.mrb[25].mxu0  ;;  %v1379_v16 = vpop.f32.mrb[25].mxu1 }
 0x146   :  { %v3153_v21 = vpop.f32.mrb[26].mxu0  ;;  %v3155_v22 = vpop.f32.mrb[26].mxu1 }
 0x147   :  { %v1094_v27 = vpop.f32.mrb[27].mxu0  ;;  %v1382_v28 = vpop.f32.mrb[27].mxu1 }
 0x149   :  { %1304 = vmatmul.mubr.bf16.gmra.mrb[132].mxu0 %v2576_v19  ;;  %1592 = vmatmul.mubr.bf16.gmra.mrb[132].mxu1 %v2579_v20 }
 0x14a   :  { %1311 = vmatprep.mubr.bf16.mxu0 %v2580_v25  ;;  %1599 = vmatprep.mubr.bf16.mxu1 %v2583_v26 }
 0x14c   :  { %v3163_v31 = vpop.f32.mrb[28].mxu0  ;;  %v3165_v32 = vpop.f32.mrb[28].mxu1 }
 0x14d   :  { %v1099_v33 = vpop.f32.mrb[29].mxu0  ;;  %v1387_v34 = vpop.f32.mrb[29].mxu1 }
 0x14e   :  { %v3173_v39 = vpop.f32.mrb[30].mxu0  ;;  %v3175_v40 = vpop.f32.mrb[30].mxu1 }
 0x14f   :  { %v1102_v45 = vpop.f32.mrb[31].mxu0  ;;  %v1390_v46 = vpop.f32.mrb[31].mxu1 }
 0x151   :  { %1312 = vmatmul.mubr.bf16.gmra.mrb[136].mxu0 %v2582_v37  ;;  %1600 = vmatmul.mubr.bf16.gmra.mrb[136].mxu1 %v2585_v38 }
 0x152   :  { %1319 = vmatprep.mubr.bf16.mxu0 %v2586_v43  ;;  %1607 = vmatprep.mubr.bf16.mxu1 %v2589_v44 }
 0x154   :  { %v3183_v49 = vpop.f32.mrb[32].mxu0  ;;  %v3185_v50 = vpop.f32.mrb[32].mxu1 }
 0x155   :  { %v1107_v51 = vpop.f32.mrb[33].mxu0  ;;  %v1395_v52 = vpop.f32.mrb[33].mxu1 }
 0x156   :  { %v3193_v57 = vpop.f32.mrb[34].mxu0  ;;  %v3195_v58 = vpop.f32.mrb[34].mxu1 }
 0x157   :  { %v1110_v61 = vpop.f32.mrb[35].mxu0  ;;  %v1398_v62 = vpop.f32.mrb[35].mxu1 }
 0x159   :  { %1320 = vmatmul.mubr.bf16.gmra.mrb[140].mxu0 %v2588_v55  ;;  %1608 = vmatmul.mubr.bf16.gmra.mrb[140].mxu1 %v2591_v56 }
 0x15c   :  { %v3197_v1 = vpop.f32.mrb[36].mxu0  ;;  %v3199_v2 = vpop.f32.mrb[36].mxu1 }
 0x15d   :  { %v1115_v7 = vpop.f32.mrb[37].mxu0  ;;  %v1403_v8 = vpop.f32.mrb[37].mxu1 }
 0x15e   :  { %v3201_v9 = vpop.f32.mrb[38].mxu0  ;;  %v3203_v10 = vpop.f32.mrb[38].mxu1 }
 0x15f   :  { %v1118_v15 = vpop.f32.mrb[39].mxu0  ;;  %v1406_v16 = vpop.f32.mrb[39].mxu1 }
 0x164   :  { %v3205_v19 = vpop.f32.mrb[40].mxu0  ;;  %v3207_v20 = vpop.f32.mrb[40].mxu1 }
 0x165   :  { %v1123_v25 = vpop.f32.mrb[41].mxu0  ;;  %v1411_v26 = vpop.f32.mrb[41].mxu1 }
 0x166   :  { %v3209_v27 = vpop.f32.mrb[42].mxu0  ;;  %v3211_v28 = vpop.f32.mrb[42].mxu1 }
 0x167   :  { %v1126_v33 = vpop.f32.mrb[43].mxu0  ;;  %v1414_v34 = vpop.f32.mrb[43].mxu1 }
 0x16c   :  { %v3213_v37 = vpop.f32.mrb[44].mxu0  ;;  %v3215_v38 = vpop.f32.mrb[44].mxu1 }
 0x16d   :  { %v1131_v43 = vpop.f32.mrb[45].mxu0  ;;  %v1419_v44 = vpop.f32.mrb[45].mxu1 }
 0x16e   :  { %v3217_v45 = vpop.f32.mrb[46].mxu0  ;;  %v3219_v46 = vpop.f32.mrb[46].mxu1 }
 0x16f   :  { %3440 = vst [vmem:[#allocation2_spill] sm:$0xff] %v3219_v46  ;;  %v1134_v51 = vpop.f32.mrb[47].mxu0  ;;  %v1422_v52 = vpop.f32.mrb[47].mxu1 }
 0x174   :  { %v3221_v55 = vpop.f32.mrb[48].mxu0  ;;  %v3223_v56 = vpop.f32.mrb[48].mxu1 }
 0x175   :  { %3441 = vst [vmem:[#allocation3_spill] sm:$0xff] %v3221_v55  ;;  %3442 = vst [vmem:[#allocation4_spill] sm:$0xff] %v3223_v56  ;;  %v1139_v61 = vpop.f32.mrb[49].mxu0  ;;  %v1427_v62 = vpop.f32.mrb[49].mxu1 }
 0x176   :  { %v3225_v7 = vpop.f32.mrb[50].mxu0  ;;  %v3227_v8 = vpop.f32.mrb[50].mxu1 }
 0x177   :  { %3443 = vst [vmem:[#allocation5_spill] sm:$0xff] %v3225_v7  ;;  %3444 = vst [vmem:[#allocation6_spill] sm:$0xff] %v3227_v8  ;;  %v1142_v15 = vpop.f32.mrb[51].mxu0  ;;  %v1430_v16 = vpop.f32.mrb[51].mxu1 }
 0x17c   :  { %v3229_v25 = vpop.f32.mrb[52].mxu0  ;;  %v3231_v26 = vpop.f32.mrb[52].mxu1 }
 0x17d   :  { %3445 = vst [vmem:[#allocation7_spill] sm:$0xff] %v3229_v25  ;;  %3446 = vst [vmem:[#allocation8_spill] sm:$0xff] %v3231_v26  ;;  %v1147_v33 = vpop.f32.mrb[53].mxu0  ;;  %v1435_v34 = vpop.f32.mrb[53].mxu1 }
 0x17e   :  { %v3233_v43 = vpop.f32.mrb[54].mxu0  ;;  %v3235_v44 = vpop.f32.mrb[54].mxu1 }
 0x17f   :  { %3447 = vst [vmem:[#allocation9_spill] sm:$0xff] %v3233_v43  ;;  %3448 = vst [vmem:[#allocation10_spill] sm:$0xff] %v3235_v44  ;;  %v1150_v51 = vpop.f32.mrb[55].mxu0  ;;  %v1438_v52 = vpop.f32.mrb[55].mxu1 }
 0x184   :  { %v3237_v61 = vpop.f32.mrb[56].mxu0  ;;  %v3239_v62 = vpop.f32.mrb[56].mxu1 }
 0x185   :  { %3449 = vst [vmem:[#allocation11_spill] sm:$0xff] %v3237_v61  ;;  %3450 = vst [vmem:[#allocation12_spill] sm:$0xff] %v3239_v62  ;;  %v1155_v7 = vpop.f32.mrb[57].mxu0  ;;  %v1443_v8 = vpop.f32.mrb[57].mxu1 }
 0x186   :  { %v3241_v15 = vpop.f32.mrb[58].mxu0  ;;  %v3243_v16 = vpop.f32.mrb[58].mxu1 }
 0x187   :  { %3451 = vst [vmem:[#allocation13_spill] sm:$0xff] %v3241_v15  ;;  %3452 = vst [vmem:[#allocation14_spill] sm:$0xff] %v3243_v16  ;;  %v1158_v25 = vpop.f32.mrb[59].mxu0  ;;  %v1446_v26 = vpop.f32.mrb[59].mxu1 }
 0x18c   :  { %v3245_v33 = vpop.f32.mrb[60].mxu0  ;;  %v3247_v34 = vpop.f32.mrb[60].mxu1 }
 0x18d   :  { %3453 = vst [vmem:[#allocation15_spill] sm:$0xff] %v3245_v33  ;;  %3454 = vst [vmem:[#allocation16_spill] sm:$0xff] %v3247_v34  ;;  %v1163_v43 = vpop.f32.mrb[61].mxu0  ;;  %v1451_v44 = vpop.f32.mrb[61].mxu1 }
 0x18e   :  { %v3249_v51 = vpop.f32.mrb[62].mxu0  ;;  %v3251_v52 = vpop.f32.mrb[62].mxu1 }
 0x18f   :  { %3455 = vst [vmem:[#allocation17_spill] sm:$0xff] %v3249_v51  ;;  %3456 = vst [vmem:[#allocation18_spill] sm:$0xff] %v3251_v52  ;;  %v1166_v61 = vpop.f32.mrb[63].mxu0  ;;  %v1454_v62 = vpop.f32.mrb[63].mxu1 }
 0x194   :  { %v3253_v7 = vpop.f32.mrb[64].mxu0  ;;  %v3255_v8 = vpop.f32.mrb[64].mxu1 }
 0x195   :  { %3457 = vst [vmem:[#allocation19_spill] sm:$0xff] %v3253_v7  ;;  %3458 = vst [vmem:[#allocation20_spill] sm:$0xff] %v3255_v8  ;;  %v1171_v15 = vpop.f32.mrb[65].mxu0  ;;  %v1459_v16 = vpop.f32.mrb[65].mxu1 }
 0x196   :  { %v3257_v25 = vpop.f32.mrb[66].mxu0  ;;  %v3259_v26 = vpop.f32.mrb[66].mxu1 }
 0x197   :  { %3459 = vst [vmem:[#allocation21_spill] sm:$0xff] %v3257_v25  ;;  %3460 = vst [vmem:[#allocation22_spill] sm:$0xff] %v3259_v26  ;;  %v1174_v33 = vpop.f32.mrb[67].mxu0  ;;  %v1462_v34 = vpop.f32.mrb[67].mxu1 }
 0x19c   :  { %v3261_v43 = vpop.f32.mrb[68].mxu0  ;;  %v3263_v44 = vpop.f32.mrb[68].mxu1 }
 0x19d   :  { %3461 = vst [vmem:[#allocation23_spill] sm:$0xff] %v3261_v43  ;;  %3462 = vst [vmem:[#allocation24_spill] sm:$0xff] %v3263_v44  ;;  %v1179_v51 = vpop.f32.mrb[69].mxu0  ;;  %v1467_v52 = vpop.f32.mrb[69].mxu1 }
 0x19e   :  { %v3265_v61 = vpop.f32.mrb[70].mxu0  ;;  %v3267_v62 = vpop.f32.mrb[70].mxu1 }
 0x19f   :  { %3463 = vst [vmem:[#allocation25_spill] sm:$0xff] %v3265_v61  ;;  %3464 = vst [vmem:[#allocation26_spill] sm:$0xff] %v3267_v62  ;;  %v1182_v7 = vpop.f32.mrb[71].mxu0  ;;  %v1470_v8 = vpop.f32.mrb[71].mxu1  ;;  %v3275_v62 = vld [vmem:[%s3438_s2] ss:$0 sm:$0xff] }
 0x1a4   :  { %v1185_v15 = vpop.f32.mrb[72].mxu0  ;;  %v1473_v16 = vpop.f32.mrb[72].mxu1 }
 0x1a5   :  { %v1616_v25 = vmax.f32 %v3023_v63, %v1185_v15  ;;  %v1187_v56 = vpop.f32.mrb[73].mxu0  ;;  %v1475_v26 = vpop.f32.mrb[73].mxu1 }
 0x1a6   :  { %v1188_v33 = vpop.f32.mrb[74].mxu0  ;;  %v1476_v34 = vpop.f32.mrb[74].mxu1 }
 0x1a7   :  { %v1617_v43 = vmax.f32 %v1616_v25, %v3025_v0  ;;  %v1619_v44 = vmax.f32 %v3033_v5, %v1188_v33  ;;  %v1190_v51 = vpop.f32.mrb[75].mxu0  ;;  %v1478_v52 = vpop.f32.mrb[75].mxu1 }
 0x1a9   :  { %v1618_v7 = vmax.f32 %v1617_v43, %v1473_v16  ;;  %v1620_v8 = vmax.f32 %v1619_v44, %v3035_v6 }
 0x1ab   :  { %v1731_v63 = vadd.f32 %v3275_v62, %v1618_v7  ;;  %v1621_v56 = vmax.f32 %v1620_v8, %v1476_v34 }
 0x1ac   :  { %v1193_v26 = vpop.f32.mrb[76].mxu0  ;;  %v1481_v15 = vpop.f32.mrb[76].mxu1 }
 0x1ad   :  { %v1732_v61 = vadd.f32 %v3275_v62, %v1621_v56  ;;  %v1622_v0 = vmax.f32 %v3043_v11, %v1193_v26  ;;  %v1195_v5 = vpop.f32.mrb[77].mxu0  ;;  %v1483_v25 = vpop.f32.mrb[77].mxu1  ;;  %v1767_v52 = vmax.f32 %v1731_v63, 0.0 }
 0x1ae   :  { %v1196_v33 = vpop.f32.mrb[78].mxu0  ;;  %v1484_v51 = vpop.f32.mrb[78].mxu1 }
 0x1af   :  { %v1768_v55 = vmax.f32 %v1732_v61, 0.0  ;;  %v1623_v46 = vmax.f32 %v1622_v0, %v3045_v12  ;;  %v1625_v43 = vmax.f32 %v3053_v17, %v1196_v33  ;;  %v1198_v6 = vpop.f32.mrb[79].mxu0  ;;  %v1486_v44 = vpop.f32.mrb[79].mxu1 }
 0x1b1   :  { %v2223_v16 = vpack.c.bf16 %v1768_v55, %v1767_v52  ;;  %v1624_v34 = vmax.f32 %v1623_v46, %v1481_v15  ;;  %v1626_v7 = vmax.f32 %v1625_v43, %v3055_v18 }
 0x1b3   :  { %2224 = vst [vmem:[%s3439_s3] sm:$0xff] %v2223_v16   ;;  %v1733_v11 = vadd.f32 %v3275_v62, %v1624_v34  ;;  %v1627_v8 = vmax.f32 %v1626_v7, %v1484_v51 }
 0x1b4   :  { %v1201_v56 = vpop.f32.mrb[80].mxu0  ;;  %v1489_v63 = vpop.f32.mrb[80].mxu1 }
 0x1b5   :  { %v1734_v61 = vadd.f32 %v3275_v62, %v1627_v8  ;;  %v1628_v12 = vmax.f32 %v3063_v23, %v1201_v56  ;;  %v1203_v17 = vpop.f32.mrb[81].mxu0  ;;  %v1491_v26 = vpop.f32.mrb[81].mxu1  ;;  %v1769_v46 = vmax.f32 %v1733_v11, 0.0 }
 0x1b6   :  { %v1204_v0 = vpop.f32.mrb[82].mxu0  ;;  %v1492_v55 = vpop.f32.mrb[82].mxu1 }
 0x1b7   :  { %v1770_v15 = vmax.f32 %v1734_v61, 0.0  ;;  %v1629_v18 = vmax.f32 %v1628_v12, %v3065_v24  ;;  %v1631_v5 = vmax.f32 %v3073_v29, %v1204_v0  ;;  %v1206_v25 = vpop.f32.mrb[83].mxu0  ;;  %v1494_v33 = vpop.f32.mrb[83].mxu1 }
 0x1b9   :  { %v2228_v52 = vpack.c.bf16 %v1770_v15, %v1769_v46  ;;  %v1630_v51 = vmax.f32 %v1629_v18, %v1489_v63  ;;  %v1632_v43 = vmax.f32 %v1631_v5, %v3075_v30 }
 0x1bb   :  { %2310 = vst [vmem:[%s3439_s3 + $0x8] sm:$0xff] %v2228_v52   ;;  %v1735_v23 = vadd.f32 %v3275_v62, %v1630_v51  ;;  %v1633_v6 = vmax.f32 %v1632_v43, %v1492_v55 }
 0x1bc   :  { %v1209_v44 = vpop.f32.mrb[84].mxu0  ;;  %v1497_v16 = vpop.f32.mrb[84].mxu1 }
 0x1bd   :  { %v1736_v34 = vadd.f32 %v3275_v62, %v1633_v6  ;;  %v1634_v24 = vmax.f32 %v3083_v35, %v1209_v44  ;;  %v1211_v29 = vpop.f32.mrb[85].mxu0  ;;  %v1499_v7 = vpop.f32.mrb[85].mxu1  ;;  %v1771_v56 = vmax.f32 %v1735_v23, 0.0 }
 0x1be   :  { %v1212_v11 = vpop.f32.mrb[86].mxu0  ;;  %v1500_v8 = vpop.f32.mrb[86].mxu1 }
 0x1bf   :  { %v1772_v63 = vmax.f32 %v1736_v34, 0.0  ;;  %v1635_v30 = vmax.f32 %v1634_v24, %v3085_v36  ;;  %v1637_v61 = vmax.f32 %v3093_v41, %v1212_v11  ;;  %v1214_v12 = vpop.f32.mrb[87].mxu0  ;;  %v1502_v17 = vpop.f32.mrb[87].mxu1 }
 0x1c1   :  { %v2233_v26 = vpack.c.bf16 %v1772_v63, %v1771_v56  ;;  %v1636_v0 = vmax.f32 %v1635_v30, %v1497_v16  ;;  %v1638_v55 = vmax.f32 %v1637_v61, %v3095_v42 }
 0x1c3   :  { %2311 = vst [vmem:[%s3439_s3 + $0x10] sm:$0xff] %v2233_v26   ;;  %v1737_v35 = vadd.f32 %v3275_v62, %v1636_v0  ;;  %v1639_v46 = vmax.f32 %v1638_v55, %v1500_v8 }
 0x1c4   :  { %v1217_v15 = vpop.f32.mrb[88].mxu0  ;;  %v1505_v18 = vpop.f32.mrb[88].mxu1 }
 0x1c5   :  { %v1738_v5 = vadd.f32 %v3275_v62, %v1639_v46  ;;  %v1640_v36 = vmax.f32 %v3103_v47, %v1217_v15  ;;  %v1219_v41 = vpop.f32.mrb[89].mxu0  ;;  %v1507_v25 = vpop.f32.mrb[89].mxu1  ;;  %v1773_v51 = vmax.f32 %v1737_v35, 0.0 }
 0x1c6   :  { %v1220_v33 = vpop.f32.mrb[90].mxu0  ;;  %v1508_v52 = vpop.f32.mrb[90].mxu1 }
 0x1c7   :  { %v1774_v43 = vmax.f32 %v1738_v5, 0.0  ;;  %v1641_v42 = vmax.f32 %v1640_v36, %v3105_v48  ;;  %v1643_v23 = vmax.f32 %v3113_v53, %v1220_v33  ;;  %v1222_v6 = vpop.f32.mrb[91].mxu0  ;;  %v1510_v44 = vpop.f32.mrb[91].mxu1 }
 0x1c9   :  { %v2238_v16 = vpack.c.bf16 %v1774_v43, %v1773_v51  ;;  %v1642_v34 = vmax.f32 %v1641_v42, %v1505_v18  ;;  %v1644_v24 = vmax.f32 %v1643_v23, %v3115_v54 }
 0x1cb   :  { %2312 = vst [vmem:[%s3439_s3 + $0x18] sm:$0xff] %v2238_v16   ;;  %v1739_v47 = vadd.f32 %v3275_v62, %v1642_v34  ;;  %v1645_v29 = vmax.f32 %v1644_v24, %v1508_v52 }
 0x1cc   :  { %v1225_v7 = vpop.f32.mrb[92].mxu0  ;;  %v1513_v11 = vpop.f32.mrb[92].mxu1 }
 0x1cd   :  { %v1740_v8 = vadd.f32 %v3275_v62, %v1645_v29  ;;  %v1646_v48 = vmax.f32 %v3123_v59, %v1225_v7  ;;  %v1227_v53 = vpop.f32.mrb[93].mxu0  ;;  %v1515_v56 = vpop.f32.mrb[93].mxu1  ;;  %v1775_v61 = vmax.f32 %v1739_v47, 0.0 }
 0x1ce   :  { %v1228_v63 = vpop.f32.mrb[94].mxu0  ;;  %v1516_v30 = vpop.f32.mrb[94].mxu1 }
 0x1cf   :  { %v1776_v12 = vmax.f32 %v1740_v8, 0.0  ;;  %v1647_v54 = vmax.f32 %v1646_v48, %v3125_v60  ;;  %v1649_v17 = vmax.f32 %v3133_v3, %v1228_v63  ;;  %v1230_v26 = vpop.f32.mrb[95].mxu0  ;;  %v1518_v0 = vpop.f32.mrb[95].mxu1 }
 0x1d1   :  { %v2243_v55 = vpack.c.bf16 %v1776_v12, %v1775_v61  ;;  %v1648_v35 = vmax.f32 %v1647_v54, %v1513_v11  ;;  %v1650_v46 = vmax.f32 %v1649_v17, %v3135_v4 }
 0x1d3   :  { %2313 = vst [vmem:[%s3439_s3 + $0x20] sm:$0xff] %v2243_v55   ;;  %v1741_v59 = vadd.f32 %v3275_v62, %v1648_v35  ;;  %v1651_v15 = vmax.f32 %v1650_v46, %v1516_v30 }
 0x1d4   :  { %v1233_v18 = vpop.f32.mrb[96].mxu0  ;;  %v1521_v5 = vpop.f32.mrb[96].mxu1 }
 0x1d5   :  { %v1742_v36 = vadd.f32 %v3275_v62, %v1651_v15  ;;  %v1652_v60 = vmax.f32 %v3143_v13, %v1233_v18  ;;  %v1235_v3 = vpop.f32.mrb[97].mxu0  ;;  %v1523_v41 = vpop.f32.mrb[97].mxu1  ;;  %v1777_v52 = vmax.f32 %v1741_v59, 0.0 }
 0x1d6   :  { %v1236_v25 = vpop.f32.mrb[98].mxu0  ;;  %v1524_v33 = vpop.f32.mrb[98].mxu1 }
 0x1d7   :  { %v1778_v51 = vmax.f32 %v1742_v36, 0.0  ;;  %v1653_v4 = vmax.f32 %v1652_v60, %v3145_v14  ;;  %v1655_v43 = vmax.f32 %v3153_v21, %v1236_v25  ;;  %v1238_v42 = vpop.f32.mrb[99].mxu0  ;;  %v1526_v23 = vpop.f32.mrb[99].mxu1 }
 0x1d9   :  { %v2248_v6 = vpack.c.bf16 %v1778_v51, %v1777_v52  ;;  %v1654_v44 = vmax.f32 %v1653_v4, %v1521_v5  ;;  %v1656_v16 = vmax.f32 %v1655_v43, %v3155_v22 }
 0x1db   :  { %2314 = vst [vmem:[%s3439_s3 + $0x28] sm:$0xff] %v2248_v6   ;;  %v1743_v13 = vadd.f32 %v3275_v62, %v1654_v44  ;;  %v1657_v34 = vmax.f32 %v1656_v16, %v1524_v33 }
 0x1dc   :  { %v1241_v24 = vpop.f32.mrb[100].mxu0  ;;  %v1529_v47 = vpop.f32.mrb[100].mxu1 }
 0x1dd   :  { %v1744_v29 = vadd.f32 %v3275_v62, %v1657_v34  ;;  %v1658_v14 = vmax.f32 %v3163_v31, %v1241_v24  ;;  %v1243_v21 = vpop.f32.mrb[101].mxu0  ;;  %v1531_v7 = vpop.f32.mrb[101].mxu1  ;;  %v1779_v48 = vmax.f32 %v1743_v13, 0.0 }
 0x1de   :  { %v1244_v11 = vpop.f32.mrb[102].mxu0  ;;  %v1532_v8 = vpop.f32.mrb[102].mxu1 }
 0x1df   :  { %v1780_v53 = vmax.f32 %v1744_v29, 0.0  ;;  %v1659_v22 = vmax.f32 %v1658_v14, %v3165_v32  ;;  %v1661_v56 = vmax.f32 %v3173_v39, %v1244_v11  ;;  %v1246_v63 = vpop.f32.mrb[103].mxu0  ;;  %v1534_v30 = vpop.f32.mrb[103].mxu1 }
 0x1e1   :  { %v2253_v61 = vpack.c.bf16 %v1780_v53, %v1779_v48  ;;  %v1660_v12 = vmax.f32 %v1659_v22, %v1529_v47  ;;  %v1662_v54 = vmax.f32 %v1661_v56, %v3175_v40 }
 0x1e3   :  { %2315 = vst [vmem:[%s3439_s3 + $0x30] sm:$0xff] %v2253_v61   ;;  %v1745_v31 = vadd.f32 %v3275_v62, %v1660_v12  ;;  %v1663_v17 = vmax.f32 %v1662_v54, %v1532_v8 }
 0x1e4   :  { %v1249_v26 = vpop.f32.mrb[104].mxu0  ;;  %v1537_v0 = vpop.f32.mrb[104].mxu1 }
 0x1e5   :  { %v1746_v55 = vadd.f32 %v3275_v62, %v1663_v17  ;;  %v1664_v32 = vmax.f32 %v3183_v49, %v1249_v26  ;;  %v1251_v39 = vpop.f32.mrb[105].mxu0  ;;  %v1539_v35 = vpop.f32.mrb[105].mxu1  ;;  %v1781_v15 = vmax.f32 %v1745_v31, 0.0 }
 0x1e6   :  { %v1252_v46 = vpop.f32.mrb[106].mxu0  ;;  %v1540_v59 = vpop.f32.mrb[106].mxu1 }
 0x1e7   :  { %v1782_v18 = vmax.f32 %v1746_v55, 0.0  ;;  %v1665_v40 = vmax.f32 %v1664_v32, %v3185_v50  ;;  %v1667_v5 = vmax.f32 %v3193_v57, %v1252_v46  ;;  %v1254_v36 = vpop.f32.mrb[107].mxu0  ;;  %v1542_v60 = vpop.f32.mrb[107].mxu1 }
 0x1e8   :  { %v3465_v60 = vld [vmem:[#allocation2_spill] sm:$0xff] }
 0x1e9   :  { %v2258_v3 = vpack.c.bf16 %v1782_v18, %v1781_v15  ;;  %v1666_v41 = vmax.f32 %v1665_v40, %v1537_v0  ;;  %v1668_v25 = vmax.f32 %v1667_v5, %v3195_v58 }
 0x1eb   :  { %2316 = vst [vmem:[%s3439_s3 + $0x38] sm:$0xff] %v2258_v3   ;;  %v1747_v49 = vadd.f32 %v3275_v62, %v1666_v41  ;;  %v1669_v33 = vmax.f32 %v1668_v25, %v1540_v59 }
 0x1ec   :  { %v1257_v52 = vpop.f32.mrb[108].mxu0  ;;  %v1545_v51 = vpop.f32.mrb[108].mxu1 }
 0x1ed   :  { %v1748_v4 = vadd.f32 %v3275_v62, %v1669_v33  ;;  %v1670_v50 = vmax.f32 %v3197_v1, %v1257_v52  ;;  %v1259_v57 = vpop.f32.mrb[109].mxu0  ;;  %v1547_v43 = vpop.f32.mrb[109].mxu1  ;;  %v1783_v6 = vmax.f32 %v1747_v49, 0.0 }
 0x1ee   :  { %v1260_v42 = vpop.f32.mrb[110].mxu0  ;;  %v1548_v23 = vpop.f32.mrb[110].mxu1 }
 0x1ef   :  { %v1784_v44 = vmax.f32 %v1748_v4, 0.0  ;;  %v1671_v58 = vmax.f32 %v1670_v50, %v3199_v2  ;;  %v1673_v16 = vmax.f32 %v3201_v9, %v1260_v42  ;;  %v1262_v13 = vpop.f32.mrb[111].mxu0  ;;  %v1550_v34 = vpop.f32.mrb[111].mxu1  ;;  %v3467_v42 = vld [vmem:[#allocation4_spill] sm:$0xff] }
 0x1f1   :  { %v2263_v24 = vpack.c.bf16 %v1784_v44, %v1783_v6  ;;  %v1672_v47 = vmax.f32 %v1671_v58, %v1545_v51  ;;  %v1674_v29 = vmax.f32 %v1673_v16, %v3203_v10  ;;  %v3468_v6 = vld [vmem:[#allocation5_spill] sm:$0xff] }
 0x1f3   :  { %2317 = vst [vmem:[%s3439_s3 + $0x40] sm:$0xff] %v2263_v24   ;;  %v1749_v1 = vadd.f32 %v3275_v62, %v1672_v47  ;;  %v1675_v14 = vmax.f32 %v1674_v29, %v1548_v23  ;;  %v3469_v24 = vld [vmem:[#allocation6_spill] sm:$0xff] }
 0x1f4   :  { %v1265_v21 = vpop.f32.mrb[112].mxu0  ;;  %v1553_v7 = vpop.f32.mrb[112].mxu1 }
 0x1f5   :  { %v1750_v11 = vadd.f32 %v3275_v62, %v1675_v14  ;;  %v1676_v2 = vmax.f32 %v3205_v19, %v1265_v21  ;;  %v1267_v9 = vpop.f32.mrb[113].mxu0  ;;  %v1555_v8 = vpop.f32.mrb[113].mxu1  ;;  %v1785_v22 = vmax.f32 %v1749_v1, 0.0 }
 0x1f6   :  { %v1268_v48 = vpop.f32.mrb[114].mxu0  ;;  %v1556_v53 = vpop.f32.mrb[114].mxu1 }
 0x1f7   :  { %v1786_v56 = vmax.f32 %v1750_v11, 0.0  ;;  %v1677_v10 = vmax.f32 %v1676_v2, %v3207_v20  ;;  %v1679_v63 = vmax.f32 %v3209_v27, %v1268_v48  ;;  %v1270_v30 = vpop.f32.mrb[115].mxu0  ;;  %v1558_v61 = vpop.f32.mrb[115].mxu1  ;;  %v3470_v11 = vld [vmem:[#allocation7_spill] sm:$0xff] }
 0x1f8   :  { %v3472_v30 = vld [vmem:[#allocation9_spill] sm:$0xff] }
 0x1f9   :  { %v2268_v12 = vpack.c.bf16 %v1786_v56, %v1785_v22  ;;  %v1678_v54 = vmax.f32 %v1677_v10, %v1553_v7  ;;  %v1680_v31 = vmax.f32 %v1679_v63, %v3211_v28  ;;  %v3471_v10 = vld [vmem:[#allocation8_spill] sm:$0xff] }
 0x1fb   :  { %2318 = vst [vmem:[%s3439_s3 + $0x48] sm:$0xff] %v2268_v12   ;;  %v1751_v19 = vadd.f32 %v3275_v62, %v1678_v54  ;;  %v1681_v17 = vmax.f32 %v1680_v31, %v1556_v53 }
 0x1fc   :  { %v1273_v26 = vpop.f32.mrb[116].mxu0  ;;  %v1561_v0 = vpop.f32.mrb[116].mxu1 }
 0x1fd   :  { %v1752_v55 = vadd.f32 %v3275_v62, %v1681_v17  ;;  %v1682_v20 = vmax.f32 %v3213_v37, %v1273_v26  ;;  %v1275_v27 = vpop.f32.mrb[117].mxu0  ;;  %v1563_v32 = vpop.f32.mrb[117].mxu1  ;;  %v1787_v46 = vmax.f32 %v1751_v19, 0.0  ;;  %v3473_v17 = vld [vmem:[#allocation10_spill] sm:$0xff] }
 0x1fe   :  { %v1276_v39 = vpop.f32.mrb[118].mxu0  ;;  %v1564_v35 = vpop.f32.mrb[118].mxu1 }
 0x1ff   :  { %v1788_v59 = vmax.f32 %v1752_v55, 0.0  ;;  %v1683_v28 = vmax.f32 %v1682_v20, %v3215_v38  ;;  %v1685_v15 = vmax.f32 %v3217_v45, %v1276_v39  ;;  %v1278_v18 = vpop.f32.mrb[119].mxu0  ;;  %v1566_v40 = vpop.f32.mrb[119].mxu1  ;;  %v3466_v38 = vld [vmem:[#allocation3_spill] sm:$0xff] }
 0x200   :  { %v3474_v39 = vld [vmem:[#allocation11_spill] sm:$0xff] }
 0x201   :  { %v2273_v5 = vpack.c.bf16 %v1788_v59, %v1787_v46  ;;  %v1684_v36 = vmax.f32 %v1683_v28, %v1561_v0  ;;  %v1686_v3 = vmax.f32 %v1685_v15, %v3465_v60  ;;  %v3476_v60 = vld [vmem:[#allocation13_spill] sm:$0xff] }
 0x203   :  { %2319 = vst [vmem:[%s3439_s3 + $0x50] sm:$0xff] %v2273_v5   ;;  %v1753_v37 = vadd.f32 %v3275_v62, %v1684_v36  ;;  %v1687_v41 = vmax.f32 %v1686_v3, %v1564_v35  ;;  %v3475_v5 = vld [vmem:[#allocation12_spill] sm:$0xff] }
 0x204   :  { %v1281_v25 = vpop.f32.mrb[120].mxu0  ;;  %v1569_v49 = vpop.f32.mrb[120].mxu1 }
 0x205   :  { %v1754_v33 = vadd.f32 %v3275_v62, %v1687_v41  ;;  %v1688_v52 = vmax.f32 %v3466_v38, %v1281_v25  ;;  %v1283_v45 = vpop.f32.mrb[121].mxu0  ;;  %v1571_v51 = vpop.f32.mrb[121].mxu1  ;;  %v1789_v57 = vmax.f32 %v1753_v37, 0.0 }
 0x206   :  { %v1284_v4 = vpop.f32.mrb[122].mxu0  ;;  %v1572_v50 = vpop.f32.mrb[122].mxu1 }
 0x207   :  { %v1790_v43 = vmax.f32 %v1754_v33, 0.0  ;;  %v1689_v23 = vmax.f32 %v1688_v52, %v3467_v42  ;;  %v1691_v44 = vmax.f32 %v3468_v6, %v1284_v4  ;;  %v1286_v58 = vpop.f32.mrb[123].mxu0  ;;  %v1574_v16 = vpop.f32.mrb[123].mxu1  ;;  %v3477_v33 = vld [vmem:[#allocation14_spill] sm:$0xff] }
 0x209   :  { %v2278_v13 = vpack.c.bf16 %v1790_v43, %v1789_v57  ;;  %v1690_v34 = vmax.f32 %v1689_v23, %v1569_v49  ;;  %v1692_v47 = vmax.f32 %v1691_v44, %v3469_v24  ;;  %v3478_v57 = vld [vmem:[#allocation15_spill] sm:$0xff]  ;;  %v3480_v24 = vld [vmem:[#allocation17_spill] sm:$0xff] }
 0x20b   :  { %2320 = vst [vmem:[%s3439_s3 + $0x58] sm:$0xff] %v2278_v13   ;;  %v1755_v29 = vadd.f32 %v3275_v62, %v1690_v34  ;;  %v1693_v1 = vmax.f32 %v1692_v47, %v1572_v50  ;;  %v3479_v13 = vld [vmem:[#allocation16_spill] sm:$0xff] }
 0x20c   :  { %v1289_v14 = vpop.f32.mrb[124].mxu0  ;;  %v1577_v21 = vpop.f32.mrb[124].mxu1 }
 0x20d   :  { %v1756_v7 = vadd.f32 %v3275_v62, %v1693_v1  ;;  %v1694_v2 = vmax.f32 %v3470_v11, %v1289_v14  ;;  %v1291_v9 = vpop.f32.mrb[125].mxu0  ;;  %v1579_v8 = vpop.f32.mrb[125].mxu1  ;;  %v1791_v22 = vmax.f32 %v1755_v29, 0.0 }
 0x20e   :  { %v1292_v48 = vpop.f32.mrb[126].mxu0  ;;  %v1580_v53 = vpop.f32.mrb[126].mxu1 }
 0x20f   :  { %v1792_v56 = vmax.f32 %v1756_v7, 0.0  ;;  %v1695_v63 = vmax.f32 %v1694_v2, %v3471_v10  ;;  %v1697_v61 = vmax.f32 %v3472_v30, %v1292_v48  ;;  %v1294_v12 = vpop.f32.mrb[127].mxu0  ;;  %v1582_v54 = vpop.f32.mrb[127].mxu1  ;;  %v3481_v7 = vld [vmem:[#allocation18_spill] sm:$0xff] }
 0x211   :  { %v2283_v31 = vpack.c.bf16 %v1792_v56, %v1791_v22  ;;  %v1696_v19 = vmax.f32 %v1695_v63, %v1577_v21  ;;  %v1698_v26 = vmax.f32 %v1697_v61, %v3473_v17  ;;  %v3482_v22 = vld [vmem:[#allocation19_spill] sm:$0xff]  ;;  %v3484_v17 = vld [vmem:[#allocation21_spill] sm:$0xff] }
 0x213   :  { %2321 = vst [vmem:[%s3439_s3 + $0x60] sm:$0xff] %v2283_v31   ;;  %v1757_v0 = vadd.f32 %v3275_v62, %v1696_v19  ;;  %v1699_v55 = vmax.f32 %v1698_v26, %v1580_v53  ;;  %v3483_v31 = vld [vmem:[#allocation20_spill] sm:$0xff] }
 0x214   :  { %v1297_v20 = vpop.f32.mrb[128].mxu0  ;;  %v1585_v27 = vpop.f32.mrb[128].mxu1 }
 0x215   :  { %v1758_v32 = vadd.f32 %v3275_v62, %v1699_v55  ;;  %v1700_v35 = vmax.f32 %v3474_v39, %v1297_v20  ;;  %v1299_v46 = vpop.f32.mrb[129].mxu0  ;;  %v1587_v59 = vpop.f32.mrb[129].mxu1  ;;  %v1793_v18 = vmax.f32 %v1757_v0, 0.0 }
 0x216   :  { %v1300_v28 = vpop.f32.mrb[130].mxu0  ;;  %v1588_v15 = vpop.f32.mrb[130].mxu1 }
 0x217   :  { %v1794_v40 = vmax.f32 %v1758_v32, 0.0  ;;  %v1701_v36 = vmax.f32 %v1700_v35, %v3475_v5  ;;  %v1703_v3 = vmax.f32 %v3476_v60, %v1300_v28  ;;  %v1302_v37 = vpop.f32.mrb[131].mxu0  ;;  %v1590_v41 = vpop.f32.mrb[131].mxu1  ;;  %v3485_v32 = vld [vmem:[#allocation22_spill] sm:$0xff] }
 0x219   :  { %v2288_v25 = vpack.c.bf16 %v1794_v40, %v1793_v18  ;;  %v1702_v49 = vmax.f32 %v1701_v36, %v1585_v27  ;;  %v1704_v38 = vmax.f32 %v1703_v3, %v3477_v33  ;;  %v3486_v18 = vld [vmem:[#allocation23_spill] sm:$0xff]  ;;  %v3488_v33 = vld [vmem:[#allocation25_spill] sm:$0xff] }
 0x21b   :  { %2322 = vst [vmem:[%s3439_s3 + $0x68] sm:$0xff] %v2288_v25   ;;  %v1759_v52 = vadd.f32 %v3275_v62, %v1702_v49  ;;  %v1705_v45 = vmax.f32 %v1704_v38, %v1588_v15  ;;  %v3487_v25 = vld [vmem:[#allocation24_spill] sm:$0xff] }
 0x21c   :  { %v1305_v51 = vpop.f32.mrb[132].mxu0  ;;  %v1593_v4 = vpop.f32.mrb[132].mxu1 }
 0x21d   :  { %v1760_v50 = vadd.f32 %v3275_v62, %v1705_v45  ;;  %v1706_v43 = vmax.f32 %v3478_v57, %v1305_v51  ;;  %v1307_v42 = vpop.f32.mrb[133].mxu0  ;;  %v1595_v23 = vpop.f32.mrb[133].mxu1  ;;  %v1795_v58 = vmax.f32 %v1759_v52, 0.0 }
 0x21e   :  { %v1308_v6 = vpop.f32.mrb[134].mxu0  ;;  %v1596_v44 = vpop.f32.mrb[134].mxu1 }
 0x21f   :  { %v1796_v16 = vmax.f32 %v1760_v50, 0.0  ;;  %v1707_v34 = vmax.f32 %v1706_v43, %v3479_v13  ;;  %v1709_v47 = vmax.f32 %v3480_v24, %v1308_v6  ;;  %v1310_v29 = vpop.f32.mrb[135].mxu0  ;;  %v1598_v1 = vpop.f32.mrb[135].mxu1  ;;  %v3489_v50 = vld [vmem:[#allocation26_spill] sm:$0xff] }
 0x221   :  { %v2293_v14 = vpack.c.bf16 %v1796_v16, %v1795_v58  ;;  %v1708_v21 = vmax.f32 %v1707_v34, %v1593_v4  ;;  %v1710_v11 = vmax.f32 %v1709_v47, %v3481_v7 }
 0x223   :  { %2323 = vst [vmem:[%s3439_s3 + $0x70] sm:$0xff] %v2293_v14   ;;  %v1761_v2 = vadd.f32 %v3275_v62, %v1708_v21  ;;  %v1711_v9 = vmax.f32 %v1710_v11, %v1596_v44 }
 0x224   :  { %v1313_v8 = vpop.f32.mrb[136].mxu0  ;;  %v1601_v48 = vpop.f32.mrb[136].mxu1 }
 0x225   :  { %v1762_v53 = vadd.f32 %v3275_v62, %v1711_v9  ;;  %v1712_v56 = vmax.f32 %v3482_v22, %v1313_v8  ;;  %v1315_v10 = vpop.f32.mrb[137].mxu0  ;;  %v1603_v63 = vpop.f32.mrb[137].mxu1  ;;  %v1797_v12 = vmax.f32 %v1761_v2, 0.0 }
 0x226   :  { %v1316_v30 = vpop.f32.mrb[138].mxu0  ;;  %v1604_v61 = vpop.f32.mrb[138].mxu1 }
 0x227   :  { %v1798_v54 = vmax.f32 %v1762_v53, 0.0  ;;  %v1713_v19 = vmax.f32 %v1712_v56, %v3483_v31  ;;  %v1715_v26 = vmax.f32 %v3484_v17, %v1316_v30  ;;  %v1318_v0 = vpop.f32.mrb[139].mxu0  ;;  %v1606_v55 = vpop.f32.mrb[139].mxu1 }
 0x229   :  { %v2298_v20 = vpack.c.bf16 %v1798_v54, %v1797_v12  ;;  %v1714_v27 = vmax.f32 %v1713_v19, %v1601_v48  ;;  %v1716_v39 = vmax.f32 %v1715_v26, %v3485_v32 }
 0x22b   :  { %2324 = vst [vmem:[%s3439_s3 + $0x78] sm:$0xff] %v2298_v20   ;;  %v1763_v35 = vadd.f32 %v3275_v62, %v1714_v27  ;;  %v1717_v46 = vmax.f32 %v1716_v39, %v1604_v61 }
 0x22c   :  { %v1321_v59 = vpop.f32.mrb[140].mxu0  ;;  %v1609_v28 = vpop.f32.mrb[140].mxu1 }
 0x22d   :  { %v1764_v15 = vadd.f32 %v3275_v62, %v1717_v46  ;;  %v1718_v40 = vmax.f32 %v3486_v18, %v1321_v59  ;;  %v1323_v5 = vpop.f32.mrb[141].mxu0  ;;  %v1611_v36 = vpop.f32.mrb[141].mxu1  ;;  %v1799_v37 = vmax.f32 %v1763_v35, 0.0 }
 0x22e   :  { %v1324_v60 = vpop.f32.mrb[142].mxu0  ;;  %v1612_v3 = vpop.f32.mrb[142].mxu1 }
 0x22f   :  { %v1800_v41 = vmax.f32 %v1764_v15, 0.0  ;;  %v1719_v49 = vmax.f32 %v1718_v40, %v3487_v25  ;;  %v1721_v38 = vmax.f32 %v3488_v33, %v1324_v60  ;;  %v1326_v52 = vpop.f32.mrb[143].mxu0  ;;  %v1614_v45 = vpop.f32.mrb[143].mxu1 }
 0x231   :  { %v2303_v51 = vpack.c.bf16 %v1800_v41, %v1799_v37  ;;  %v1720_v4 = vmax.f32 %v1719_v49, %v1609_v28  ;;  %v1722_v57 = vmax.f32 %v1721_v38, %v3489_v50 }
 0x233   :  { %2325 = vst [vmem:[%s3439_s3 + $0x80] sm:$0xff] %v2303_v51   ;;  %v1765_v43 = vadd.f32 %v3275_v62, %v1720_v4  ;;  %v1723_v42 = vmax.f32 %v1722_v57, %v1612_v3 }
 0x235   :  { %v1766_v23 = vadd.f32 %v3275_v62, %v1723_v42  ;;  %v1801_v6 = vmax.f32 %v1765_v43, 0.0 }
 0x237   :  { %v1802_v44 = vmax.f32 %v1766_v23, 0.0 }
 0x239   :  { %v2308_v58 = vpack.c.bf16 %v1802_v44, %v1801_v6 }
 0x23b   :  { %2326 = vst [vmem:[%s3439_s3 + $0x88] sm:$0xff] %v2308_v58  }

// kernel: net_forward.7
= control target key start
LH: loop header
LB: loop body
LE: loop exit
PB: predicated region body
PF: predicated region fallthrough
CT: control target
= control target key end

     0   :  { %v541_v3 = vmov 0.0|0.0   ;;  %vm542_vm0 = vmmov 0   ;;  %v543_v4 = vmov 0.0   ;;  %s804_s1 = inlined_call_operand.vmem [shape: f32[384,128], index: 1, kind: input, shape index: {}]   ;;  %s805_s0 = inlined_call_operand.vmem [shape: f32[8,384], index: 0, kind: input, shape index: {}]   ;;  %s806_s3 = inlined_call_operand.vmem [shape: f32[128,128], index: 3, kind: input, shape index: {}]   ;;  %s807_s2 = inlined_call_operand.vmem [shape: f32[1,128], index: 2, kind: input, shape index: {}]   ;;  %s808_s4 = inlined_call_operand.vmem [shape: f32[1,128], index: 4, kind: input, shape index: {}]   ;;  %s809_s5 = inlined_call_operand.vmem [shape: f32[8,128], index: 5, kind: output, shape index: {}]  }
   0x1   :  { %v39_v0 = vld [vmem:[%s804_s1 + $0x80] sm:$0xff]  ;;  %v40_v1 = vld [vmem:[%s804_s1 + $0x88] sm:$0xff]  ;;  %490 = vmatprep.subr.bf16.mxu1 %v541_v3  ;;  %420 = vmatprep.mubr.msk.f32.mxu1 %vm542_vm0, %v543_v4  ;;  %v41_v7 = vld [vmem:[%s804_s1 + $0x90] sm:$0xff] }
   0x2   :  { %v23_v2 = vld [vmem:[%s804_s1] sm:$0xff]  ;;  %v458_v5 = vpack.c.bf16 %v40_v1, %v39_v0  ;;  %v24_v6 = vld [vmem:[%s804_s1 + $0x8] sm:$0xff]  ;;  %v42_v8 = vld [vmem:[%s804_s1 + $0x98] sm:$0xff] }
   0x3   :  { %v460_v9 = vpack.c.bf16 %v24_v6, %v23_v2  ;;  %v462_v10 = vpack.c.bf16 %v42_v8, %v41_v7  ;;  %v25_v11 = vld [vmem:[%s804_s1 + $0x10] sm:$0xff]  ;;  %v26_v12 = vld [vmem:[%s804_s1 + $0x18] sm:$0xff]  ;;  %v55_v13 = vld [vmem:[%s804_s1 + $0x100] sm:$0xff] }
   0x4   :  { %459 = vmatprep.subr.bf16.mxu0 %v458_v5  ;;  %v56_v14 = vld [vmem:[%s804_s1 + $0x108] sm:$0xff]  ;;  %v43_v15 = vld [vmem:[%s804_s1 + $0xa0] sm:$0xff]  ;;  %v464_v17 = vpack.c.bf16 %v26_v12, %v25_v11  ;;  %v57_v19 = vld [vmem:[%s804_s1 + $0x110] sm:$0xff] }
   0x5   :  { %v44_v16 = vld [vmem:[%s804_s1 + $0xa8] sm:$0xff]  ;;  %461 = vmatpush3.bf16.msra.mxu0 %v460_v9  ;;  %v491_v18 = vpack.c.bf16 %v56_v14, %v55_v13  ;;  %v27_v21 = vld [vmem:[%s804_s1 + $0x20] sm:$0xff]  ;;  %v58_v23 = vld [vmem:[%s804_s1 + $0x118] sm:$0xff] }
   0x6   :  { %463 = vmatprep.subr.bf16.mxu0 %v462_v10  ;;  %v466_v20 = vpack.c.bf16 %v44_v16, %v43_v15  ;;  %v28_v22 = vld [vmem:[%s804_s1 + $0x28] sm:$0xff]  ;;  %v494_v24 = vpack.c.bf16 %v58_v23, %v57_v19  ;;  %v45_v25 = vld [vmem:[%s804_s1 + $0xb0] sm:$0xff]  ;;  %v46_v26 = vld [vmem:[%s804_s1 + $0xb8] sm:$0xff] }
   0x7   :  { %492 = vmatpush3.bf16.msra.mxu1 %v491_v18  ;;  %v59_v27 = vld [vmem:[%s804_s1 + $0x120] sm:$0xff]  ;;  %v60_v28 = vld [vmem:[%s804_s1 + $0x128] sm:$0xff]  ;;  %v468_v29 = vpack.c.bf16 %v28_v22, %v27_v21  ;;  %v470_v30 = vpack.c.bf16 %v46_v26, %v45_v25  ;;  %v29_v31 = vld [vmem:[%s804_s1 + $0x30] sm:$0xff] }
   0x8   :  { %493 = vmatprep.subr.bf16.mxu1 %v541_v3  ;;  %v30_v32 = vld [vmem:[%s804_s1 + $0x38] sm:$0xff]  ;;  %v497_v33 = vpack.c.bf16 %v60_v28, %v59_v27  ;;  %v47_v34 = vld [vmem:[%s804_s1 + $0xc0] sm:$0xff]  ;;  %v48_v35 = vld [vmem:[%s804_s1 + $0xc8] sm:$0xff] }
   0x9   :  { %465 = vmatpush3.bf16.msra.mxu0 %v464_v17  ;;  %v61_v36 = vld [vmem:[%s804_s1 + $0x130] sm:$0xff]  ;;  %v62_v37 = vld [vmem:[%s804_s1 + $0x138] sm:$0xff]  ;;  %v472_v38 = vpack.c.bf16 %v30_v32, %v29_v31  ;;  %v474_v39 = vpack.c.bf16 %v48_v35, %v47_v34  ;;  %v31_v40 = vld [vmem:[%s804_s1 + $0x40] sm:$0xff] }
   0xa   :  { %467 = vmatprep.subr.bf16.mxu0 %v466_v20  ;;  %v32_v41 = vld [vmem:[%s804_s1 + $0x48] sm:$0xff]  ;;  %v500_v42 = vpack.c.bf16 %v62_v37, %v61_v36  ;;  %v49_v43 = vld [vmem:[%s804_s1 + $0xd0] sm:$0xff]  ;;  %v50_v44 = vld [vmem:[%s804_s1 + $0xd8] sm:$0xff] }
   0xb   :  { %495 = vmatpush3.bf16.msra.mxu1 %v494_v24  ;;  %v63_v45 = vld [vmem:[%s804_s1 + $0x140] sm:$0xff]  ;;  %v64_v46 = vld [vmem:[%s804_s1 + $0x148] sm:$0xff]  ;;  %v476_v48 = vpack.c.bf16 %v32_v41, %v31_v40  ;;  %v478_v49 = vpack.c.bf16 %v50_v44, %v49_v43  ;;  %v33_v50 = vld [vmem:[%s804_s1 + $0x50] sm:$0xff] }
   0xc   :  { %496 = vmatprep.subr.bf16.mxu1 %v541_v3  ;;  %v21_v47 = vld [vmem:[%s805_s0 + $0x8] sm:$0xff]  ;;  %v34_v51 = vld [vmem:[%s804_s1 + $0x58] sm:$0xff]  ;;  %v503_v52 = vpack.c.bf16 %v64_v46, %v63_v45  ;;  %v51_v53 = vld [vmem:[%s804_s1 + $0xe0] sm:$0xff] }
   0xd   :  { %469 = vmatpush3.bf16.msra.mxu0 %v468_v29  ;;  %142 = vmatprep.mubr.f32.mxu0 %v21_v47  ;;  %v52_v54 = vld [vmem:[%s804_s1 + $0xe8] sm:$0xff]  ;;  %v65_v55 = vld [vmem:[%s804_s1 + $0x150] sm:$0xff]  ;;  %v66_v56 = vld [vmem:[%s804_s1 + $0x158] sm:$0xff]  ;;  %v480_v57 = vpack.c.bf16 %v34_v51, %v33_v50 }
   0xe   :  { %471 = vmatprep.subr.bf16.mxu0 %v470_v30  ;;  %v482_v58 = vpack.c.bf16 %v52_v54, %v51_v53  ;;  %v35_v59 = vld [vmem:[%s804_s1 + $0x60] sm:$0xff]  ;;  %v36_v60 = vld [vmem:[%s804_s1 + $0x68] sm:$0xff]  ;;  %v506_v61 = vpack.c.bf16 %v66_v56, %v65_v55  ;;  %v53_v62 = vld [vmem:[%s804_s1 + $0xf0] sm:$0xff] }
   0xf   :  { %498 = vmatpush3.bf16.msra.mxu1 %v497_v33  ;;  %v54_v63 = vld [vmem:[%s804_s1 + $0xf8] sm:$0xff]  ;;  %v67_v0 = vld [vmem:[%s804_s1 + $0x160] sm:$0xff]  ;;  %v68_v1 = vld [vmem:[%s804_s1 + $0x168] sm:$0xff]  ;;  %v484_v2 = vpack.c.bf16 %v36_v60, %v35_v59 }
  0x10   :  { %499 = vmatprep.subr.bf16.mxu1 %v541_v3  ;;  %v486_v5 = vpack.c.bf16 %v54_v63, %v53_v62  ;;  %v37_v6 = vld [vmem:[%s804_s1 + $0x70] sm:$0xff]  ;;  %v38_v7 = vld [vmem:[%s804_s1 + $0x78] sm:$0xff]  ;;  %v509_v8 = vpack.c.bf16 %v68_v1, %v67_v0  ;;  %v219_v12 = vld [vmem:[%s806_s3] sm:$0xff] }
  0x11   :  { %473 = vmatpush3.bf16.msra.mxu0 %v472_v38  ;;  %v69_v9 = vld [vmem:[%s804_s1 + $0x170] sm:$0xff]  ;;  %v70_v10 = vld [vmem:[%s804_s1 + $0x178] sm:$0xff]  ;;  %v488_v11 = vpack.c.bf16 %v38_v7, %v37_v6  ;;  %v220_v13 = vld [vmem:[%s806_s3 + $0x8] sm:$0xff] }
  0x12   :  { %475 = vmatprep.subr.bf16.mxu0 %v474_v39  ;;  %v512_v14 = vpack.c.bf16 %v70_v10, %v69_v9  ;;  %v20_v15 = vld [vmem:[%s805_s0] sm:$0xff]  ;;  %v515_v16 = vpack.c.bf16 %v220_v13, %v219_v12  ;;  %v221_v17 = vld [vmem:[%s806_s3 + $0x10] sm:$0xff]  ;;  %v222_v18 = vld [vmem:[%s806_s3 + $0x18] sm:$0xff] }
  0x13   :  { %501 = vmatpush3.bf16.msra.mxu1 %v500_v42  ;;  %v22_v19 = vld [vmem:[%s805_s0 + $0x10] sm:$0xff]  ;;  %v518_v20 = vpack.c.bf16 %v222_v18, %v221_v17  ;;  %v223_v21 = vld [vmem:[%s806_s3 + $0x20] sm:$0xff]  ;;  %v224_v22 = vld [vmem:[%s806_s3 + $0x28] sm:$0xff] }
  0x14   :  { %502 = vmatprep.subr.bf16.mxu1 %v541_v3  ;;  %v521_v23 = vpack.c.bf16 %v224_v22, %v223_v21  ;;  %v225_v24 = vld [vmem:[%s806_s3 + $0x30] sm:$0xff]  ;;  %v227_v26 = vld [vmem:[%s806_s3 + $0x40] sm:$0xff]  ;;  %v228_v27 = vld [vmem:[%s806_s3 + $0x48] sm:$0xff] }
  0x15   :  { %477 = vmatpush3.bf16.msra.mxu0 %v476_v48  ;;  %v527_v28 = vpack.c.bf16 %v228_v27, %v227_v26  ;;  %v229_v29 = vld [vmem:[%s806_s3 + $0x50] sm:$0xff]  ;;  %v230_v30 = vld [vmem:[%s806_s3 + $0x58] sm:$0xff]  ;;  %v231_v32 = vld [vmem:[%s806_s3 + $0x60] sm:$0xff] }
  0x16   :  { %479 = vmatprep.subr.bf16.mxu0 %v478_v49  ;;  %v530_v31 = vpack.c.bf16 %v230_v30, %v229_v29  ;;  %v232_v33 = vld [vmem:[%s806_s3 + $0x68] sm:$0xff]  ;;  %v233_v35 = vld [vmem:[%s806_s3 + $0x70] sm:$0xff]  ;;  %v234_v36 = vld [vmem:[%s806_s3 + $0x78] sm:$0xff] }
  0x17   :  { %504 = vmatpush3.bf16.msra.mxu1 %v503_v52  ;;  %v533_v34 = vpack.c.bf16 %v232_v33, %v231_v32  ;;  %v536_v37 = vpack.c.bf16 %v234_v36, %v233_v35  ;;  %v317_v40 = vld [vmem:[%s807_s2] ss:$0 sm:$0xff] }
  0x18   :  { %505 = vmatprep.subr.bf16.mxu1 %v541_v3  ;;  %v318_v46 = vld [vmem:[%s808_s4] ss:$0 sm:$0xff] }
  0x19   :  { %481 = vmatpush3.bf16.msra.mxu0 %v480_v57 }
  0x1a   :  { %483 = vmatprep.subr.bf16.mxu0 %v482_v58 }
  0x1b   :  { %507 = vmatpush3.bf16.msra.mxu1 %v506_v61 }
  0x1c   :  { %508 = vmatprep.subr.bf16.mxu1 %v541_v3 }
  0x1d   :  { %485 = vmatpush3.bf16.msra.mxu0 %v484_v2 }
  0x1e   :  { %487 = vmatprep.subr.bf16.mxu0 %v486_v5 }
  0x1f   :  { %510 = vmatpush3.bf16.msra.mxu1 %v509_v8 }
  0x20   :  { %511 = vmatprep.subr.bf16.mxu1 %v541_v3 }
  0x21   :  { %489 = vmatpush3.bf16.msra.mxu0 %v488_v11 }
  0x22   :  { %514 = vmatprep.subr.bf16.mxu0 %v541_v3 }
  0x23   :  { %513 = vmatpush3.bf16.msra.mxu1 %v512_v14 }
  0x24   :  { %143 = vmatmul.mubr.f32.vlgmr.msra.gmra.mrb[0].mxu0 %v20_v15 }
  0x25   :  { %516 = vmatpush3.bf16.msra.mxu0 %v515_v16  ;;  %455 = vmatprep.mubr.msk.f32.mxu0 %vm542_vm0, %v543_v4  ;;  %v226_v4 = vld [vmem:[%s806_s3 + $0x38] sm:$0xff] }
  0x26   :  { %421 = vmatmul.mubr.f32.vlgmr.msra.gmra.mrb[0].mxu1 %v22_v19  ;;  %517 = vmatprep.subr.bf16.mxu0 %v541_v3  ;;  %v524_v25 = vpack.c.bf16 %v226_v4, %v225_v24 }
  0x29   :  { %519 = vmatpush3.bf16.msra.mxu0 %v518_v20 }
  0x2a   :  { %520 = vmatprep.subr.bf16.mxu0 %v541_v3 }
  0x2d   :  { %522 = vmatpush3.bf16.msra.mxu0 %v521_v23 }
  0x2e   :  { %523 = vmatprep.subr.bf16.mxu0 %v541_v3 }
  0x31   :  { %525 = vmatpush3.bf16.msra.mxu0 %v524_v25 }
  0x32   :  { %526 = vmatprep.subr.bf16.mxu0 %v541_v3 }
  0x35   :  { %528 = vmatpush3.bf16.msra.mxu0 %v527_v28 }
  0x36   :  { %529 = vmatprep.subr.bf16.mxu0 %v541_v3 }
  0x39   :  { %531 = vmatpush3.bf16.msra.mxu0 %v530_v31 }
  0x3a   :  { %532 = vmatprep.subr.bf16.mxu0 %v541_v3 }
  0x3d   :  { %534 = vmatpush3.bf16.msra.mxu0 %v533_v34 }
  0x3e   :  { %535 = vmatprep.subr.bf16.mxu0 %v541_v3 }
  0x41   :  { %537 = vmatpush3.bf16.msra.mxu0 %v536_v37 }
  0xf7   :  { %v351_v38 = vpop.f32.mrb[0].mxu0 }
  0xf8   :  { %v352_v39 = vpop.f32.mrb[1].mxu0 }
  0xf9   :  { %v353_v41 = vadd.f32 %v352_v39, %v351_v38  ;;  %v214_v42 = vpop.f32.mrb[0].mxu1 }
  0xfa   :  { %v422_v43 = vpop.f32.mrb[1].mxu1 }
  0xfb   :  { %v145_v3 = vadd.f32 %v353_v41, %v317_v40 }
  0xfd   :  { %v215_v44 = vadd.f32 %v214_v42, %v145_v3 }
  0xff   :  { %v218_v45 = vmax.f32 %v215_v44, 0.0 }
 0x101   :  { %456 = vmatmul.mubr.f32.vlgmr.msra.gmra.mrb[2].mxu0 %v218_v45 }
 0x1d4   :  { %v308_v47 = vpop.f32.mrb[2].mxu0 }
 0x1d5   :  { %v309_v48 = vadd.f32 %v318_v46, %v308_v47  ;;  %v457_v49 = vpop.f32.mrb[3].mxu0 }
 0x1d7   :  { %312 = vst [vmem:[%s809_s5] sm:$0xff] %v309_v48 }

// kernel: net_forward.6
= control target key start
LH: loop header
LB: loop body
LE: loop exit
PB: predicated region body
PF: predicated region fallthrough
CT: control target
= control target key end

     0   :  { %s1233_s1 = inlined_call_operand.vmem [shape: bf16[512,128], index: 1, kind: input, shape index: {}]   ;;  %s1234_s0 = inlined_call_operand.vmem [shape: bf16[4,32,512], index: 0, kind: input, shape index: {}]   ;;  %s1235_s2 = inlined_call_operand.vmem [shape: f32[1,128], index: 2, kind: input, shape index: {}]   ;;  %s1236_s3 = inlined_call_operand.vmem [shape: bf16[32,128], index: 3, kind: output, shape index: {}]  }
   0x1   :  { %v920_v0 = vld [vmem:[%s1233_s1 + $0x40] sm:$0xff]   ;;  %v924_v4 = vld [vmem:[%s1233_s1 + $0x48] sm:$0xff]   ;;  %v928_v8 = vld [vmem:[%s1233_s1 + $0x50] sm:$0xff]  }
   0x2   :  { %v921_v1 = vld [vmem:[%s1233_s1 + $0xc0] sm:$0xff]   ;;  %792 = vmatprep.subr.bf16.mxu0 %v920_v0  ;;  %v925_v5 = vld [vmem:[%s1233_s1 + $0xc8] sm:$0xff]   ;;  %v929_v9 = vld [vmem:[%s1233_s1 + $0xd0] sm:$0xff]  }
   0x3   :  { %v922_v2 = vld [vmem:[%s1233_s1] sm:$0xff]   ;;  %856 = vmatprep.subr.bf16.mxu1 %v921_v1  ;;  %v926_v6 = vld [vmem:[%s1233_s1 + $0x8] sm:$0xff]   ;;  %v930_v10 = vld [vmem:[%s1233_s1 + $0x10] sm:$0xff]  }
   0x4   :  { %v923_v3 = vld [vmem:[%s1233_s1 + $0x80] sm:$0xff]   ;;  %793 = vmatpush3.bf16.msra.mxu0 %v922_v2  ;;  %v927_v7 = vld [vmem:[%s1233_s1 + $0x88] sm:$0xff]   ;;  %v931_v11 = vld [vmem:[%s1233_s1 + $0x90] sm:$0xff]  }
   0x5   :  { %857 = vmatpush3.bf16.msra.mxu1 %v923_v3  ;;  %794 = vmatprep.subr.bf16.mxu0 %v924_v4  ;;  %v932_v12 = vld [vmem:[%s1233_s1 + $0x58] sm:$0xff]   ;;  %v936_v16 = vld [vmem:[%s1233_s1 + $0x60] sm:$0xff]   ;;  %v940_v20 = vld [vmem:[%s1233_s1 + $0x68] sm:$0xff]  }
   0x6   :  { %858 = vmatprep.subr.bf16.mxu1 %v925_v5  ;;  %v933_v13 = vld [vmem:[%s1233_s1 + $0xd8] sm:$0xff]   ;;  %v937_v17 = vld [vmem:[%s1233_s1 + $0xe0] sm:$0xff]   ;;  %v941_v21 = vld [vmem:[%s1233_s1 + $0xe8] sm:$0xff]  }
   0x7   :  { %v934_v14 = vld [vmem:[%s1233_s1 + $0x18] sm:$0xff]   ;;  %v938_v18 = vld [vmem:[%s1233_s1 + $0x20] sm:$0xff]   ;;  %v942_v22 = vld [vmem:[%s1233_s1 + $0x28] sm:$0xff]  }
   0x8   :  { %795 = vmatpush3.bf16.msra.mxu0 %v926_v6  ;;  %v935_v15 = vld [vmem:[%s1233_s1 + $0x98] sm:$0xff]   ;;  %v939_v19 = vld [vmem:[%s1233_s1 + $0xa0] sm:$0xff]   ;;  %v943_v23 = vld [vmem:[%s1233_s1 + $0xa8] sm:$0xff]  }
   0x9   :  { %859 = vmatpush3.bf16.msra.mxu1 %v927_v7  ;;  %796 = vmatprep.subr.bf16.mxu0 %v928_v8  ;;  %v944_v24 = vld [vmem:[%s1233_s1 + $0x70] sm:$0xff]   ;;  %v948_v28 = vld [vmem:[%s1233_s1 + $0x78] sm:$0xff]  }
   0xa   :  { %860 = vmatprep.subr.bf16.mxu1 %v929_v9  ;;  %v945_v25 = vld [vmem:[%s1233_s1 + $0xf0] sm:$0xff]   ;;  %v949_v29 = vld [vmem:[%s1233_s1 + $0xf8] sm:$0xff]  }
   0xb   :  { %v946_v26 = vld [vmem:[%s1233_s1 + $0x30] sm:$0xff]   ;;  %v950_v30 = vld [vmem:[%s1233_s1 + $0x38] sm:$0xff]  }
   0xc   :  { %797 = vmatpush3.bf16.msra.mxu0 %v930_v10  ;;  %v947_v27 = vld [vmem:[%s1233_s1 + $0xb0] sm:$0xff]   ;;  %v951_v31 = vld [vmem:[%s1233_s1 + $0xb8] sm:$0xff]  }
   0xd   :  { %861 = vmatpush3.bf16.msra.mxu1 %v931_v11  ;;  %798 = vmatprep.subr.bf16.mxu0 %v932_v12  ;;  %v952_v32 = vld [vmem:[%s1234_s0] ss:$16 sps:$4 sm:$0xff]   ;;  %v954_v33 = vld [vmem:[%s1234_s0 + $0x4] ss:$16 sps:$4 sm:$0xff]   ;;  %v955_v34 = vld [vmem:[%s1234_s0 + $0x8] ss:$16 sps:$4 sm:$0xff]  }
   0xe   :  { %862 = vmatprep.subr.bf16.mxu1 %v933_v13  ;;  %v957_v35 = vld [vmem:[%s1234_s0 + $0xc] ss:$16 sps:$4 sm:$0xff]   ;;  %495 = vmatprep.mubr.bf16.mxu0 %v954_v33  ;;  %v958_v36 = vld [vmem:[%s1234_s0 + $0x24] ss:$16 sps:$4 sm:$0xff]   ;;  %v962_v38 = vld [vmem:[%s1234_s0 + $0x20] ss:$16 sps:$4 sm:$0xff]  }
   0xf   :  { %592 = vmatprep.mubr.bf16.mxu1 %v957_v35  ;;  %v960_v37 = vld [vmem:[%s1234_s0 + $0x2c] ss:$16 sps:$4 sm:$0xff]   ;;  %v963_v39 = vld [vmem:[%s1234_s0 + $0x28] ss:$16 sps:$4 sm:$0xff]   ;;  %v964_v40 = vld [vmem:[%s1234_s0 + $0x44] ss:$16 sps:$4 sm:$0xff]  }
  0x10   :  { %799 = vmatpush3.bf16.msra.mxu0 %v934_v14  ;;  %v966_v41 = vld [vmem:[%s1234_s0 + $0x4c] ss:$16 sps:$4 sm:$0xff]   ;;  %v968_v42 = vld [vmem:[%s1234_s0 + $0x40] ss:$16 sps:$4 sm:$0xff]   ;;  %v969_v43 = vld [vmem:[%s1234_s0 + $0x48] ss:$16 sps:$4 sm:$0xff]  }
  0x11   :  { %863 = vmatpush3.bf16.msra.mxu1 %v935_v15  ;;  %800 = vmatprep.subr.bf16.mxu0 %v936_v16  ;;  %v970_v44 = vld [vmem:[%s1234_s0 + $0x64] ss:$16 sps:$4 sm:$0xff]   ;;  %v972_v45 = vld [vmem:[%s1234_s0 + $0x6c] ss:$16 sps:$4 sm:$0xff]   ;;  %v974_v46 = vld [vmem:[%s1234_s0 + $0x60] ss:$16 sps:$4 sm:$0xff]  }
  0x12   :  { %864 = vmatprep.subr.bf16.mxu1 %v937_v17  ;;  %v975_v47 = vld [vmem:[%s1234_s0 + $0x68] ss:$16 sps:$4 sm:$0xff]   ;;  %v976_v48 = vld [vmem:[%s1234_s0 + $0x84] ss:$16 sps:$4 sm:$0xff]   ;;  %v978_v49 = vld [vmem:[%s1234_s0 + $0x8c] ss:$16 sps:$4 sm:$0xff]  }
  0x13   :  { %v980_v50 = vld [vmem:[%s1234_s0 + $0x80] ss:$16 sps:$4 sm:$0xff]   ;;  %v981_v51 = vld [vmem:[%s1234_s0 + $0x88] ss:$16 sps:$4 sm:$0xff]   ;;  %v982_v52 = vld [vmem:[%s1234_s0 + $0xa4] ss:$16 sps:$4 sm:$0xff]  }
  0x14   :  { %801 = vmatpush3.bf16.msra.mxu0 %v938_v18  ;;  %v984_v53 = vld [vmem:[%s1234_s0 + $0xac] ss:$16 sps:$4 sm:$0xff]   ;;  %v986_v54 = vld [vmem:[%s1234_s0 + $0xa0] ss:$16 sps:$4 sm:$0xff]   ;;  %v987_v55 = vld [vmem:[%s1234_s0 + $0xa8] ss:$16 sps:$4 sm:$0xff]  }
  0x15   :  { %865 = vmatpush3.bf16.msra.mxu1 %v939_v19  ;;  %802 = vmatprep.subr.bf16.mxu0 %v940_v20  ;;  %v988_v56 = vld [vmem:[%s1234_s0 + $0xc4] ss:$16 sps:$4 sm:$0xff]   ;;  %v990_v57 = vld [vmem:[%s1234_s0 + $0xcc] ss:$16 sps:$4 sm:$0xff]   ;;  %v992_v58 = vld [vmem:[%s1234_s0 + $0xc0] ss:$16 sps:$4 sm:$0xff]  }
  0x16   :  { %866 = vmatprep.subr.bf16.mxu1 %v941_v21  ;;  %v993_v59 = vld [vmem:[%s1234_s0 + $0xc8] ss:$16 sps:$4 sm:$0xff]   ;;  %v994_v60 = vld [vmem:[%s1234_s0 + $0xe4] ss:$16 sps:$4 sm:$0xff]   ;;  %v996_v61 = vld [vmem:[%s1234_s0 + $0xec] ss:$16 sps:$4 sm:$0xff]  }
  0x17   :  { %v998_v62 = vld [vmem:[%s1234_s0 + $0xe0] ss:$16 sps:$4 sm:$0xff]   ;;  %v999_v63 = vld [vmem:[%s1234_s0 + $0xe8] ss:$16 sps:$4 sm:$0xff]  }
  0x18   :  { %803 = vmatpush3.bf16.msra.mxu0 %v942_v22 }
  0x19   :  { %867 = vmatpush3.bf16.msra.mxu1 %v943_v23  ;;  %804 = vmatprep.subr.bf16.mxu0 %v944_v24 }
  0x1a   :  { %868 = vmatprep.subr.bf16.mxu1 %v945_v25 }
  0x1c   :  { %805 = vmatpush3.bf16.msra.mxu0 %v946_v26 }
  0x1d   :  { %869 = vmatpush3.bf16.msra.mxu1 %v947_v27  ;;  %806 = vmatprep.subr.bf16.mxu0 %v948_v28 }
  0x1e   :  { %870 = vmatprep.subr.bf16.mxu1 %v949_v29 }
  0x20   :  { %807 = vmatpush3.bf16.msra.mxu0 %v950_v30 }
  0x21   :  { %871 = vmatpush3.bf16.msra.mxu1 %v951_v31 }
  0x23   :  { %496 = vmatmul.mubr.bf16.vlgmr.msra.gmra.mrb[0].mxu0 %v952_v32 }
  0x24   :  { %593 = vmatmul.mubr.bf16.vlgmr.msra.gmra.mrb[0].mxu1 %v955_v34  ;;  %503 = vmatprep.mubr.bf16.mxu0 %v958_v36 }
  0x25   :  { %600 = vmatprep.mubr.bf16.mxu1 %v960_v37 }
  0x2b   :  { %504 = vmatmul.mubr.bf16.gmra.mrb[4].mxu0 %v962_v38 }
  0x2c   :  { %601 = vmatmul.mubr.bf16.gmra.mrb[4].mxu1 %v963_v39  ;;  %511 = vmatprep.mubr.bf16.mxu0 %v964_v40 }
  0x2d   :  { %608 = vmatprep.mubr.bf16.mxu1 %v966_v41 }
  0x33   :  { %512 = vmatmul.mubr.bf16.gmra.mrb[8].mxu0 %v968_v42 }
  0x34   :  { %609 = vmatmul.mubr.bf16.gmra.mrb[8].mxu1 %v969_v43  ;;  %519 = vmatprep.mubr.bf16.mxu0 %v970_v44 }
  0x35   :  { %616 = vmatprep.mubr.bf16.mxu1 %v972_v45 }
  0x3b   :  { %520 = vmatmul.mubr.bf16.gmra.mrb[12].mxu0 %v974_v46 }
  0x3c   :  { %617 = vmatmul.mubr.bf16.gmra.mrb[12].mxu1 %v975_v47  ;;  %527 = vmatprep.mubr.bf16.mxu0 %v976_v48 }
  0x3d   :  { %624 = vmatprep.mubr.bf16.mxu1 %v978_v49 }
  0x43   :  { %528 = vmatmul.mubr.bf16.gmra.mrb[16].mxu0 %v980_v50 }
  0x44   :  { %625 = vmatmul.mubr.bf16.gmra.mrb[16].mxu1 %v981_v51  ;;  %535 = vmatprep.mubr.bf16.mxu0 %v982_v52 }
  0x45   :  { %632 = vmatprep.mubr.bf16.mxu1 %v984_v53 }
  0x4b   :  { %536 = vmatmul.mubr.bf16.gmra.mrb[20].mxu0 %v986_v54 }
  0x4c   :  { %633 = vmatmul.mubr.bf16.gmra.mrb[20].mxu1 %v987_v55  ;;  %543 = vmatprep.mubr.bf16.mxu0 %v988_v56 }
  0x4d   :  { %640 = vmatprep.mubr.bf16.mxu1 %v990_v57 }
  0x53   :  { %544 = vmatmul.mubr.bf16.gmra.mrb[24].mxu0 %v992_v58 }
  0x54   :  { %641 = vmatmul.mubr.bf16.gmra.mrb[24].mxu1 %v993_v59  ;;  %551 = vmatprep.mubr.bf16.mxu0 %v994_v60 }
  0x55   :  { %648 = vmatprep.mubr.bf16.mxu1 %v996_v61 }
  0x5b   :  { %552 = vmatmul.mubr.bf16.gmra.mrb[28].mxu0 %v998_v62 }
  0x5c   :  { %649 = vmatmul.mubr.bf16.gmra.mrb[28].mxu1 %v999_v63 }
  0xf6   :  { %v808_v0 = vpop.f32.mrb[0].mxu0 }
  0xf7   :  { %v872_v1 = vpop.f32.mrb[0].mxu1  ;;  %v809_v2 = vpop.f32.mrb[1].mxu0 }
  0xf8   :  { %v810_v3 = vadd.f32 %v809_v2, %v808_v0  ;;  %v873_v4 = vpop.f32.mrb[1].mxu1  ;;  %v811_v5 = vpop.f32.mrb[2].mxu0 }
  0xf9   :  { %v874_v6 = vadd.f32 %v873_v4, %v872_v1  ;;  %v875_v7 = vpop.f32.mrb[2].mxu1  ;;  %v812_v8 = vpop.f32.mrb[3].mxu0 }
  0xfa   :  { %v813_v9 = vadd.f32 %v812_v8, %v811_v5  ;;  %v876_v10 = vpop.f32.mrb[3].mxu1 }
  0xfb   :  { %v1212_v11 = vadd.f32 %v874_v6, %v810_v3  ;;  %v877_v12 = vadd.f32 %v876_v10, %v875_v7 }
  0xfd   :  { %v1214_v13 = vadd.f32 %v877_v12, %v813_v9 }
  0xfe   :  { %v814_v14 = vpop.f32.mrb[4].mxu0 }
  0xff   :  { %v878_v15 = vpop.f32.mrb[4].mxu1  ;;  %v815_v16 = vpop.f32.mrb[5].mxu0 }
 0x100   :  { %v816_v17 = vadd.f32 %v815_v16, %v814_v14  ;;  %v879_v18 = vpop.f32.mrb[5].mxu1  ;;  %v817_v19 = vpop.f32.mrb[6].mxu0 }
 0x101   :  { %v880_v20 = vadd.f32 %v879_v18, %v878_v15  ;;  %v881_v21 = vpop.f32.mrb[6].mxu1  ;;  %v818_v22 = vpop.f32.mrb[7].mxu0 }
 0x102   :  { %v819_v23 = vadd.f32 %v818_v22, %v817_v19  ;;  %v882_v24 = vpop.f32.mrb[7].mxu1 }
 0x103   :  { %v1216_v25 = vadd.f32 %v880_v20, %v816_v17  ;;  %v883_v26 = vadd.f32 %v882_v24, %v881_v21 }
 0x105   :  { %v1218_v27 = vadd.f32 %v883_v26, %v819_v23 }
 0x106   :  { %v820_v28 = vpop.f32.mrb[8].mxu0 }
 0x107   :  { %v884_v29 = vpop.f32.mrb[8].mxu1  ;;  %v821_v30 = vpop.f32.mrb[9].mxu0 }
 0x108   :  { %v822_v31 = vadd.f32 %v821_v30, %v820_v28  ;;  %v885_v32 = vpop.f32.mrb[9].mxu1  ;;  %v823_v33 = vpop.f32.mrb[10].mxu0 }
 0x109   :  { %v886_v34 = vadd.f32 %v885_v32, %v884_v29  ;;  %v887_v35 = vpop.f32.mrb[10].mxu1  ;;  %v824_v36 = vpop.f32.mrb[11].mxu0 }
 0x10a   :  { %v825_v37 = vadd.f32 %v824_v36, %v823_v33  ;;  %v888_v38 = vpop.f32.mrb[11].mxu1 }
 0x10b   :  { %v611_v39 = vadd.f32 %v886_v34, %v822_v31  ;;  %v889_v40 = vadd.f32 %v888_v38, %v887_v35 }
 0x10d   :  { %v657_v41 = vmax.f32 %v1212_v11, %v611_v39  ;;  %v614_v42 = vadd.f32 %v889_v40, %v825_v37 }
 0x10e   :  { %v826_v43 = vpop.f32.mrb[12].mxu0 }
 0x10f   :  { %v660_v44 = vmax.f32 %v1214_v13, %v614_v42  ;;  %v890_v45 = vpop.f32.mrb[12].mxu1  ;;  %v827_v46 = vpop.f32.mrb[13].mxu0 }
 0x110   :  { %v828_v47 = vadd.f32 %v827_v46, %v826_v43  ;;  %v891_v48 = vpop.f32.mrb[13].mxu1  ;;  %v829_v49 = vpop.f32.mrb[14].mxu0 }
 0x111   :  { %v892_v50 = vadd.f32 %v891_v48, %v890_v45  ;;  %v893_v51 = vpop.f32.mrb[14].mxu1  ;;  %v830_v52 = vpop.f32.mrb[15].mxu0 }
 0x112   :  { %v831_v53 = vadd.f32 %v830_v52, %v829_v49  ;;  %v894_v54 = vpop.f32.mrb[15].mxu1 }
 0x113   :  { %v619_v55 = vadd.f32 %v892_v50, %v828_v47  ;;  %v895_v56 = vadd.f32 %v894_v54, %v893_v51 }
 0x115   :  { %v663_v57 = vmax.f32 %v1216_v25, %v619_v55  ;;  %v622_v58 = vadd.f32 %v895_v56, %v831_v53 }
 0x116   :  { %v832_v59 = vpop.f32.mrb[16].mxu0 }
 0x117   :  { %v666_v60 = vmax.f32 %v1218_v27, %v622_v58  ;;  %v896_v61 = vpop.f32.mrb[16].mxu1  ;;  %v833_v62 = vpop.f32.mrb[17].mxu0 }
 0x118   :  { %v834_v63 = vadd.f32 %v833_v62, %v832_v59  ;;  %v897_v0 = vpop.f32.mrb[17].mxu1  ;;  %v835_v1 = vpop.f32.mrb[18].mxu0 }
 0x119   :  { %v898_v2 = vadd.f32 %v897_v0, %v896_v61  ;;  %v899_v3 = vpop.f32.mrb[18].mxu1  ;;  %v836_v4 = vpop.f32.mrb[19].mxu0 }
 0x11a   :  { %v837_v5 = vadd.f32 %v836_v4, %v835_v1  ;;  %v900_v6 = vpop.f32.mrb[19].mxu1 }
 0x11b   :  { %v627_v7 = vadd.f32 %v898_v2, %v834_v63  ;;  %v901_v8 = vadd.f32 %v900_v6, %v899_v3 }
 0x11d   :  { %v658_v9 = vmax.f32 %v657_v41, %v627_v7  ;;  %v630_v10 = vadd.f32 %v901_v8, %v837_v5  ;;  %v772_v41 = vld [vmem:[%s1235_s2] ss:$0 sm:$0xff] }
 0x11e   :  { %v838_v11 = vpop.f32.mrb[20].mxu0 }
 0x11f   :  { %v661_v12 = vmax.f32 %v660_v44, %v630_v10  ;;  %v902_v13 = vpop.f32.mrb[20].mxu1  ;;  %v839_v14 = vpop.f32.mrb[21].mxu0 }
 0x120   :  { %v840_v15 = vadd.f32 %v839_v14, %v838_v11  ;;  %v903_v16 = vpop.f32.mrb[21].mxu1  ;;  %v841_v17 = vpop.f32.mrb[22].mxu0 }
 0x121   :  { %v904_v18 = vadd.f32 %v903_v16, %v902_v13  ;;  %v905_v19 = vpop.f32.mrb[22].mxu1  ;;  %v842_v20 = vpop.f32.mrb[23].mxu0 }
 0x122   :  { %v843_v21 = vadd.f32 %v842_v20, %v841_v17  ;;  %v906_v22 = vpop.f32.mrb[23].mxu1 }
 0x123   :  { %v635_v23 = vadd.f32 %v904_v18, %v840_v15  ;;  %v907_v24 = vadd.f32 %v906_v22, %v905_v19 }
 0x125   :  { %v664_v25 = vmax.f32 %v663_v57, %v635_v23  ;;  %v638_v26 = vadd.f32 %v907_v24, %v843_v21 }
 0x126   :  { %v844_v27 = vpop.f32.mrb[24].mxu0 }
 0x127   :  { %v667_v28 = vmax.f32 %v666_v60, %v638_v26  ;;  %v908_v29 = vpop.f32.mrb[24].mxu1  ;;  %v845_v30 = vpop.f32.mrb[25].mxu0 }
 0x128   :  { %v846_v31 = vadd.f32 %v845_v30, %v844_v27  ;;  %v909_v32 = vpop.f32.mrb[25].mxu1  ;;  %v847_v33 = vpop.f32.mrb[26].mxu0 }
 0x129   :  { %v910_v34 = vadd.f32 %v909_v32, %v908_v29  ;;  %v911_v35 = vpop.f32.mrb[26].mxu1  ;;  %v848_v36 = vpop.f32.mrb[27].mxu0 }
 0x12a   :  { %v849_v37 = vadd.f32 %v848_v36, %v847_v33  ;;  %v912_v38 = vpop.f32.mrb[27].mxu1 }
 0x12b   :  { %v643_v39 = vadd.f32 %v910_v34, %v846_v31  ;;  %v913_v40 = vadd.f32 %v912_v38, %v911_v35 }
 0x12d   :  { %v659_v42 = vmax.f32 %v658_v9, %v643_v39  ;;  %v646_v43 = vadd.f32 %v913_v40, %v849_v37 }
 0x12e   :  { %v850_v44 = vpop.f32.mrb[28].mxu0 }
 0x12f   :  { %v676_v45 = vadd.f32 %v772_v41, %v659_v42  ;;  %v662_v46 = vmax.f32 %v661_v12, %v646_v43  ;;  %v914_v47 = vpop.f32.mrb[28].mxu1  ;;  %v851_v48 = vpop.f32.mrb[29].mxu0 }
 0x130   :  { %v852_v49 = vadd.f32 %v851_v48, %v850_v44  ;;  %v915_v50 = vpop.f32.mrb[29].mxu1  ;;  %v853_v51 = vpop.f32.mrb[30].mxu0 }
 0x131   :  { %v677_v52 = vadd.f32 %v772_v41, %v662_v46  ;;  %v916_v53 = vadd.f32 %v915_v50, %v914_v47  ;;  %v917_v54 = vpop.f32.mrb[30].mxu1  ;;  %v854_v55 = vpop.f32.mrb[31].mxu0  ;;  %v680_v58 = vmax.f32 %v676_v45, 0.0 }
 0x132   :  { %v855_v56 = vadd.f32 %v854_v55, %v853_v51  ;;  %v918_v57 = vpop.f32.mrb[31].mxu1 }
 0x133   :  { %v681_v59 = vmax.f32 %v677_v52, 0.0  ;;  %v651_v60 = vadd.f32 %v916_v53, %v852_v49  ;;  %v919_v61 = vadd.f32 %v918_v57, %v917_v54 }
 0x135   :  { %v784_v62 = vpack.c.bf16 %v681_v59, %v680_v58  ;;  %v665_v63 = vmax.f32 %v664_v25, %v651_v60  ;;  %v654_v0 = vadd.f32 %v919_v61, %v855_v56 }
 0x137   :  { %785 = vst [vmem:[%s1236_s3] sm:$0xff] %v784_v62   ;;  %v678_v1 = vadd.f32 %v772_v41, %v665_v63  ;;  %v668_v2 = vmax.f32 %v667_v28, %v654_v0 }
 0x139   :  { %v679_v3 = vadd.f32 %v772_v41, %v668_v2  ;;  %v682_v4 = vmax.f32 %v678_v1, 0.0 }
 0x13b   :  { %v683_v5 = vmax.f32 %v679_v3, 0.0 }
 0x13d   :  { %v789_v6 = vpack.c.bf16 %v683_v5, %v682_v4 }
 0x13f   :  { %791 = vst [vmem:[%s1236_s3 + $0x8] sm:$0xff] %v789_v6  }

</bundles_post_ra>
